<compile_context>
chip_gen: v6e
topology: v6e:2x2x1
jax: 0.10.0
libtpu: 0.0.40
codegen_flags: <defaults>
</compile_context>

<pallas_src>
import jax
import jax.numpy as jnp
from jax.experimental import pallas as pl
from jax.experimental.pallas import tpu as pltpu

EPS = 1e-5


def conv1x1_bn_kernel(x_ref, w_ref, gamma_ref, beta_ref, o_ref):
    # x_ref:     [Cin, M]  bf16  (replicated across grid steps)
    # w_ref:     [tc, Cin] bf16  (this grid step's slice of Cout)
    # gamma_ref: [tc, 1]   f32
    # beta_ref:  [tc, 1]   f32
    # o_ref:     [tc, M]   f32
    #
    # 1x1 conv == channel-mixing matmul (bf16 operands, f32 accumulation).
    # Store straight to VMEM so the [tc, M] f32 activations never have to stay
    # live in vregs across the stats sweep and the apply pass.
    o_ref[...] = jnp.dot(w_ref[...], x_ref[...],
                         preferred_element_type=jnp.float32)

    inv_m = 1.0 / o_ref.shape[-1]
    # Two-pass, clamped batch variance (biased, matching PyTorch BN forward).
    # Lane-axis reductions go to the XLU, rsqrt on [tc,1] to the EUP; both are
    # off the VPU/MXU critical path.
    mean = jnp.sum(o_ref[...], axis=-1, keepdims=True) * inv_m            # [tc,1]
    centered = o_ref[...] - mean
    var = jnp.maximum(
        jnp.sum(centered * centered, axis=-1, keepdims=True) * inv_m, 0.0)  # [tc,1]
    scale = gamma_ref[...] * jax.lax.rsqrt(var + EPS)                      # [tc,1]
    shift = beta_ref[...] - mean * scale                                   # [tc,1]

    # Fused scale/shift apply, in place through VMEM.
    # TODO(synk): a downstream ReLU/activation could be fused here for free,
    # but the reference module is conv+BN only, so none is applied.
    o_ref[...] = o_ref[...] * scale + shift


def _cout_blocks(cout):
    """2-way Cout split only where there are 2 TensorCores per chip (v7x /
    megacore parts); on single-TC v5e / v6e a multi-step grid is just a serial
    loop with extra per-step overhead."""
    try:
        kind = jax.devices()[0].device_kind.lower()
    except Exception:
        return 1
    two_core = ("7" in kind) or ("v4" in kind) or ("v5p" in kind)
    n = 2 if two_core else 1
    if cout % (128 * n) != 0:
        n = 1
    return n


def conv2d_batchnorm(x_nchw, w_oihw, gamma, beta, *, compute_dtype=jnp.bfloat16):
    N, Cin, H, W = x_nchw.shape
    Cout = w_oihw.shape[0]
    M = N * H * W

    if N == 1:
        x_cm = x_nchw.reshape(Cin, M)                      # free reshape, no HBM pass
    else:
        # TODO(synk): for N > 1 express this via a 3-D BlockSpec over
        # (N, Cin, H*W) plus a grid axis over N with BN stats accumulated in
        # scratch, instead of this wrapper-side HBM transpose.
        x_cm = jnp.transpose(x_nchw, (1, 0, 2, 3)).reshape(Cin, M)

    # bf16 operands halve the dominant HBM traffic (X + W); accumulation and
    # all BN statistics stay f32.  Ideally the caller already supplies bf16.
    x_cm = x_cm.astype(compute_dtype)
    w_mat = w_oihw.reshape(Cout, Cin).astype(compute_dtype)
    gamma2 = gamma.reshape(Cout, 1).astype(jnp.float32)
    beta2 = beta.reshape(Cout, 1).astype(jnp.float32)

    n_blocks = _cout_blocks(Cout)
    tc = Cout // n_blocks

    out_cm = pl.pallas_call(
        conv1x1_bn_kernel,
        out_shape=jax.ShapeDtypeStruct((Cout, M), jnp.float32),
        grid_spec=pltpu.PrefetchScalarGridSpec(
            num_scalar_prefetch=0,
            grid=(n_blocks,),
            in_specs=[
                pl.BlockSpec((Cin, M), lambda i: (0, 0)),    # X (replicated)
                pl.BlockSpec((tc, Cin), lambda i: (i, 0)),   # W slice of Cout
                pl.BlockSpec((tc, 1), lambda i: (i, 0)),     # gamma slice
                pl.BlockSpec((tc, 1), lambda i: (i, 0)),     # beta slice
            ],
            out_specs=pl.BlockSpec((tc, M), lambda i: (i, 0)),
        ),
        compiler_params=pltpu.CompilerParams(
            dimension_semantics=("parallel",),
        ),
    )(x_cm, w_mat, gamma2, beta2)

    # [Cout, M] -> NCHW (free reshape for N == 1).
    if N == 1:
        return out_cm.reshape(1, Cout, H, W)
    return jnp.transpose(out_cm.reshape(Cout, N, H, W), (1, 0, 2, 3))


def reference(x_nchw, w_oihw, gamma, beta, *, compute_dtype=jnp.float32):
    N, Cin, H, W = x_nchw.shape
    Cout = w_oihw.shape[0]
    x_flat = jnp.transpose(x_nchw, (0, 2, 3, 1)).reshape(-1, Cin)
    y = jnp.dot(x_flat.astype(compute_dtype),
                w_oihw.reshape(Cout, Cin).T.astype(compute_dtype),
                preferred_element_type=jnp.float32)
    mean = jnp.mean(y, axis=0, keepdims=True)
    var = jnp.mean((y - mean) ** 2, axis=0, keepdims=True)
    out = (y - mean) / jnp.sqrt(var + EPS) * gamma[None, :] + beta[None, :]
    return jnp.transpose(out.reshape(N, H, W, Cout), (0, 3, 1, 2))


if __name__ == "__main__":
    key = jax.random.PRNGKey(0)
    k_x, k_w = jax.random.split(key)

    # Shapes from the PyTorch module: x460 is [1, 1024, 14, 14].
    N, Cin, H, W = 1, 1024, 14, 14
    Cout = 256

    x = jax.random.normal(k_x, (N, Cin, H, W), dtype=jnp.float32)
    # Conv2d weight [Cout, Cin, 1, 1]; kaiming-ish scale.
    w = jax.random.normal(k_w, (Cout, Cin, 1, 1), dtype=jnp.float32) * (1.0 / (Cin ** 0.5))
    # BatchNorm2d affine params: PyTorch init is weight=1, bias=0.
    gamma = jnp.ones((Cout,), dtype=jnp.float32)
    beta = jnp.zeros((Cout,), dtype=jnp.float32)

    out = conv2d_batchnorm(x, w, gamma, beta)
    out = jax.block_until_ready(out)
    assert out.shape == (N, Cout, H, W), out.shape

    # Tight check against a reference that mirrors the bf16-operand matmul.
    ref_bf16 = reference(x, w, gamma, beta, compute_dtype=jnp.bfloat16)
    err_bf16 = float(jnp.max(jnp.abs(out - ref_bf16)))
    assert jnp.allclose(out, ref_bf16, atol=2e-3, rtol=2e-3), err_bf16

    # Looser check against the full-f32 reference (bf16 operand quantization
    # contributes ~1e-2 worst case on O(1) normalized outputs).
    ref_f32 = reference(x, w, gamma, beta, compute_dtype=jnp.float32)
    err_f32 = float(jnp.max(jnp.abs(out - ref_f32)))
    assert jnp.allclose(out, ref_f32, atol=3e-2, rtol=3e-2), err_f32

    print("KERNEL_OK")
</pallas_src>

<mosaic_0001>
module attributes {stable_mosaic.version = 11 : i64} {
  func.func @conv1x1_bn_kernel(%arg0: i32, %arg1: memref<1024x196xbf16, #tpu.memory_space<vmem>>, %arg2: memref<256x1024xbf16, #tpu.memory_space<vmem>>, %arg3: memref<256x1xf32, #tpu.memory_space<vmem>>, %arg4: memref<256x1xf32, #tpu.memory_space<vmem>>, %arg5: memref<256x196xf32, #tpu.memory_space<vmem>>) attributes {dimension_semantics = [#tpu.dimension_semantics<parallel>], iteration_bounds = array<i64: 1>, scalar_prefetch = 0 : i64, scratch_operands = 0 : i64, tpu.core_type = #tpu.core_type<tc>, window_params = [{pipeline_mode = #tpu.pipeline_mode<synchronous>, transform_indices = @transform_0, window_bounds = array<i64: 1024, 196>}, {transform_indices = @transform_1, window_bounds = array<i64: 256, 1024>}, {transform_indices = @transform_2, window_bounds = array<i64: 256, 1>}, {transform_indices = @transform_3, window_bounds = array<i64: 256, 1>}, {transform_indices = @transform_4, window_bounds = array<i64: 256, 196>}]} {
    %c0 = arith.constant 0 : index
    %c0_0 = arith.constant 0 : index
    %0 = vector.load %arg2[%c0, %c0_0] : memref<256x1024xbf16, #tpu.memory_space<vmem>>, vector<256x1024xbf16>
    %c0_1 = arith.constant 0 : index
    %c0_2 = arith.constant 0 : index
    %1 = vector.load %arg1[%c0_1, %c0_2] : memref<1024x196xbf16, #tpu.memory_space<vmem>>, vector<1024x196xbf16>
    %cst = arith.constant dense<0.000000e+00> : vector<256x196xf32>
    %2 = tpu.matmul %0, %1, %cst {dimension_numbers = #tpu.dot_dimension_numbers<[1], [0], [0], [1], [0, 0, 1, 1], [], []>} : vector<256x1024xbf16>, vector<1024x196xbf16>, vector<256x196xf32> -> vector<256x196xf32>
    %c0_3 = arith.constant 0 : index
    %c0_4 = arith.constant 0 : index
    %3 = vector.load %arg5[%c0_3, %c0_4] : memref<256x196xf32, #tpu.memory_space<vmem>>, vector<256x196xf32>
    tpu.vector_store %arg5[%c0_3, %c0_4], %2 {strides = array<i32>} : memref<256x196xf32, #tpu.memory_space<vmem>>, vector<256x196xf32>,
    %c0_5 = arith.constant 0 : index
    %c0_6 = arith.constant 0 : index
    %4 = vector.load %arg5[%c0_5, %c0_6] : memref<256x196xf32, #tpu.memory_space<vmem>>, vector<256x196xf32>
    %cst_7 = arith.constant dense<0.000000e+00> : vector<256xf32>
    %5 = vector.multi_reduction <add>, %4, %cst_7 [1] : vector<256x196xf32> to vector<256xf32>
    %6 = vector.shape_cast %5 : vector<256xf32> to vector<256x1xf32>
    %cst_8 = arith.constant 0.00510204071 : f32
    %7 = vector.broadcast %cst_8 : f32 to vector<256x1xf32>
    %8 = arith.mulf %6, %7 : vector<256x1xf32>
    %c0_9 = arith.constant 0 : index
    %c0_10 = arith.constant 0 : index
    %9 = vector.load %arg5[%c0_9, %c0_10] : memref<256x196xf32, #tpu.memory_space<vmem>>, vector<256x196xf32>
    %10 = vector.broadcast %8 : vector<256x1xf32> to vector<256x196xf32>
    %11 = arith.subf %9, %10 : vector<256x196xf32>
    %12 = arith.mulf %11, %11 : vector<256x196xf32>
    %cst_11 = arith.constant dense<0.000000e+00> : vector<256xf32>
    %13 = vector.multi_reduction <add>, %12, %cst_11 [1] : vector<256x196xf32> to vector<256xf32>
    %14 = vector.shape_cast %13 : vector<256xf32> to vector<256x1xf32>
    %cst_12 = arith.constant 0.00510204071 : f32
    %15 = vector.broadcast %cst_12 : f32 to vector<256x1xf32>
    %16 = arith.mulf %14, %15 : vector<256x1xf32>
    %cst_13 = arith.constant 0.000000e+00 : f32
    %17 = vector.broadcast %cst_13 : f32 to vector<256x1xf32>
    %18 = arith.maximumf %16, %17 : vector<256x1xf32>
    %c0_14 = arith.constant 0 : index
    %c0_15 = arith.constant 0 : index
    %19 = vector.load %arg3[%c0_14, %c0_15] : memref<256x1xf32, #tpu.memory_space<vmem>>, vector<256x1xf32>
    %cst_16 = arith.constant 9.99999974E-6 : f32
    %20 = vector.broadcast %cst_16 : f32 to vector<256x1xf32>
    %21 = arith.addf %18, %20 : vector<256x1xf32>
    %22 = math.rsqrt %21 : vector<256x1xf32>
    %23 = arith.mulf %19, %22 : vector<256x1xf32>
    %c0_17 = arith.constant 0 : index
    %c0_18 = arith.constant 0 : index
    %24 = vector.load %arg4[%c0_17, %c0_18] : memref<256x1xf32, #tpu.memory_space<vmem>>, vector<256x1xf32>
    %25 = arith.mulf %8, %23 : vector<256x1xf32>
    %26 = arith.subf %24, %25 : vector<256x1xf32>
    %c0_19 = arith.constant 0 : index
    %c0_20 = arith.constant 0 : index
    %27 = vector.load %arg5[%c0_19, %c0_20] : memref<256x196xf32, #tpu.memory_space<vmem>>, vector<256x196xf32>
    %28 = vector.broadcast %23 : vector<256x1xf32> to vector<256x196xf32>
    %29 = arith.mulf %27, %28 : vector<256x196xf32>
    %30 = vector.broadcast %26 : vector<256x1xf32> to vector<256x196xf32>
    %31 = arith.addf %29, %30 : vector<256x196xf32>
    %c0_21 = arith.constant 0 : index
    %c0_22 = arith.constant 0 : index
    %32 = vector.load %arg5[%c0_21, %c0_22] : memref<256x196xf32, #tpu.memory_space<vmem>>, vector<256x196xf32>
    tpu.vector_store %arg5[%c0_21, %c0_22], %31 {strides = array<i32>} : memref<256x196xf32, #tpu.memory_space<vmem>>, vector<256x196xf32>,
    return
  }
  func.func @transform_0(%arg0: i32) -> (i32, i32) {
    %c0_i32 = arith.constant 0 : i32
    %c0_i32_0 = arith.constant 0 : i32
    %c0_i32_1 = arith.constant 0 : i32
    return %c0_i32, %c0_i32_0 : i32, i32
  }
  func.func @transform_1(%arg0: i32) -> (i32, i32) {
    %c0_i32 = arith.constant 0 : i32
    %c0_i32_0 = arith.constant 0 : i32
    return %arg0, %c0_i32 : i32, i32
  }
  func.func @transform_2(%arg0: i32) -> (i32, i32) {
    %c0_i32 = arith.constant 0 : i32
    %c0_i32_0 = arith.constant 0 : i32
    return %arg0, %c0_i32 : i32, i32
  }
  func.func @transform_3(%arg0: i32) -> (i32, i32) {
    %c0_i32 = arith.constant 0 : i32
    %c0_i32_0 = arith.constant 0 : i32
    return %arg0, %c0_i32 : i32, i32
  }
  func.func @transform_4(%arg0: i32) -> (i32, i32) {
    %c0_i32 = arith.constant 0 : i32
    %c0_i32_0 = arith.constant 0 : i32
    return %arg0, %c0_i32 : i32, i32
  }
}

</mosaic_0001>

<bundles_post_ra>
// kernel: tpu_custom_call.1
= control target key start
LH: loop header
LB: loop body
LE: loop exit
PB: predicated region body
PF: predicated region fallthrough
CT: control target
= control target key end

     0   :  { %vm2326_vm0 = vcmask 556032   ;;  %s6467_s0 = inlined_call_operand.vmem [shape: bf16[1024,196], index: 0, kind: input, shape index: {}]   ;;  %s6468_s1 = inlined_call_operand.vmem [shape: bf16[256,1024], index: 1, kind: input, shape index: {}]   ;;  %s6469_s4 = inlined_call_operand.vmem [shape: f32[256,196], index: 4, kind: output, shape index: {}]   ;;  %s6470_s2 = inlined_call_operand.vmem [shape: f32[256,1], index: 2, kind: input, shape index: {}]   ;;  %s6471_s3 = inlined_call_operand.vmem [shape: f32[256,1], index: 3, kind: input, shape index: {}]  }
   0x1   :  { %v3933_v0 = vld [vmem:[%s6467_s0 + $0x74] ss:$8 sps:$4 sm:$0xff]   ;;  %v3937_v2 = vld [vmem:[%s6467_s0 + $0x70] ss:$8 sps:$4 sm:$0xff]   ;;  %v3939_v4 = vld [vmem:[%s6467_s0 + $0x64] ss:$8 sps:$4 sm:$0xff]  }
   0x2   :  { %v3935_v1 = vld [vmem:[%s6467_s0 + $0x174] ss:$8 sps:$4 sm:$0xff]   ;;  %1553 = vmatprep.subr.bf16.mxu0 %v3933_v0  ;;  %v3938_v3 = vld [vmem:[%s6467_s0 + $0x170] ss:$8 sps:$4 sm:$0xff]   ;;  %v3941_v5 = vld [vmem:[%s6467_s0 + $0x164] ss:$8 sps:$4 sm:$0xff]  }
   0x3   :  { %1746 = vmatprep.subr.bf16.mxu1 %v3935_v1  ;;  %1554 = vmatpush1.bf16.msra.mxu0 %v3937_v2  ;;  %v3943_v6 = vld [vmem:[%s6467_s0 + $0x60] ss:$8 sps:$4 sm:$0xff]   ;;  %v3945_v8 = vld [vmem:[%s6467_s0 + $0x54] ss:$8 sps:$4 sm:$0xff]   ;;  %v3949_v10 = vld [vmem:[%s6467_s0 + $0x50] ss:$8 sps:$4 sm:$0xff]  }
   0x4   :  { %1747 = vmatpush1.bf16.msra.mxu1 %v3938_v3  ;;  %1555 = vmatprep.subr.bf16.mxu0 %v3939_v4  ;;  %v3944_v7 = vld [vmem:[%s6467_s0 + $0x160] ss:$8 sps:$4 sm:$0xff]   ;;  %v3947_v9 = vld [vmem:[%s6467_s0 + $0x154] ss:$8 sps:$4 sm:$0xff]   ;;  %v3950_v11 = vld [vmem:[%s6467_s0 + $0x150] ss:$8 sps:$4 sm:$0xff]  }
   0x5   :  { %1748 = vmatprep.subr.bf16.mxu1 %v3941_v5  ;;  %v3951_v12 = vld [vmem:[%s6467_s0 + $0x44] ss:$8 sps:$4 sm:$0xff]   ;;  %v3955_v14 = vld [vmem:[%s6467_s0 + $0x40] ss:$8 sps:$4 sm:$0xff]   ;;  %v3957_v16 = vld [vmem:[%s6467_s0 + $0x34] ss:$8 sps:$4 sm:$0xff]  }
   0x6   :  { %v3953_v13 = vld [vmem:[%s6467_s0 + $0x144] ss:$8 sps:$4 sm:$0xff]   ;;  %v3956_v15 = vld [vmem:[%s6467_s0 + $0x140] ss:$8 sps:$4 sm:$0xff]   ;;  %v3959_v17 = vld [vmem:[%s6467_s0 + $0x134] ss:$8 sps:$4 sm:$0xff]  }
   0x7   :  { %1556 = vmatpush1.bf16.msra.mxu0 %v3943_v6  ;;  %v3961_v18 = vld [vmem:[%s6467_s0 + $0x30] ss:$8 sps:$4 sm:$0xff]   ;;  %v3963_v20 = vld [vmem:[%s6467_s0 + $0x24] ss:$8 sps:$4 sm:$0xff]   ;;  %v3967_v22 = vld [vmem:[%s6467_s0 + $0x20] ss:$8 sps:$4 sm:$0xff]  }
   0x8   :  { %1749 = vmatpush1.bf16.msra.mxu1 %v3944_v7  ;;  %1557 = vmatprep.subr.bf16.mxu0 %v3945_v8  ;;  %v3962_v19 = vld [vmem:[%s6467_s0 + $0x130] ss:$8 sps:$4 sm:$0xff]   ;;  %v3965_v21 = vld [vmem:[%s6467_s0 + $0x124] ss:$8 sps:$4 sm:$0xff]   ;;  %v3968_v23 = vld [vmem:[%s6467_s0 + $0x120] ss:$8 sps:$4 sm:$0xff]  }
   0x9   :  { %1750 = vmatprep.subr.bf16.mxu1 %v3947_v9  ;;  %v3969_v24 = vld [vmem:[%s6467_s0 + $0x14] ss:$8 sps:$4 sm:$0xff]   ;;  %v3973_v26 = vld [vmem:[%s6467_s0 + $0x10] ss:$8 sps:$4 sm:$0xff]   ;;  %v3975_v28 = vld [vmem:[%s6467_s0 + $0x4] ss:$8 sps:$4 sm:$0xff]  }
   0xa   :  { %v3971_v25 = vld [vmem:[%s6467_s0 + $0x114] ss:$8 sps:$4 sm:$0xff]   ;;  %v3974_v27 = vld [vmem:[%s6467_s0 + $0x110] ss:$8 sps:$4 sm:$0xff]   ;;  %v3977_v29 = vld [vmem:[%s6467_s0 + $0x104] ss:$8 sps:$4 sm:$0xff]  }
   0xb   :  { %1558 = vmatpush1.bf16.msra.mxu0 %v3949_v10  ;;  %v3979_v30 = vld [vmem:[%s6467_s0] ss:$8 sps:$4 sm:$0xff]   ;;  %v3981_v32 = vld [vmem:[%s6467_s0 + $0xf4] ss:$8 sps:$4 sm:$0xff]   ;;  %v3985_v34 = vld [vmem:[%s6467_s0 + $0xf0] ss:$8 sps:$4 sm:$0xff]  }
   0xc   :  { %1751 = vmatpush1.bf16.msra.mxu1 %v3950_v11  ;;  %1559 = vmatprep.subr.bf16.mxu0 %v3951_v12  ;;  %v3980_v31 = vld [vmem:[%s6467_s0 + $0x100] ss:$8 sps:$4 sm:$0xff]   ;;  %v3983_v33 = vld [vmem:[%s6467_s0 + $0x1f4] ss:$8 sps:$4 sm:$0xff]   ;;  %v3986_v35 = vld [vmem:[%s6467_s0 + $0x1f0] ss:$8 sps:$4 sm:$0xff]  }
   0xd   :  { %1752 = vmatprep.subr.bf16.mxu1 %v3953_v13  ;;  %v3987_v36 = vld [vmem:[%s6467_s0 + $0xe4] ss:$8 sps:$4 sm:$0xff]   ;;  %v3991_v38 = vld [vmem:[%s6467_s0 + $0xe0] ss:$8 sps:$4 sm:$0xff]   ;;  %v3993_v40 = vld [vmem:[%s6467_s0 + $0xd4] ss:$8 sps:$4 sm:$0xff]  }
   0xe   :  { %v3989_v37 = vld [vmem:[%s6467_s0 + $0x1e4] ss:$8 sps:$4 sm:$0xff]   ;;  %v3992_v39 = vld [vmem:[%s6467_s0 + $0x1e0] ss:$8 sps:$4 sm:$0xff]   ;;  %v3995_v41 = vld [vmem:[%s6467_s0 + $0x1d4] ss:$8 sps:$4 sm:$0xff]  }
   0xf   :  { %1560 = vmatpush1.bf16.msra.mxu0 %v3955_v14  ;;  %v3997_v42 = vld [vmem:[%s6467_s0 + $0xd0] ss:$8 sps:$4 sm:$0xff]   ;;  %v3999_v44 = vld [vmem:[%s6467_s0 + $0xc4] ss:$8 sps:$4 sm:$0xff]   ;;  %v4003_v46 = vld [vmem:[%s6467_s0 + $0xc0] ss:$8 sps:$4 sm:$0xff]  }
  0x10   :  { %1753 = vmatpush1.bf16.msra.mxu1 %v3956_v15  ;;  %1561 = vmatprep.subr.bf16.mxu0 %v3957_v16  ;;  %v3998_v43 = vld [vmem:[%s6467_s0 + $0x1d0] ss:$8 sps:$4 sm:$0xff]   ;;  %v4001_v45 = vld [vmem:[%s6467_s0 + $0x1c4] ss:$8 sps:$4 sm:$0xff]   ;;  %v4004_v47 = vld [vmem:[%s6467_s0 + $0x1c0] ss:$8 sps:$4 sm:$0xff]  }
  0x11   :  { %1754 = vmatprep.subr.bf16.mxu1 %v3959_v17  ;;  %v4394_v48 = vld [vmem:[%s6468_s1] sm:$0xff]  ;;  %v4404_v50 = vld [vmem:[%s6468_s1 + $0x8] sm:$0xff]  ;;  %v4005_v52 = vld [vmem:[%s6467_s0 + $0xb4] ss:$8 sps:$4 sm:$0xff]  }
  0x12   :  { %v4399_v49 = vld [vmem:[%s6468_s1 + $0x20] sm:$0xff]  ;;  %v22_v51 = vld [vmem:[%s6468_s1 + $0x28] sm:$0xff]  ;;  %v4007_v54 = vld [vmem:[%s6467_s0 + $0x1b4] ss:$8 sps:$4 sm:$0xff]  }
  0x13   :  { %1562 = vmatpush1.bf16.msra.mxu0 %v3961_v18  ;;  %v3675_v53 = vcombine.high %v4394_v48, %v4399_v49  ;;  %v3677_v55 = vcombine.high %v4404_v50, %v22_v51  ;;  %v4009_v56 = vld [vmem:[%s6467_s0 + $0xb0] ss:$8 sps:$4 sm:$0xff]   ;;  %v4011_v58 = vld [vmem:[%s6467_s0 + $0xa4] ss:$8 sps:$4 sm:$0xff]   ;;  %v4015_v60 = vld [vmem:[%s6467_s0 + $0xa0] ss:$8 sps:$4 sm:$0xff]   ;;  %v3674_v12 = vcombine.low %v4394_v48, %v4399_v49  ;;  %v3676_v13 = vcombine.low %v4404_v50, %v22_v51 }
  0x14   :  { %1755 = vmatpush1.bf16.msra.mxu1 %v3962_v19  ;;  %1563 = vmatprep.subr.bf16.mxu0 %v3963_v20  ;;  %v4010_v57 = vld [vmem:[%s6467_s0 + $0x1b0] ss:$8 sps:$4 sm:$0xff]   ;;  %v4013_v59 = vld [vmem:[%s6467_s0 + $0x1a4] ss:$8 sps:$4 sm:$0xff]   ;;  %v4016_v61 = vld [vmem:[%s6467_s0 + $0x1a0] ss:$8 sps:$4 sm:$0xff]  }
  0x15   :  { %1756 = vmatprep.subr.bf16.mxu1 %v3965_v21  ;;  %1585 = vmatprep.mubr.bf16.mxu0 %v3675_v53  ;;  %v4017_v62 = vld [vmem:[%s6467_s0 + $0x94] ss:$8 sps:$4 sm:$0xff]   ;;  %v4021_v0 = vld [vmem:[%s6467_s0 + $0x90] ss:$8 sps:$4 sm:$0xff]   ;;  %v4023_v2 = vld [vmem:[%s6467_s0 + $0x84] ss:$8 sps:$4 sm:$0xff]  }
  0x16   :  { %1778 = vmatprep.mubr.bf16.mxu1 %v3677_v55  ;;  %v4019_v63 = vld [vmem:[%s6467_s0 + $0x194] ss:$8 sps:$4 sm:$0xff]   ;;  %v4022_v1 = vld [vmem:[%s6467_s0 + $0x190] ss:$8 sps:$4 sm:$0xff]   ;;  %v4025_v3 = vld [vmem:[%s6467_s0 + $0x184] ss:$8 sps:$4 sm:$0xff]  }
  0x17   :  { %1564 = vmatpush1.bf16.msra.mxu0 %v3967_v22  ;;  %v4027_v4 = vld [vmem:[%s6467_s0 + $0x80] ss:$8 sps:$4 sm:$0xff]   ;;  %v4031_v6 = vld [vmem:[%s6467_s0 + $0x274] ss:$8 sps:$4 sm:$0xff]   ;;  %v4029_v14 = vld [vmem:[%s6467_s0 + $0x270] ss:$8 sps:$4 sm:$0xff]  }
  0x18   :  { %1757 = vmatpush1.bf16.msra.mxu1 %v3968_v23  ;;  %1565 = vmatprep.subr.bf16.mxu0 %v3969_v24  ;;  %v4028_v5 = vld [vmem:[%s6467_s0 + $0x180] ss:$8 sps:$4 sm:$0xff]   ;;  %v4034_v7 = vld [vmem:[%s6467_s0 + $0x374] ss:$8 sps:$4 sm:$0xff]   ;;  %v4032_v15 = vld [vmem:[%s6467_s0 + $0x370] ss:$8 sps:$4 sm:$0xff]  }
  0x19   :  { %1758 = vmatprep.subr.bf16.mxu1 %v3971_v25  ;;  %v25_v8 = vld [vmem:[%s6468_s1 + $0x40] sm:$0xff]  ;;  %v26_v10 = vld [vmem:[%s6468_s1 + $0x48] sm:$0xff]  ;;  %v4053_v48 = vld [vmem:[%s6467_s0 + $0x230] ss:$8 sps:$4 sm:$0xff]  }
  0x1a   :  { %v29_v9 = vld [vmem:[%s6468_s1 + $0x60] sm:$0xff]  ;;  %v30_v11 = vld [vmem:[%s6468_s1 + $0x68] sm:$0xff]  ;;  %v4056_v49 = vld [vmem:[%s6467_s0 + $0x330] ss:$8 sps:$4 sm:$0xff]  }
  0x1b   :  { %1566 = vmatpush1.bf16.msra.mxu0 %v3973_v26  ;;  %v3683_v16 = vcombine.high %v25_v8, %v29_v9  ;;  %v3685_v17 = vcombine.high %v26_v10, %v30_v11  ;;  %v4035_v18 = vld [vmem:[%s6467_s0 + $0x260] ss:$8 sps:$4 sm:$0xff]   ;;  %v4037_v19 = vld [vmem:[%s6467_s0 + $0x264] ss:$8 sps:$4 sm:$0xff]   ;;  %v4043_v26 = vld [vmem:[%s6467_s0 + $0x254] ss:$8 sps:$4 sm:$0xff]  }
  0x1c   :  { %1759 = vmatpush1.bf16.msra.mxu1 %v3974_v27  ;;  %1567 = vmatprep.subr.bf16.mxu0 %v3975_v28  ;;  %v4038_v20 = vld [vmem:[%s6467_s0 + $0x360] ss:$8 sps:$4 sm:$0xff]   ;;  %v4040_v21 = vld [vmem:[%s6467_s0 + $0x364] ss:$8 sps:$4 sm:$0xff]   ;;  %v4046_v27 = vld [vmem:[%s6467_s0 + $0x354] ss:$8 sps:$4 sm:$0xff]   ;;  %v3682_v28 = vcombine.low %v25_v8, %v29_v9 }
  0x1d   :  { %1760 = vmatprep.subr.bf16.mxu1 %v3977_v29  ;;  %v33_v22 = vld [vmem:[%s6468_s1 + $0x80] sm:$0xff]  ;;  %v34_v24 = vld [vmem:[%s6468_s1 + $0x88] sm:$0xff]  ;;  %v3684_v29 = vcombine.low %v26_v10, %v30_v11  ;;  %v4079_v10 = vld [vmem:[%s6467_s0 + $0x2f4] ss:$8 sps:$4 sm:$0xff]  }
  0x1e   :  { %v37_v23 = vld [vmem:[%s6468_s1 + $0xa0] sm:$0xff]  ;;  %v38_v25 = vld [vmem:[%s6468_s1 + $0xa8] sm:$0xff]  ;;  %v4082_v11 = vld [vmem:[%s6467_s0 + $0x3f4] ss:$8 sps:$4 sm:$0xff]  }
  0x1f   :  { %1568 = vmatpush1.bf16.msra.mxu0 %v3979_v30  ;;  %v3691_v30 = vcombine.high %v33_v22, %v37_v23  ;;  %v4061_v50 = vld [vmem:[%s6467_s0 + $0x224] ss:$8 sps:$4 sm:$0xff]   ;;  %v4071_v8 = vld [vmem:[%s6467_s0 + $0x200] ss:$8 sps:$4 sm:$0xff]  }
  0x20   :  { %1761 = vmatpush1.bf16.msra.mxu1 %v3980_v31  ;;  %1569 = vmatprep.subr.bf16.mxu0 %v3981_v32  ;;  %v3693_v31 = vcombine.high %v34_v24, %v38_v25  ;;  %v4041_v32 = vld [vmem:[%s6467_s0 + $0x250] ss:$8 sps:$4 sm:$0xff]   ;;  %v4064_v51 = vld [vmem:[%s6467_s0 + $0x324] ss:$8 sps:$4 sm:$0xff]   ;;  %v4074_v9 = vld [vmem:[%s6467_s0 + $0x300] ss:$8 sps:$4 sm:$0xff]  }
  0x21   :  { %1762 = vmatprep.subr.bf16.mxu1 %v3983_v33  ;;  %v4044_v33 = vld [vmem:[%s6467_s0 + $0x350] ss:$8 sps:$4 sm:$0xff]   ;;  %v53_v53 = vld [vmem:[%s6468_s1 + $0x120] sm:$0xff]  ;;  %v54_v55 = vld [vmem:[%s6468_s1 + $0x128] sm:$0xff] }
  0x23   :  { %1570 = vmatpush2.bf16.msra.mxu0 %v3985_v34  ;;  %v4049_v34 = vld [vmem:[%s6467_s0 + $0x244] ss:$8 sps:$4 sm:$0xff]  }
  0x24   :  { %1763 = vmatpush2.bf16.msra.mxu1 %v3986_v35  ;;  %1571 = vmatprep.subr.bf16.mxu0 %v3987_v36  ;;  %v4052_v35 = vld [vmem:[%s6467_s0 + $0x344] ss:$8 sps:$4 sm:$0xff]  }
  0x25   :  { %1764 = vmatprep.subr.bf16.mxu1 %v3989_v37  ;;  %v41_v36 = vld [vmem:[%s6468_s1 + $0xc0] sm:$0xff] }
  0x26   :  { %v45_v37 = vld [vmem:[%s6468_s1 + $0xe0] sm:$0xff] }
  0x27   :  { %1572 = vmatpush2.bf16.msra.mxu0 %v3991_v38  ;;  %v42_v38 = vld [vmem:[%s6468_s1 + $0xc8] sm:$0xff] }
  0x28   :  { %1765 = vmatpush2.bf16.msra.mxu1 %v3992_v39  ;;  %1573 = vmatprep.subr.bf16.mxu0 %v3993_v40  ;;  %v46_v39 = vld [vmem:[%s6468_s1 + $0xe8] sm:$0xff] }
  0x29   :  { %1766 = vmatprep.subr.bf16.mxu1 %v3995_v41  ;;  %v4047_v40 = vld [vmem:[%s6467_s0 + $0x240] ss:$8 sps:$4 sm:$0xff]  }
  0x2a   :  { %v4050_v41 = vld [vmem:[%s6467_s0 + $0x340] ss:$8 sps:$4 sm:$0xff]  }
  0x2b   :  { %1574 = vmatpush2.bf16.msra.mxu0 %v3997_v42  ;;  %v4055_v42 = vld [vmem:[%s6467_s0 + $0x234] ss:$8 sps:$4 sm:$0xff]  }
  0x2c   :  { %1767 = vmatpush2.bf16.msra.mxu1 %v3998_v43  ;;  %1575 = vmatprep.subr.bf16.mxu0 %v3999_v44  ;;  %v4058_v43 = vld [vmem:[%s6467_s0 + $0x334] ss:$8 sps:$4 sm:$0xff]   ;;  %v3690_v44 = vcombine.low %v33_v22, %v37_v23  ;;  %v66_v22 = vld [vmem:[%s6468_s1 + $0x188] sm:$0xff] }
  0x2d   :  { %1768 = vmatprep.subr.bf16.mxu1 %v4001_v45  ;;  %v3692_v45 = vcombine.low %v34_v24, %v38_v25  ;;  %v70_v23 = vld [vmem:[%s6468_s1 + $0x1a8] sm:$0xff] }
  0x2e   :  { %v4083_v24 = vld [vmem:[%s6467_s0 + $0x2e0] ss:$8 sps:$4 sm:$0xff]  }
  0x2f   :  { %1576 = vmatpush2.bf16.msra.mxu0 %v4003_v46  ;;  %v3699_v46 = vcombine.high %v41_v36, %v45_v37  ;;  %v4086_v25 = vld [vmem:[%s6467_s0 + $0x3e0] ss:$8 sps:$4 sm:$0xff]  }
  0x30   :  { %1769 = vmatpush2.bf16.msra.mxu1 %v4004_v47  ;;  %1577 = vmatprep.subr.bf16.mxu0 %v4005_v52  ;;  %v3701_v47 = vcombine.high %v42_v38, %v46_v39  ;;  %v49_v52 = vld [vmem:[%s6468_s1 + $0x100] sm:$0xff] }
  0x31   :  { %1770 = vmatprep.subr.bf16.mxu1 %v4007_v54  ;;  %v50_v54 = vld [vmem:[%s6468_s1 + $0x108] sm:$0xff] }
  0x33   :  { %1578 = vmatpush2.bf16.msra.mxu0 %v4009_v56  ;;  %v4059_v56 = vld [vmem:[%s6467_s0 + $0x220] ss:$8 sps:$4 sm:$0xff]  }
  0x34   :  { %1771 = vmatpush2.bf16.msra.mxu1 %v4010_v57  ;;  %1579 = vmatprep.subr.bf16.mxu0 %v4011_v58  ;;  %v4062_v57 = vld [vmem:[%s6467_s0 + $0x320] ss:$8 sps:$4 sm:$0xff]   ;;  %v4067_v58 = vld [vmem:[%s6467_s0 + $0x214] ss:$8 sps:$4 sm:$0xff]  }
  0x35   :  { %1772 = vmatprep.subr.bf16.mxu1 %v4013_v59  ;;  %v4070_v59 = vld [vmem:[%s6467_s0 + $0x314] ss:$8 sps:$4 sm:$0xff]  }
  0x37   :  { %1580 = vmatpush2.bf16.msra.mxu0 %v4015_v60  ;;  %v3698_v60 = vcombine.low %v41_v36, %v45_v37  ;;  %v73_v36 = vld [vmem:[%s6468_s1 + $0x1c0] sm:$0xff] }
  0x38   :  { %1773 = vmatpush2.bf16.msra.mxu1 %v4016_v61  ;;  %1581 = vmatprep.subr.bf16.mxu0 %v4017_v62  ;;  %v3700_v61 = vcombine.low %v42_v38, %v46_v39  ;;  %v3707_v62 = vcombine.high %v49_v52, %v53_v53  ;;  %v77_v37 = vld [vmem:[%s6468_s1 + $0x1e0] sm:$0xff]  ;;  %v74_v38 = vld [vmem:[%s6468_s1 + $0x1c8] sm:$0xff] }
  0x39   :  { %1774 = vmatprep.subr.bf16.mxu1 %v4019_v63  ;;  %v3709_v63 = vcombine.high %v50_v54, %v54_v55  ;;  %v78_v39 = vld [vmem:[%s6468_s1 + $0x1e8] sm:$0xff] }
  0x3b   :  { %1582 = vmatpush2.bf16.msra.mxu0 %v4021_v0  ;;  %v4065_v0 = vld [vmem:[%s6467_s0 + $0x210] ss:$8 sps:$4 sm:$0xff]  }
  0x3c   :  { %1775 = vmatpush2.bf16.msra.mxu1 %v4022_v1  ;;  %1583 = vmatprep.subr.bf16.mxu0 %v4023_v2  ;;  %v4068_v1 = vld [vmem:[%s6467_s0 + $0x310] ss:$8 sps:$4 sm:$0xff]   ;;  %v4073_v2 = vld [vmem:[%s6467_s0 + $0x204] ss:$8 sps:$4 sm:$0xff]  }
  0x3d   :  { %1776 = vmatprep.subr.bf16.mxu1 %v4025_v3  ;;  %v4076_v3 = vld [vmem:[%s6467_s0 + $0x304] ss:$8 sps:$4 sm:$0xff]  }
  0x3f   :  { %1584 = vmatpush2.bf16.msra.mxu0 %v4027_v4  ;;  %v57_v4 = vld [vmem:[%s6468_s1 + $0x140] sm:$0xff] }
  0x40   :  { %1777 = vmatpush2.bf16.msra.mxu1 %v4028_v5  ;;  %1939 = vmatprep.subr.bf16.mxu0 %v4031_v6  ;;  %v61_v5 = vld [vmem:[%s6468_s1 + $0x160] sm:$0xff]  ;;  %v58_v6 = vld [vmem:[%s6468_s1 + $0x148] sm:$0xff] }
  0x41   :  { %2132 = vmatprep.subr.bf16.mxu1 %v4034_v7  ;;  %v62_v7 = vld [vmem:[%s6468_s1 + $0x168] sm:$0xff] }
  0x42   :  { %1586 = vmatmul.mubr.bf16.vlgmr.msra.gmra.mxu0 %v3674_v12  ;;  %v3706_v12 = vcombine.low %v49_v52, %v53_v53  ;;  %v81_v52 = vld [vmem:[%s6468_s1 + $0x200] sm:$0xff] }
  0x43   :  { %1779 = vmatmul.mubr.bf16.vlgmr.msra.gmra.mxu1 %v3676_v13  ;;  %1940 = vmatpush1.bf16.msra.mxu0 %v4029_v14  ;;  %v3708_v13 = vcombine.low %v50_v54, %v54_v55  ;;  %v3715_v14 = vcombine.high %v57_v4, %v61_v5  ;;  %v85_v53 = vld [vmem:[%s6468_s1 + $0x220] sm:$0xff]  ;;  %v82_v54 = vld [vmem:[%s6468_s1 + $0x208] sm:$0xff] }
  0x44   :  { %2133 = vmatpush1.bf16.msra.mxu1 %v4032_v15  ;;  %1595 = vmatprep.mubr.bf16.mxu0 %v3683_v16  ;;  %v3717_v15 = vcombine.high %v58_v6, %v62_v7  ;;  %v4077_v16 = vld [vmem:[%s6467_s0 + $0x2f0] ss:$8 sps:$4 sm:$0xff]   ;;  %v86_v55 = vld [vmem:[%s6468_s1 + $0x228] sm:$0xff] }
  0x45   :  { %1788 = vmatprep.mubr.bf16.mxu1 %v3685_v17  ;;  %1941 = vmatprep.subr.bf16.mxu0 %v4037_v19  ;;  %v4080_v17 = vld [vmem:[%s6467_s0 + $0x3f0] ss:$8 sps:$4 sm:$0xff]   ;;  %v4088_v19 = vld [vmem:[%s6467_s0 + $0x3e4] ss:$8 sps:$4 sm:$0xff]  }
  0x46   :  { %2134 = vmatprep.subr.bf16.mxu1 %v4040_v21  ;;  %v69_v21 = vld [vmem:[%s6468_s1 + $0x1a0] sm:$0xff] }
  0x47   :  { %1942 = vmatpush1.bf16.msra.mxu0 %v4035_v18  ;;  %v4085_v18 = vld [vmem:[%s6467_s0 + $0x2e4] ss:$8 sps:$4 sm:$0xff]  }
  0x48   :  { %2135 = vmatpush1.bf16.msra.mxu1 %v4038_v20  ;;  %1943 = vmatprep.subr.bf16.mxu0 %v4043_v26  ;;  %v65_v20 = vld [vmem:[%s6468_s1 + $0x180] sm:$0xff]  ;;  %v4091_v26 = vld [vmem:[%s6467_s0 + $0x2d4] ss:$8 sps:$4 sm:$0xff]  }
  0x49   :  { %2136 = vmatprep.subr.bf16.mxu1 %v4046_v27  ;;  %v4094_v27 = vld [vmem:[%s6467_s0 + $0x3d4] ss:$8 sps:$4 sm:$0xff]  }
  0x4a   :  { %1596 = vmatmul.mubr.bf16.gmra.mxu0 %v3682_v28  ;;  %v3714_v28 = vcombine.low %v57_v4, %v61_v5  ;;  %v89_v4 = vld [vmem:[%s6468_s1 + $0x240] sm:$0xff] }
  0x4b   :  { %1789 = vmatmul.mubr.bf16.gmra.mxu1 %v3684_v29  ;;  %1605 = vmatprep.mubr.bf16.mxu0 %v3691_v30  ;;  %v3716_v29 = vcombine.low %v58_v6, %v62_v7  ;;  %v3723_v30 = vcombine.high %v65_v20, %v69_v21  ;;  %v93_v5 = vld [vmem:[%s6468_s1 + $0x260] sm:$0xff]  ;;  %v90_v6 = vld [vmem:[%s6468_s1 + $0x248] sm:$0xff] }
  0x4c   :  { %1798 = vmatprep.mubr.bf16.mxu1 %v3693_v31  ;;  %1944 = vmatpush1.bf16.msra.mxu0 %v4041_v32  ;;  %v3725_v31 = vcombine.high %v66_v22, %v70_v23  ;;  %v4089_v32 = vld [vmem:[%s6467_s0 + $0x2d0] ss:$8 sps:$4 sm:$0xff]   ;;  %v94_v7 = vld [vmem:[%s6468_s1 + $0x268] sm:$0xff] }
  0x4d   :  { %2137 = vmatpush1.bf16.msra.mxu1 %v4044_v33  ;;  %1945 = vmatprep.subr.bf16.mxu0 %v4049_v34  ;;  %v4092_v33 = vld [vmem:[%s6467_s0 + $0x3d0] ss:$8 sps:$4 sm:$0xff]   ;;  %v4097_v34 = vld [vmem:[%s6467_s0 + $0x2c4] ss:$8 sps:$4 sm:$0xff]  }
  0x4e   :  { %2138 = vmatprep.subr.bf16.mxu1 %v4052_v35  ;;  %v4100_v35 = vld [vmem:[%s6467_s0 + $0x3c4] ss:$8 sps:$4 sm:$0xff]  }
  0x50   :  { %1946 = vmatpush1.bf16.msra.mxu0 %v4047_v40  ;;  %v4095_v40 = vld [vmem:[%s6467_s0 + $0x2c0] ss:$8 sps:$4 sm:$0xff]  }
  0x51   :  { %2139 = vmatpush1.bf16.msra.mxu1 %v4050_v41  ;;  %1947 = vmatprep.subr.bf16.mxu0 %v4055_v42  ;;  %v4098_v41 = vld [vmem:[%s6467_s0 + $0x3c0] ss:$8 sps:$4 sm:$0xff]   ;;  %v4103_v42 = vld [vmem:[%s6467_s0 + $0x2b4] ss:$8 sps:$4 sm:$0xff]  }
  0x52   :  { %2140 = vmatprep.subr.bf16.mxu1 %v4058_v43  ;;  %1606 = vmatmul.mubr.bf16.gmra.mxu0 %v3690_v44  ;;  %v4106_v43 = vld [vmem:[%s6467_s0 + $0x3b4] ss:$8 sps:$4 sm:$0xff]   ;;  %v3722_v44 = vcombine.low %v65_v20, %v69_v21 }
  0x53   :  { %1799 = vmatmul.mubr.bf16.gmra.mxu1 %v3692_v45  ;;  %1615 = vmatprep.mubr.bf16.mxu0 %v3699_v46  ;;  %v3724_v45 = vcombine.low %v66_v22, %v70_v23  ;;  %v3731_v46 = vcombine.high %v73_v36, %v77_v37  ;;  %v105_v22 = vld [vmem:[%s6468_s1 + $0x2c0] sm:$0xff] }
  0x54   :  { %1808 = vmatprep.mubr.bf16.mxu1 %v3701_v47  ;;  %1948 = vmatpush1.bf16.msra.mxu0 %v4053_v48  ;;  %v3733_v47 = vcombine.high %v74_v38, %v78_v39  ;;  %v4101_v48 = vld [vmem:[%s6467_s0 + $0x2b0] ss:$8 sps:$4 sm:$0xff]   ;;  %v109_v23 = vld [vmem:[%s6468_s1 + $0x2e0] sm:$0xff] }
  0x55   :  { %2141 = vmatpush1.bf16.msra.mxu1 %v4056_v49  ;;  %1949 = vmatprep.subr.bf16.mxu0 %v4061_v50  ;;  %v4104_v49 = vld [vmem:[%s6467_s0 + $0x3b0] ss:$8 sps:$4 sm:$0xff]   ;;  %v4109_v50 = vld [vmem:[%s6467_s0 + $0x2a4] ss:$8 sps:$4 sm:$0xff]  }
  0x56   :  { %2142 = vmatprep.subr.bf16.mxu1 %v4064_v51  ;;  %v4112_v51 = vld [vmem:[%s6467_s0 + $0x3a4] ss:$8 sps:$4 sm:$0xff]  }
  0x58   :  { %1950 = vmatpush1.bf16.msra.mxu0 %v4059_v56  ;;  %v4107_v56 = vld [vmem:[%s6467_s0 + $0x2a0] ss:$8 sps:$4 sm:$0xff]  }
  0x59   :  { %2143 = vmatpush1.bf16.msra.mxu1 %v4062_v57  ;;  %1951 = vmatprep.subr.bf16.mxu0 %v4067_v58  ;;  %v4110_v57 = vld [vmem:[%s6467_s0 + $0x3a0] ss:$8 sps:$4 sm:$0xff]   ;;  %v4115_v58 = vld [vmem:[%s6467_s0 + $0x294] ss:$8 sps:$4 sm:$0xff]  }
  0x5a   :  { %2144 = vmatprep.subr.bf16.mxu1 %v4070_v59  ;;  %1616 = vmatmul.mubr.bf16.gmra.mxu0 %v3698_v60  ;;  %v4118_v59 = vld [vmem:[%s6467_s0 + $0x394] ss:$8 sps:$4 sm:$0xff]   ;;  %v3730_v60 = vcombine.low %v73_v36, %v77_v37 }
  0x5b   :  { %1809 = vmatmul.mubr.bf16.gmra.mxu1 %v3700_v61  ;;  %1625 = vmatprep.mubr.bf16.mxu0 %v3707_v62  ;;  %v3732_v61 = vcombine.low %v74_v38, %v78_v39  ;;  %v3739_v62 = vcombine.high %v81_v52, %v85_v53  ;;  %v121_v38 = vld [vmem:[%s6468_s1 + $0x340] sm:$0xff] }
  0x5c   :  { %1818 = vmatprep.mubr.bf16.mxu1 %v3709_v63  ;;  %1952 = vmatpush1.bf16.msra.mxu0 %v4065_v0  ;;  %v3741_v63 = vcombine.high %v82_v54, %v86_v55  ;;  %v4113_v0 = vld [vmem:[%s6467_s0 + $0x290] ss:$8 sps:$4 sm:$0xff]   ;;  %v125_v39 = vld [vmem:[%s6468_s1 + $0x360] sm:$0xff] }
  0x5d   :  { %2145 = vmatpush1.bf16.msra.mxu1 %v4068_v1  ;;  %1953 = vmatprep.subr.bf16.mxu0 %v4073_v2  ;;  %v4116_v1 = vld [vmem:[%s6467_s0 + $0x390] ss:$8 sps:$4 sm:$0xff]   ;;  %v4121_v2 = vld [vmem:[%s6467_s0 + $0x284] ss:$8 sps:$4 sm:$0xff]  }
  0x5e   :  { %2146 = vmatprep.subr.bf16.mxu1 %v4076_v3  ;;  %v4124_v3 = vld [vmem:[%s6467_s0 + $0x384] ss:$8 sps:$4 sm:$0xff]  }
  0x60   :  { %1954 = vmatpush1.bf16.msra.mxu0 %v4071_v8  ;;  %v4119_v8 = vld [vmem:[%s6467_s0 + $0x280] ss:$8 sps:$4 sm:$0xff]  }
  0x61   :  { %2147 = vmatpush1.bf16.msra.mxu1 %v4074_v9  ;;  %1955 = vmatprep.subr.bf16.mxu0 %v4079_v10  ;;  %v4122_v9 = vld [vmem:[%s6467_s0 + $0x380] ss:$8 sps:$4 sm:$0xff]   ;;  %v3738_v10 = vcombine.low %v81_v52, %v85_v53 }
  0x62   :  { %2148 = vmatprep.subr.bf16.mxu1 %v4082_v11  ;;  %1626 = vmatmul.mubr.bf16.gmra.mxu0 %v3706_v12  ;;  %v3740_v11 = vcombine.low %v82_v54, %v86_v55  ;;  %v3747_v12 = vcombine.high %v89_v4, %v93_v5  ;;  %v137_v54 = vld [vmem:[%s6468_s1 + $0x3c0] sm:$0xff] }
  0x63   :  { %1819 = vmatmul.mubr.bf16.gmra.mxu1 %v3708_v13  ;;  %1635 = vmatprep.mubr.bf16.mxu0 %v3715_v14  ;;  %v3749_v13 = vcombine.high %v90_v6, %v94_v7  ;;  %v97_v14 = vld [vmem:[%s6468_s1 + $0x280] sm:$0xff] }
  0x64   :  { %1828 = vmatprep.mubr.bf16.mxu1 %v3717_v15  ;;  %1956 = vmatpush2.bf16.msra.mxu0 %v4077_v16  ;;  %v101_v15 = vld [vmem:[%s6468_s1 + $0x2a0] sm:$0xff]  ;;  %v98_v16 = vld [vmem:[%s6468_s1 + $0x288] sm:$0xff] }
  0x65   :  { %2149 = vmatpush2.bf16.msra.mxu1 %v4080_v17  ;;  %1957 = vmatprep.subr.bf16.mxu0 %v4085_v18  ;;  %v102_v17 = vld [vmem:[%s6468_s1 + $0x2a8] sm:$0xff]  ;;  %v3746_v18 = vcombine.low %v89_v4, %v93_v5  ;;  %v3755_v20 = vcombine.high %v97_v14, %v101_v15  ;;  %v141_v55 = vld [vmem:[%s6468_s1 + $0x3e0] sm:$0xff] }
  0x66   :  { %2150 = vmatprep.subr.bf16.mxu1 %v4088_v19  ;;  %v3748_v19 = vcombine.low %v90_v6, %v94_v7  ;;  %v3757_v21 = vcombine.high %v98_v16, %v102_v17  ;;  %v27_v6 = vld [vmem:[%s6468_s1 + $0x50] sm:$0xff] }
  0x67   :  { %v31_v7 = vld [vmem:[%s6468_s1 + $0x70] sm:$0xff] }
  0x68   :  { %1958 = vmatpush2.bf16.msra.mxu0 %v4083_v24  ;;  %v106_v24 = vld [vmem:[%s6468_s1 + $0x2c8] sm:$0xff] }
  0x69   :  { %2151 = vmatpush2.bf16.msra.mxu1 %v4086_v25  ;;  %1959 = vmatprep.subr.bf16.mxu0 %v4091_v26  ;;  %v110_v25 = vld [vmem:[%s6468_s1 + $0x2e8] sm:$0xff]  ;;  %v3754_v26 = vcombine.low %v97_v14, %v101_v15  ;;  %v35_v14 = vld [vmem:[%s6468_s1 + $0x90] sm:$0xff] }
  0x6a   :  { %2152 = vmatprep.subr.bf16.mxu1 %v4094_v27  ;;  %1636 = vmatmul.mubr.bf16.gmra.mxu0 %v3714_v28  ;;  %v3756_v27 = vcombine.low %v98_v16, %v102_v17  ;;  %v3763_v28 = vcombine.high %v105_v22, %v109_v23  ;;  %v39_v15 = vld [vmem:[%s6468_s1 + $0xb0] sm:$0xff]  ;;  %v36_v16 = vld [vmem:[%s6468_s1 + $0x98] sm:$0xff] }
  0x6b   :  { %1829 = vmatmul.mubr.bf16.gmra.mxu1 %v3716_v29  ;;  %1645 = vmatprep.mubr.bf16.mxu0 %v3723_v30  ;;  %v3765_v29 = vcombine.high %v106_v24, %v110_v25  ;;  %v113_v30 = vld [vmem:[%s6468_s1 + $0x300] sm:$0xff]  ;;  %v40_v17 = vld [vmem:[%s6468_s1 + $0xb8] sm:$0xff] }
  0x6c   :  { %1838 = vmatprep.mubr.bf16.mxu1 %v3725_v31  ;;  %1960 = vmatpush2.bf16.msra.mxu0 %v4089_v32  ;;  %v117_v31 = vld [vmem:[%s6468_s1 + $0x320] sm:$0xff]  ;;  %v114_v32 = vld [vmem:[%s6468_s1 + $0x308] sm:$0xff] }
  0x6d   :  { %2153 = vmatpush2.bf16.msra.mxu1 %v4092_v33  ;;  %1961 = vmatprep.subr.bf16.mxu0 %v4097_v34  ;;  %v118_v33 = vld [vmem:[%s6468_s1 + $0x328] sm:$0xff]  ;;  %v3762_v34 = vcombine.low %v105_v22, %v109_v23  ;;  %v3771_v36 = vcombine.high %v113_v30, %v117_v31  ;;  %v43_v22 = vld [vmem:[%s6468_s1 + $0xd0] sm:$0xff] }
  0x6e   :  { %2154 = vmatprep.subr.bf16.mxu1 %v4100_v35  ;;  %v3764_v35 = vcombine.low %v106_v24, %v110_v25  ;;  %v3773_v37 = vcombine.high %v114_v32, %v118_v33  ;;  %v47_v23 = vld [vmem:[%s6468_s1 + $0xf0] sm:$0xff]  ;;  %v44_v24 = vld [vmem:[%s6468_s1 + $0xd8] sm:$0xff] }
  0x6f   :  { %v48_v25 = vld [vmem:[%s6468_s1 + $0xf8] sm:$0xff] }
  0x70   :  { %1962 = vmatpush2.bf16.msra.mxu0 %v4095_v40  ;;  %v122_v40 = vld [vmem:[%s6468_s1 + $0x348] sm:$0xff] }
  0x71   :  { %2155 = vmatpush2.bf16.msra.mxu1 %v4098_v41  ;;  %1963 = vmatprep.subr.bf16.mxu0 %v4103_v42  ;;  %v126_v41 = vld [vmem:[%s6468_s1 + $0x368] sm:$0xff]  ;;  %v3770_v42 = vcombine.low %v113_v30, %v117_v31  ;;  %v51_v30 = vld [vmem:[%s6468_s1 + $0x110] sm:$0xff] }
  0x72   :  { %2156 = vmatprep.subr.bf16.mxu1 %v4106_v43  ;;  %1646 = vmatmul.mubr.bf16.gmra.mxu0 %v3722_v44  ;;  %v3772_v43 = vcombine.low %v114_v32, %v118_v33  ;;  %v3779_v44 = vcombine.high %v121_v38, %v125_v39  ;;  %v55_v31 = vld [vmem:[%s6468_s1 + $0x130] sm:$0xff]  ;;  %v52_v32 = vld [vmem:[%s6468_s1 + $0x118] sm:$0xff] }
  0x73   :  { %1839 = vmatmul.mubr.bf16.gmra.mxu1 %v3724_v45  ;;  %1655 = vmatprep.mubr.bf16.mxu0 %v3731_v46  ;;  %v3781_v45 = vcombine.high %v122_v40, %v126_v41  ;;  %v129_v46 = vld [vmem:[%s6468_s1 + $0x380] sm:$0xff]  ;;  %v56_v33 = vld [vmem:[%s6468_s1 + $0x138] sm:$0xff] }
  0x74   :  { %1848 = vmatprep.mubr.bf16.mxu1 %v3733_v47  ;;  %1964 = vmatpush2.bf16.msra.mxu0 %v4101_v48  ;;  %v133_v47 = vld [vmem:[%s6468_s1 + $0x3a0] sm:$0xff]  ;;  %v130_v48 = vld [vmem:[%s6468_s1 + $0x388] sm:$0xff] }
  0x75   :  { %2157 = vmatpush2.bf16.msra.mxu1 %v4104_v49  ;;  %1965 = vmatprep.subr.bf16.mxu0 %v4109_v50  ;;  %v134_v49 = vld [vmem:[%s6468_s1 + $0x3a8] sm:$0xff]  ;;  %v3778_v50 = vcombine.low %v121_v38, %v125_v39  ;;  %v3787_v52 = vcombine.high %v129_v46, %v133_v47  ;;  %v59_v38 = vld [vmem:[%s6468_s1 + $0x150] sm:$0xff] }
  0x76   :  { %2158 = vmatprep.subr.bf16.mxu1 %v4112_v51  ;;  %v3780_v51 = vcombine.low %v122_v40, %v126_v41  ;;  %v3789_v53 = vcombine.high %v130_v48, %v134_v49  ;;  %v63_v39 = vld [vmem:[%s6468_s1 + $0x170] sm:$0xff]  ;;  %v60_v40 = vld [vmem:[%s6468_s1 + $0x158] sm:$0xff] }
  0x77   :  { %v64_v41 = vld [vmem:[%s6468_s1 + $0x178] sm:$0xff] }
  0x78   :  { %1966 = vmatpush2.bf16.msra.mxu0 %v4107_v56  ;;  %v138_v56 = vld [vmem:[%s6468_s1 + $0x3c8] sm:$0xff] }
  0x79   :  { %2159 = vmatpush2.bf16.msra.mxu1 %v4110_v57  ;;  %1967 = vmatprep.subr.bf16.mxu0 %v4115_v58  ;;  %v142_v57 = vld [vmem:[%s6468_s1 + $0x3e8] sm:$0xff]  ;;  %v3786_v58 = vcombine.low %v129_v46, %v133_v47  ;;  %v67_v46 = vld [vmem:[%s6468_s1 + $0x190] sm:$0xff] }
  0x7a   :  { %2160 = vmatprep.subr.bf16.mxu1 %v4118_v59  ;;  %1656 = vmatmul.mubr.bf16.gmra.mxu0 %v3730_v60  ;;  %v3788_v59 = vcombine.low %v130_v48, %v134_v49  ;;  %v3795_v60 = vcombine.high %v137_v54, %v141_v55  ;;  %v71_v47 = vld [vmem:[%s6468_s1 + $0x1b0] sm:$0xff]  ;;  %v68_v48 = vld [vmem:[%s6468_s1 + $0x198] sm:$0xff] }
  0x7b   :  { %1849 = vmatmul.mubr.bf16.gmra.mxu1 %v3732_v61  ;;  %1665 = vmatprep.mubr.bf16.mxu0 %v3739_v62  ;;  %v3797_v61 = vcombine.high %v138_v56, %v142_v57  ;;  %v19_v62 = vld [vmem:[%s6468_s1 + $0x10] sm:$0xff]  ;;  %v72_v49 = vld [vmem:[%s6468_s1 + $0x1b8] sm:$0xff] }
  0x7c   :  { %1858 = vmatprep.mubr.bf16.mxu1 %v3741_v63  ;;  %1968 = vmatpush2.bf16.msra.mxu0 %v4113_v0  ;;  %v23_v63 = vld [vmem:[%s6468_s1 + $0x30] sm:$0xff]  ;;  %v20_v0 = vld [vmem:[%s6468_s1 + $0x18] sm:$0xff] }
  0x7d   :  { %2161 = vmatpush2.bf16.msra.mxu1 %v4116_v1  ;;  %1969 = vmatprep.subr.bf16.mxu0 %v4121_v2  ;;  %v24_v1 = vld [vmem:[%s6468_s1 + $0x38] sm:$0xff]  ;;  %v3794_v2 = vcombine.low %v137_v54, %v141_v55  ;;  %v3679_v4 = vcombine.high %v19_v62, %v23_v63  ;;  %v75_v54 = vld [vmem:[%s6468_s1 + $0x1d0] sm:$0xff] }
  0x7e   :  { %2162 = vmatprep.subr.bf16.mxu1 %v4124_v3  ;;  %v3796_v3 = vcombine.low %v138_v56, %v142_v57  ;;  %v3681_v5 = vcombine.high %v20_v0, %v24_v1  ;;  %v79_v55 = vld [vmem:[%s6468_s1 + $0x1f0] sm:$0xff]  ;;  %v76_v56 = vld [vmem:[%s6468_s1 + $0x1d8] sm:$0xff] }
  0x7f   :  { %v80_v57 = vld [vmem:[%s6468_s1 + $0x1f8] sm:$0xff] }
  0x80   :  { %1970 = vmatpush2.bf16.msra.mxu0 %v4119_v8  ;;  %v28_v8 = vld [vmem:[%s6468_s1 + $0x58] sm:$0xff] }
  0x81   :  { %2163 = vmatpush2.bf16.msra.mxu1 %v4122_v9  ;;  %v32_v9 = vld [vmem:[%s6468_s1 + $0x78] sm:$0xff] }
  0x82   :  { %1666 = vmatmul.mubr.bf16.gmra.mxu0 %v3738_v10  ;;  %v3678_v10 = vcombine.low %v19_v62, %v23_v63  ;;  %v83_v62 = vld [vmem:[%s6468_s1 + $0x210] sm:$0xff] }
  0x83   :  { %1859 = vmatmul.mubr.bf16.gmra.mxu1 %v3740_v11  ;;  %1675 = vmatprep.mubr.bf16.mxu0 %v3747_v12  ;;  %v3680_v11 = vcombine.low %v20_v0, %v24_v1  ;;  %v3687_v12 = vcombine.high %v27_v6, %v31_v7  ;;  %v87_v63 = vld [vmem:[%s6468_s1 + $0x230] sm:$0xff]  ;;  %v84_v0 = vld [vmem:[%s6468_s1 + $0x218] sm:$0xff] }
  0x84   :  { %1868 = vmatprep.mubr.bf16.mxu1 %v3749_v13  ;;  %v3689_v13 = vcombine.high %v28_v8, %v32_v9  ;;  %v88_v1 = vld [vmem:[%s6468_s1 + $0x238] sm:$0xff] }
  0x8a   :  { %1676 = vmatmul.mubr.bf16.gmra.mxu0 %v3746_v18  ;;  %v3686_v18 = vcombine.low %v27_v6, %v31_v7  ;;  %v91_v6 = vld [vmem:[%s6468_s1 + $0x250] sm:$0xff] }
  0x8b   :  { %1869 = vmatmul.mubr.bf16.gmra.mxu1 %v3748_v19  ;;  %1685 = vmatprep.mubr.bf16.mxu0 %v3755_v20  ;;  %v3688_v19 = vcombine.low %v28_v8, %v32_v9  ;;  %v3695_v20 = vcombine.high %v35_v14, %v39_v15  ;;  %v95_v7 = vld [vmem:[%s6468_s1 + $0x270] sm:$0xff]  ;;  %v92_v8 = vld [vmem:[%s6468_s1 + $0x258] sm:$0xff] }
  0x8c   :  { %1878 = vmatprep.mubr.bf16.mxu1 %v3757_v21  ;;  %v3697_v21 = vcombine.high %v36_v16, %v40_v17  ;;  %v96_v9 = vld [vmem:[%s6468_s1 + $0x278] sm:$0xff] }
  0x92   :  { %1686 = vmatmul.mubr.bf16.gmra.mxu0 %v3754_v26  ;;  %v3694_v26 = vcombine.low %v35_v14, %v39_v15 }
  0x93   :  { %1879 = vmatmul.mubr.bf16.gmra.mxu1 %v3756_v27  ;;  %1695 = vmatprep.mubr.bf16.mxu0 %v3763_v28  ;;  %v3696_v27 = vcombine.low %v36_v16, %v40_v17  ;;  %v3703_v28 = vcombine.high %v43_v22, %v47_v23  ;;  %v99_v17 = vld [vmem:[%s6468_s1 + $0x290] sm:$0xff] }
  0x94   :  { %1888 = vmatprep.mubr.bf16.mxu1 %v3765_v29  ;;  %v3705_v29 = vcombine.high %v44_v24, %v48_v25 }
  0x9a   :  { %1696 = vmatmul.mubr.bf16.gmra.mxu0 %v3762_v34  ;;  %v3702_v34 = vcombine.low %v43_v22, %v47_v23  ;;  %v104_v22 = vld [vmem:[%s6468_s1 + $0x2b8] sm:$0xff] }
  0x9b   :  { %1889 = vmatmul.mubr.bf16.gmra.mxu1 %v3764_v35  ;;  %1705 = vmatprep.mubr.bf16.mxu0 %v3771_v36  ;;  %v3704_v35 = vcombine.low %v44_v24, %v48_v25  ;;  %v3711_v36 = vcombine.high %v51_v30, %v55_v31 }
  0x9c   :  { %1898 = vmatprep.mubr.bf16.mxu1 %v3773_v37  ;;  %v3713_v37 = vcombine.high %v52_v32, %v56_v33 }
  0xa2   :  { %1706 = vmatmul.mubr.bf16.gmra.mxu0 %v3770_v42  ;;  %v3710_v42 = vcombine.low %v51_v30, %v55_v31 }
  0xa3   :  { %1899 = vmatmul.mubr.bf16.gmra.mxu1 %v3772_v43  ;;  %1715 = vmatprep.mubr.bf16.mxu0 %v3779_v44  ;;  %v3712_v43 = vcombine.low %v52_v32, %v56_v33  ;;  %v3719_v44 = vcombine.high %v59_v38, %v63_v39 }
  0xa4   :  { %1908 = vmatprep.mubr.bf16.mxu1 %v3781_v45  ;;  %v3721_v45 = vcombine.high %v60_v40, %v64_v41 }
  0xaa   :  { %1716 = vmatmul.mubr.bf16.gmra.mxu0 %v3778_v50  ;;  %v3718_v50 = vcombine.low %v59_v38, %v63_v39 }
  0xab   :  { %1909 = vmatmul.mubr.bf16.gmra.mxu1 %v3780_v51  ;;  %1725 = vmatprep.mubr.bf16.mxu0 %v3787_v52  ;;  %v3720_v51 = vcombine.low %v60_v40, %v64_v41  ;;  %v3727_v52 = vcombine.high %v67_v46, %v71_v47  ;;  %v111_v40 = vld [vmem:[%s6468_s1 + $0x2f0] sm:$0xff]  ;;  %v108_v41 = vld [vmem:[%s6468_s1 + $0x2d8] sm:$0xff] }
  0xac   :  { %1918 = vmatprep.mubr.bf16.mxu1 %v3789_v53  ;;  %v3729_v53 = vcombine.high %v68_v48, %v72_v49 }
  0xb2   :  { %1726 = vmatmul.mubr.bf16.gmra.mxu0 %v3786_v58  ;;  %v3726_v58 = vcombine.low %v67_v46, %v71_v47 }
  0xb3   :  { %1919 = vmatmul.mubr.bf16.gmra.mxu1 %v3788_v59  ;;  %1735 = vmatprep.mubr.bf16.mxu0 %v3795_v60  ;;  %v3728_v59 = vcombine.low %v68_v48, %v72_v49  ;;  %v3735_v60 = vcombine.high %v75_v54, %v79_v55 }
  0xb4   :  { %1928 = vmatprep.mubr.bf16.mxu1 %v3797_v61  ;;  %v3737_v61 = vcombine.high %v76_v56, %v80_v57 }
  0xba   :  { %1736 = vmatmul.mubr.bf16.gmra.mxu0 %v3794_v2  ;;  %v3734_v2 = vcombine.low %v75_v54, %v79_v55 }
  0xbb   :  { %1929 = vmatmul.mubr.bf16.gmra.mxu1 %v3796_v3  ;;  %1971 = vmatprep.mubr.bf16.mxu0 %v3679_v4  ;;  %v3736_v3 = vcombine.low %v76_v56, %v80_v57  ;;  %v3743_v4 = vcombine.high %v83_v62, %v87_v63  ;;  %v115_v57 = vld [vmem:[%s6468_s1 + $0x310] sm:$0xff] }
  0xbc   :  { %2164 = vmatprep.mubr.bf16.mxu1 %v3681_v5  ;;  %v3745_v5 = vcombine.high %v84_v0, %v88_v1 }
  0xc2   :  { %1972 = vmatmul.mubr.bf16.vlgmr.msra.gmra.mxu0 %v3678_v10  ;;  %v3742_v10 = vcombine.low %v83_v62, %v87_v63  ;;  %v120_v62 = vld [vmem:[%s6468_s1 + $0x338] sm:$0xff] }
  0xc3   :  { %2165 = vmatmul.mubr.bf16.vlgmr.msra.gmra.mxu1 %v3680_v11  ;;  %1981 = vmatprep.mubr.bf16.mxu0 %v3687_v12  ;;  %v3744_v11 = vcombine.low %v84_v0, %v88_v1  ;;  %v3751_v12 = vcombine.high %v91_v6, %v95_v7 }
  0xc4   :  { %2174 = vmatprep.mubr.bf16.mxu1 %v3689_v13  ;;  %v3753_v13 = vcombine.high %v92_v8, %v96_v9 }
  0xca   :  { %1982 = vmatmul.mubr.bf16.gmra.mxu0 %v3686_v18 }
  0xcb   :  { %2175 = vmatmul.mubr.bf16.gmra.mxu1 %v3688_v19  ;;  %1991 = vmatprep.mubr.bf16.mxu0 %v3695_v20  ;;  %v103_v20 = vld [vmem:[%s6468_s1 + $0x2b0] sm:$0xff] }
  0xcc   :  { %2184 = vmatprep.mubr.bf16.mxu1 %v3697_v21  ;;  %v100_v21 = vld [vmem:[%s6468_s1 + $0x298] sm:$0xff]  ;;  %v3758_v46 = vcombine.low %v99_v17, %v103_v20 }
  0xcd   :  { %v3761_v30 = vcombine.high %v100_v21, %v104_v22  ;;  %v3760_v47 = vcombine.low %v100_v21, %v104_v22 }
  0xd2   :  { %1992 = vmatmul.mubr.bf16.gmra.mxu0 %v3694_v26  ;;  %v3750_v26 = vcombine.low %v91_v6, %v95_v7 }
  0xd3   :  { %2185 = vmatmul.mubr.bf16.gmra.mxu1 %v3696_v27  ;;  %2001 = vmatprep.mubr.bf16.mxu0 %v3703_v28  ;;  %v3752_v27 = vcombine.low %v92_v8, %v96_v9 }
  0xd4   :  { %2194 = vmatprep.mubr.bf16.mxu1 %v3705_v29  ;;  %v3759_v29 = vcombine.high %v99_v17, %v103_v20  ;;  %v127_v17 = vld [vmem:[%s6468_s1 + $0x370] sm:$0xff] }
  0xda   :  { %2002 = vmatmul.mubr.bf16.gmra.mxu0 %v3702_v34 }
  0xdb   :  { %2195 = vmatmul.mubr.bf16.gmra.mxu1 %v3704_v35  ;;  %2011 = vmatprep.mubr.bf16.mxu0 %v3711_v36 }
  0xdc   :  { %2204 = vmatprep.mubr.bf16.mxu1 %v3713_v37  ;;  %v107_v37 = vld [vmem:[%s6468_s1 + $0x2d0] sm:$0xff] }
  0xdd   :  { %v3767_v49 = vcombine.high %v107_v37, %v111_v40 }
  0xe2   :  { %2012 = vmatmul.mubr.bf16.gmra.mxu0 %v3710_v42  ;;  %v112_v42 = vld [vmem:[%s6468_s1 + $0x2f8] sm:$0xff] }
  0xe3   :  { %2205 = vmatmul.mubr.bf16.gmra.mxu1 %v3712_v43  ;;  %2021 = vmatprep.mubr.bf16.mxu0 %v3719_v44 }
  0xe4   :  { %2214 = vmatprep.mubr.bf16.mxu1 %v3721_v45 }
  0xea   :  { %2022 = vmatmul.mubr.bf16.gmra.mxu0 %v3718_v50  ;;  %v3769_v50 = vcombine.high %v108_v41, %v112_v42 }
  0xeb   :  { %2215 = vmatmul.mubr.bf16.gmra.mxu1 %v3720_v51  ;;  %2031 = vmatprep.mubr.bf16.mxu0 %v3727_v52 }
  0xec   :  { %2224 = vmatprep.mubr.bf16.mxu1 %v3729_v53 }
  0xf2   :  { %2032 = vmatmul.mubr.bf16.gmra.mxu0 %v3726_v58 }
  0xf3   :  { %2225 = vmatmul.mubr.bf16.gmra.mxu1 %v3728_v59  ;;  %2041 = vmatprep.mubr.bf16.mxu0 %v3735_v60  ;;  %v119_v60 = vld [vmem:[%s6468_s1 + $0x330] sm:$0xff] }
  0xf4   :  { %2234 = vmatprep.mubr.bf16.mxu1 %v3737_v61  ;;  %v116_v61 = vld [vmem:[%s6468_s1 + $0x318] sm:$0xff] }
  0xf5   :  { %v3777_v6 = vcombine.high %v116_v61, %v120_v62 }
  0xfa   :  { %2042 = vmatmul.mubr.bf16.gmra.mxu0 %v3734_v2  ;;  %v3766_v2 = vcombine.low %v107_v37, %v111_v40 }
  0xfb   :  { %2235 = vmatmul.mubr.bf16.gmra.mxu1 %v3736_v3  ;;  %2051 = vmatprep.mubr.bf16.mxu0 %v3743_v4  ;;  %v3768_v3 = vcombine.low %v108_v41, %v112_v42  ;;  %v135_v41 = vld [vmem:[%s6468_s1 + $0x3b0] sm:$0xff]  ;;  %v132_v42 = vld [vmem:[%s6468_s1 + $0x398] sm:$0xff] }
  0xfc   :  { %2244 = vmatprep.mubr.bf16.mxu1 %v3745_v5  ;;  %v3775_v5 = vcombine.high %v115_v57, %v119_v60 }
 0x102   :  { %v1587_v14 = vpop.f32.mrf.mxu0  ;;  %2052 = vmatmul.mubr.bf16.gmra.mxu0 %v3742_v10 }
 0x103   :  { %v1780_v15 = vpop.f32.mrf.mxu1  ;;  %2245 = vmatmul.mubr.bf16.gmra.mxu1 %v3744_v11  ;;  %2061 = vmatprep.mubr.bf16.mxu0 %v3751_v12 }
 0x104   :  { %v4955_v16 = vadd.f32 %v1780_v15, %v1587_v14  ;;  %2254 = vmatprep.mubr.bf16.mxu1 %v3753_v13  ;;  %v1589_v18 = vpop.f32.mrf.mxu0  ;;  %v123_v13 = vld [vmem:[%s6468_s1 + $0x350] sm:$0xff] }
 0x105   :  { %v1782_v19 = vpop.f32.mrf.mxu1 }
 0x106   :  { %v4969_v23 = vadd.f32 %v1782_v19, %v1589_v18  ;;  %v1591_v24 = vpop.f32.mrf.mxu0  ;;  %v124_v18 = vld [vmem:[%s6468_s1 + $0x358] sm:$0xff] }
 0x107   :  { %v1784_v25 = vpop.f32.mrf.mxu1  ;;  %v128_v19 = vld [vmem:[%s6468_s1 + $0x378] sm:$0xff] }
 0x108   :  { %v4971_v28 = vadd.f32 %v1784_v25, %v1591_v24  ;;  %v1593_v31 = vpop.f32.mrf.mxu0  ;;  %v3774_v24 = vcombine.low %v115_v57, %v119_v60  ;;  %v3776_v25 = vcombine.low %v116_v61, %v120_v62  ;;  %v139_v62 = vld [vmem:[%s6468_s1 + $0x3d0] sm:$0xff] }
 0x109   :  { %v1786_v32 = vpop.f32.mrf.mxu1 }
 0x10a   :  { %v4973_v33 = vadd.f32 %v1786_v32, %v1593_v31  ;;  %v1597_v34 = vpop.f32.mrf.mxu0  ;;  %2062 = vmatmul.mubr.bf16.gmra.mxu0 %v3750_v26 }
 0x10b   :  { %v1790_v35 = vpop.f32.mrf.mxu1  ;;  %2255 = vmatmul.mubr.bf16.gmra.mxu1 %v3752_v27  ;;  %2071 = vmatprep.mubr.bf16.mxu0 %v3759_v29  ;;  %v3783_v27 = vcombine.high %v123_v13, %v127_v17  ;;  %v3785_v29 = vcombine.high %v124_v18, %v128_v19 }
 0x10c   :  { %v4975_v36 = vadd.f32 %v1790_v35, %v1597_v34  ;;  %2264 = vmatprep.mubr.bf16.mxu1 %v3761_v30  ;;  %v1599_v38 = vpop.f32.mrf.mxu0 }
 0x10d   :  { %v1792_v39 = vpop.f32.mrf.mxu1 }
 0x10e   :  { %v4989_v43 = vadd.f32 %v1792_v39, %v1599_v38  ;;  %v1601_v44 = vpop.f32.mrf.mxu0  ;;  %v131_v38 = vld [vmem:[%s6468_s1 + $0x390] sm:$0xff] }
 0x10f   :  { %v1794_v45 = vpop.f32.mrf.mxu1 }
 0x110   :  { %v4991_v48 = vadd.f32 %v1794_v45, %v1601_v44  ;;  %v1603_v51 = vpop.f32.mrf.mxu0  ;;  %v136_v44 = vld [vmem:[%s6468_s1 + $0x3b8] sm:$0xff] }
 0x111   :  { %v1796_v52 = vpop.f32.mrf.mxu1 }
 0x112   :  { %v4993_v53 = vadd.f32 %v1796_v52, %v1603_v51  ;;  %v1607_v54 = vpop.f32.mrf.mxu0  ;;  %2072 = vmatmul.mubr.bf16.gmra.mxu0 %v3758_v46  ;;  %v3791_v52 = vcombine.high %v131_v38, %v135_v41 }
 0x113   :  { %v1800_v55 = vpop.f32.mrf.mxu1  ;;  %2265 = vmatmul.mubr.bf16.gmra.mxu1 %v3760_v47  ;;  %2081 = vmatprep.mubr.bf16.mxu0 %v3767_v49  ;;  %v3782_v49 = vcombine.low %v123_v13, %v127_v17 }
 0x114   :  { %v4995_v56 = vadd.f32 %v1800_v55, %v1607_v54  ;;  %2274 = vmatprep.mubr.bf16.mxu1 %v3769_v50  ;;  %v1609_v58 = vpop.f32.mrf.mxu0  ;;  %v3784_v50 = vcombine.low %v124_v18, %v128_v19  ;;  %v3793_v54 = vcombine.high %v132_v42, %v136_v44 }
 0x115   :  { %v1802_v59 = vpop.f32.mrf.mxu1 }
 0x116   :  { %v5009_v63 = vadd.f32 %v1802_v59, %v1609_v58  ;;  %v1611_v0 = vpop.f32.mrf.mxu0 }
 0x117   :  { %v1804_v1 = vpop.f32.mrf.mxu1 }
 0x118   :  { %v5011_v4 = vadd.f32 %v1804_v1, %v1611_v0  ;;  %v1613_v7 = vpop.f32.mrf.mxu0 }
 0x119   :  { %v1806_v8 = vpop.f32.mrf.mxu1 }
 0x11a   :  { %v5013_v9 = vadd.f32 %v1806_v8, %v1613_v7  ;;  %v1617_v10 = vpop.f32.mrf.mxu0  ;;  %2082 = vmatmul.mubr.bf16.gmra.mxu0 %v3766_v2  ;;  %v143_v2 = vld [vmem:[%s6468_s1 + $0x3f0] sm:$0xff] }
 0x11b   :  { %v1810_v11 = vpop.f32.mrf.mxu1  ;;  %2275 = vmatmul.mubr.bf16.gmra.mxu1 %v3768_v3  ;;  %2091 = vmatprep.mubr.bf16.mxu0 %v3775_v5  ;;  %v140_v3 = vld [vmem:[%s6468_s1 + $0x3d8] sm:$0xff] }
 0x11c   :  { %v5015_v12 = vadd.f32 %v1810_v11, %v1617_v10  ;;  %2284 = vmatprep.mubr.bf16.mxu1 %v3777_v6  ;;  %v1619_v14 = vpop.f32.mrf.mxu0  ;;  %v144_v5 = vld [vmem:[%s6468_s1 + $0x3f8] sm:$0xff]  ;;  %v3790_v10 = vcombine.low %v131_v38, %v135_v41  ;;  %v3792_v11 = vcombine.low %v132_v42, %v136_v44 }
 0x11d   :  { %v1812_v15 = vpop.f32.mrf.mxu1 }
 0x11e   :  { %v5029_v20 = vadd.f32 %v1812_v15, %v1619_v14  ;;  %v1621_v21 = vpop.f32.mrf.mxu0  ;;  %v3799_v14 = vcombine.high %v139_v62, %v143_v2  ;;  %v3801_v15 = vcombine.high %v140_v3, %v144_v5 }
 0x11f   :  { %v1814_v22 = vpop.f32.mrf.mxu1 }
 0x120   :  { %v5031_v26 = vadd.f32 %v1814_v22, %v1621_v21  ;;  %v1623_v30 = vpop.f32.mrf.mxu0 }
 0x121   :  { %v1816_v31 = vpop.f32.mrf.mxu1 }
 0x122   :  { %v5033_v32 = vadd.f32 %v1816_v31, %v1623_v30  ;;  %v1627_v34 = vpop.f32.mrf.mxu0  ;;  %2092 = vmatmul.mubr.bf16.gmra.mxu0 %v3774_v24 }
 0x123   :  { %v1820_v35 = vpop.f32.mrf.mxu1  ;;  %2285 = vmatmul.mubr.bf16.gmra.mxu1 %v3776_v25  ;;  %2101 = vmatprep.mubr.bf16.mxu0 %v3783_v27 }
 0x124   :  { %v5035_v37 = vadd.f32 %v1820_v35, %v1627_v34  ;;  %2294 = vmatprep.mubr.bf16.mxu1 %v3785_v29  ;;  %v1629_v39 = vpop.f32.mrf.mxu0  ;;  %v3798_v34 = vcombine.low %v139_v62, %v143_v2  ;;  %v3800_v35 = vcombine.low %v140_v3, %v144_v5 }
 0x125   :  { %v1822_v40 = vpop.f32.mrf.mxu1 }
 0x126   :  { %v5049_v45 = vadd.f32 %v1822_v40, %v1629_v39  ;;  %v1631_v46 = vpop.f32.mrf.mxu0 }
 0x127   :  { %v1824_v47 = vpop.f32.mrf.mxu1 }
 0x128   :  { %v5051_v51 = vadd.f32 %v1824_v47, %v1631_v46  ;;  %v1633_v55 = vpop.f32.mrf.mxu0 }
 0x129   :  { %v1826_v57 = vpop.f32.mrf.mxu1 }
 0x12a   :  { %v5053_v58 = vadd.f32 %v1826_v57, %v1633_v55  ;;  %v1637_v59 = vpop.f32.mrf.mxu0  ;;  %2102 = vmatmul.mubr.bf16.gmra.mxu0 %v3782_v49 }
 0x12b   :  { %v1830_v60 = vpop.f32.mrf.mxu1  ;;  %2295 = vmatmul.mubr.bf16.gmra.mxu1 %v3784_v50  ;;  %2111 = vmatprep.mubr.bf16.mxu0 %v3791_v52 }
 0x12c   :  { %v5055_v61 = vadd.f32 %v1830_v60, %v1637_v59  ;;  %2304 = vmatprep.mubr.bf16.mxu1 %v3793_v54  ;;  %v1639_v0 = vpop.f32.mrf.mxu0 }
 0x12d   :  { %v1832_v1 = vpop.f32.mrf.mxu1 }
 0x12e   :  { %v5069_v6 = vadd.f32 %v1832_v1, %v1639_v0  ;;  %v1641_v7 = vpop.f32.mrf.mxu0 }
 0x12f   :  { %v1834_v8 = vpop.f32.mrf.mxu1 }
 0x130   :  { %v5071_v13 = vadd.f32 %v1834_v8, %v1641_v7  ;;  %v1643_v17 = vpop.f32.mrf.mxu0 }
 0x131   :  { %v1836_v18 = vpop.f32.mrf.mxu1 }
 0x132   :  { %v5073_v19 = vadd.f32 %v1836_v18, %v1643_v17  ;;  %v1647_v21 = vpop.f32.mrf.mxu0  ;;  %2112 = vmatmul.mubr.bf16.gmra.mxu0 %v3790_v10 }
 0x133   :  { %v1840_v22 = vpop.f32.mrf.mxu1  ;;  %2305 = vmatmul.mubr.bf16.gmra.mxu1 %v3792_v11  ;;  %2121 = vmatprep.mubr.bf16.mxu0 %v3799_v14 }
 0x134   :  { %v5075_v24 = vadd.f32 %v1840_v22, %v1647_v21  ;;  %2314 = vmatprep.mubr.bf16.mxu1 %v3801_v15  ;;  %v1649_v25 = vpop.f32.mrf.mxu0 }
 0x135   :  { %v1842_v27 = vpop.f32.mrf.mxu1 }
 0x136   :  { %v5077_v29 = vadd.f32 %v1842_v27, %v1649_v25  ;;  %v1651_v30 = vpop.f32.mrf.mxu0 }
 0x137   :  { %v1844_v31 = vpop.f32.mrf.mxu1 }
 0x138   :  { %v5079_v38 = vadd.f32 %v1844_v31, %v1651_v30  ;;  %v1653_v39 = vpop.f32.mrf.mxu0 }
 0x139   :  { %v1846_v40 = vpop.f32.mrf.mxu1 }
 0x13a   :  { %v5081_v41 = vadd.f32 %v1846_v40, %v1653_v39  ;;  %v1657_v42 = vpop.f32.mrf.mxu0  ;;  %2122 = vmatmul.mubr.bf16.gmra.mxu0 %v3798_v34 }
 0x13b   :  { %v1850_v44 = vpop.f32.mrf.mxu1  ;;  %2315 = vmatmul.mubr.bf16.gmra.mxu1 %v3800_v35 }
 0x13c   :  { %v5083_v46 = vadd.f32 %v1850_v44, %v1657_v42  ;;  %v1659_v47 = vpop.f32.mrf.mxu0 }
 0x13d   :  { %v1852_v49 = vpop.f32.mrf.mxu1 }
 0x13e   :  { %v5085_v50 = vadd.f32 %v1852_v49, %v1659_v47  ;;  %v1661_v52 = vpop.f32.mrf.mxu0 }
 0x13f   :  { %v1854_v54 = vpop.f32.mrf.mxu1 }
 0x140   :  { %v5087_v55 = vadd.f32 %v1854_v54, %v1661_v52  ;;  %v1663_v57 = vpop.f32.mrf.mxu0 }
 0x141   :  { %v1856_v59 = vpop.f32.mrf.mxu1 }
 0x142   :  { %v5089_v60 = vadd.f32 %v1856_v59, %v1663_v57  ;;  %v1667_v62 = vpop.f32.mrf.mxu0 }
 0x143   :  { %v1860_v0 = vpop.f32.mrf.mxu1 }
 0x144   :  { %v5091_v1 = vadd.f32 %v1860_v0, %v1667_v62  ;;  %v1669_v2 = vpop.f32.mrf.mxu0 }
 0x145   :  { %v1862_v3 = vpop.f32.mrf.mxu1 }
 0x146   :  { %v5093_v5 = vadd.f32 %v1862_v3, %v1669_v2  ;;  %v1671_v7 = vpop.f32.mrf.mxu0 }
 0x147   :  { %v1864_v8 = vpop.f32.mrf.mxu1 }
 0x148   :  { %v5095_v10 = vadd.f32 %v1864_v8, %v1671_v7  ;;  %v1673_v11 = vpop.f32.mrf.mxu0 }
 0x149   :  { %v1866_v14 = vpop.f32.mrf.mxu1 }
 0x14a   :  { %v5097_v15 = vadd.f32 %v1866_v14, %v1673_v11  ;;  %v1677_v17 = vpop.f32.mrf.mxu0 }
 0x14b   :  { %v1870_v18 = vpop.f32.mrf.mxu1 }
 0x14c   :  { %v5099_v21 = vadd.f32 %v1870_v18, %v1677_v17  ;;  %v1679_v22 = vpop.f32.mrf.mxu0 }
 0x14d   :  { %v1872_v25 = vpop.f32.mrf.mxu1 }
 0x14e   :  { %v5101_v27 = vadd.f32 %v1872_v25, %v1679_v22  ;;  %v1681_v30 = vpop.f32.mrf.mxu0 }
 0x14f   :  { %v1874_v31 = vpop.f32.mrf.mxu1 }
 0x150   :  { %v5103_v34 = vadd.f32 %v1874_v31, %v1681_v30  ;;  %v1683_v35 = vpop.f32.mrf.mxu0 }
 0x151   :  { %v1876_v39 = vpop.f32.mrf.mxu1 }
 0x152   :  { %v5105_v40 = vadd.f32 %v1876_v39, %v1683_v35  ;;  %v1687_v42 = vpop.f32.mrf.mxu0 }
 0x153   :  { %v1880_v44 = vpop.f32.mrf.mxu1 }
 0x154   :  { %v5107_v47 = vadd.f32 %v1880_v44, %v1687_v42  ;;  %v1689_v49 = vpop.f32.mrf.mxu0 }
 0x155   :  { %v1882_v52 = vpop.f32.mrf.mxu1 }
 0x156   :  { %v5109_v54 = vadd.f32 %v1882_v52, %v1689_v49  ;;  %v1691_v57 = vpop.f32.mrf.mxu0 }
 0x157   :  { %v1884_v59 = vpop.f32.mrf.mxu1 }
 0x158   :  { %v5111_v62 = vadd.f32 %v1884_v59, %v1691_v57  ;;  %v1693_v0 = vpop.f32.mrf.mxu0 }
 0x159   :  { %v1886_v2 = vpop.f32.mrf.mxu1 }
 0x15a   :  { %v5113_v3 = vadd.f32 %v1886_v2, %v1693_v0  ;;  %v1697_v7 = vpop.f32.mrf.mxu0 }
 0x15b   :  { %v1890_v8 = vpop.f32.mrf.mxu1 }
 0x15c   :  { %v5115_v11 = vadd.f32 %v1890_v8, %v1697_v7  ;;  %v1699_v14 = vpop.f32.mrf.mxu0 }
 0x15d   :  { %v1892_v17 = vpop.f32.mrf.mxu1 }
 0x15e   :  { %v5117_v18 = vadd.f32 %v1892_v17, %v1699_v14  ;;  %v1701_v22 = vpop.f32.mrf.mxu0 }
 0x15f   :  { %v1894_v25 = vpop.f32.mrf.mxu1 }
 0x160   :  { %v5119_v30 = vadd.f32 %v1894_v25, %v1701_v22  ;;  %v1703_v31 = vpop.f32.mrf.mxu0 }
 0x161   :  { %v1896_v35 = vpop.f32.mrf.mxu1 }
 0x162   :  { %6506 = vst [vmem:[#allocation2_spill] sm:$0xff] %v5119_v30  ;;  %v5121_v39 = vadd.f32 %v1896_v35, %v1703_v31  ;;  %v1707_v42 = vpop.f32.mrf.mxu0 }
 0x163   :  { %v1900_v44 = vpop.f32.mrf.mxu1 }
 0x164   :  { %v5123_v49 = vadd.f32 %v1900_v44, %v1707_v42  ;;  %v1709_v52 = vpop.f32.mrf.mxu0 }
 0x165   :  { %v1902_v57 = vpop.f32.mrf.mxu1 }
 0x166   :  { %6507 = vst [vmem:[#allocation3_spill] sm:$0xff] %v5123_v49  ;;  %v5125_v59 = vadd.f32 %v1902_v57, %v1709_v52  ;;  %v1711_v0 = vpop.f32.mrf.mxu0 }
 0x167   :  { %v1904_v2 = vpop.f32.mrf.mxu1 }
 0x168   :  { %6508 = vst [vmem:[#allocation4_spill] sm:$0xff] %v5125_v59  ;;  %v5127_v7 = vadd.f32 %v1904_v2, %v1711_v0  ;;  %v1713_v8 = vpop.f32.mrf.mxu0 }
 0x169   :  { %v1906_v14 = vpop.f32.mrf.mxu1 }
 0x16a   :  { %6509 = vst [vmem:[#allocation5_spill] sm:$0xff] %v5127_v7  ;;  %v5129_v17 = vadd.f32 %v1906_v14, %v1713_v8  ;;  %v1717_v22 = vpop.f32.mrf.mxu0 }
 0x16b   :  { %v1910_v25 = vpop.f32.mrf.mxu1 }
 0x16c   :  { %6510 = vst [vmem:[#allocation6_spill] sm:$0xff] %v5129_v17  ;;  %v5131_v31 = vadd.f32 %v1910_v25, %v1717_v22  ;;  %v1719_v35 = vpop.f32.mrf.mxu0 }
 0x16d   :  { %v1912_v30 = vpop.f32.mrf.mxu1 }
 0x16e   :  { %6511 = vst [vmem:[#allocation7_spill] sm:$0xff] %v5131_v31  ;;  %v5133_v42 = vadd.f32 %v1912_v30, %v1719_v35  ;;  %v1721_v44 = vpop.f32.mrf.mxu0 }
 0x16f   :  { %v1914_v49 = vpop.f32.mrf.mxu1 }
 0x170   :  { %6512 = vst [vmem:[#allocation8_spill] sm:$0xff] %v5133_v42  ;;  %v5135_v52 = vadd.f32 %v1914_v49, %v1721_v44  ;;  %v1723_v57 = vpop.f32.mrf.mxu0 }
 0x171   :  { %v1916_v59 = vpop.f32.mrf.mxu1 }
 0x172   :  { %6513 = vst [vmem:[#allocation9_spill] sm:$0xff] %v5135_v52  ;;  %v5137_v0 = vadd.f32 %v1916_v59, %v1723_v57  ;;  %v1727_v2 = vpop.f32.mrf.mxu0 }
 0x173   :  { %v1920_v7 = vpop.f32.mrf.mxu1 }
 0x174   :  { %6514 = vst [vmem:[#allocation10_spill] sm:$0xff] %v5137_v0  ;;  %v5139_v8 = vadd.f32 %v1920_v7, %v1727_v2  ;;  %v1729_v14 = vpop.f32.mrf.mxu0 }
 0x175   :  { %v1922_v17 = vpop.f32.mrf.mxu1 }
 0x176   :  { %6515 = vst [vmem:[#allocation11_spill] sm:$0xff] %v5139_v8  ;;  %v5141_v22 = vadd.f32 %v1922_v17, %v1729_v14  ;;  %v1731_v25 = vpop.f32.mrf.mxu0 }
 0x177   :  { %v1924_v31 = vpop.f32.mrf.mxu1 }
 0x178   :  { %6516 = vst [vmem:[#allocation12_spill] sm:$0xff] %v5141_v22  ;;  %v5143_v30 = vadd.f32 %v1924_v31, %v1731_v25  ;;  %v1733_v35 = vpop.f32.mrf.mxu0 }
 0x179   :  { %v1926_v42 = vpop.f32.mrf.mxu1 }
 0x17a   :  { %6517 = vst [vmem:[#allocation13_spill] sm:$0xff] %v5143_v30  ;;  %v5145_v49 = vadd.f32 %v1926_v42, %v1733_v35  ;;  %v1737_v44 = vpop.f32.mrf.mxu0 }
 0x17b   :  { %v1930_v52 = vpop.f32.mrf.mxu1 }
 0x17c   :  { %6518 = vst [vmem:[#allocation14_spill] sm:$0xff] %v5145_v49  ;;  %v5147_v59 = vadd.f32 %v1930_v52, %v1737_v44  ;;  %v1739_v57 = vpop.f32.mrf.mxu0 }
 0x17d   :  { %v1932_v0 = vpop.f32.mrf.mxu1 }
 0x17e   :  { %6519 = vst [vmem:[#allocation15_spill] sm:$0xff] %v5147_v59  ;;  %v5149_v7 = vadd.f32 %v1932_v0, %v1739_v57  ;;  %v1741_v2 = vpop.f32.mrf.mxu0 }
 0x17f   :  { %v1934_v8 = vpop.f32.mrf.mxu1 }
 0x180   :  { %6520 = vst [vmem:[#allocation16_spill] sm:$0xff] %v5149_v7  ;;  %v5151_v17 = vadd.f32 %v1934_v8, %v1741_v2  ;;  %v1743_v14 = vpop.f32.mrf.mxu0 }
 0x181   :  { %v1936_v22 = vpop.f32.mrf.mxu1 }
 0x182   :  { %6521 = vst [vmem:[#allocation17_spill] sm:$0xff] %v5151_v17  ;;  %v5153_v31 = vadd.f32 %v1936_v22, %v1743_v14  ;;  %v1973_v25 = vpop.f32.mrf.mxu0 }
 0x183   :  { %v2166_v30 = vpop.f32.mrf.mxu1  ;;  %v1974_v17 = vadd.f32 %v1973_v25, %v4955_v16 }
 0x184   :  { %6522 = vst [vmem:[#allocation18_spill] sm:$0xff] %v5153_v31  ;;  %v1975_v42 = vpop.f32.mrf.mxu0 }
 0x185   :  { %v2168_v35 = vpop.f32.mrf.mxu1  ;;  %v1976_v49 = vadd.f32 %v1975_v42, %v4969_v23 }
 0x186   :  { %v1977_v52 = vpop.f32.mrf.mxu0 }
 0x187   :  { %v2170_v44 = vpop.f32.mrf.mxu1  ;;  %v2169_v59 = vadd.f32 %v2168_v35, %v1976_v49 }
 0x188   :  { %v1979_v0 = vpop.f32.mrf.mxu0 }
 0x189   :  { %v2172_v57 = vpop.f32.mrf.mxu1  ;;  %2327 = vst.msk [vmem:[%s6469_s4 + $0x8] sm:$0xff] %vm2326_vm0, %v2169_v59  ;;  %v1980_v8 = vadd.f32 %v1979_v0, %v4973_v33  ;;  %v5167_v59 = vadd.f32 %v2166_v30, %v1974_v17  ;;  %v1978_v33 = vadd.f32 %v1977_v52, %v4971_v28 }
 0x18a   :  { %v1983_v22 = vpop.f32.mrf.mxu0 }
 0x18b   :  { %v2176_v2 = vpop.f32.mrf.mxu1  ;;  %v2173_v14 = vadd.f32 %v2172_v57, %v1980_v8  ;;  %6523 = vst [vmem:[#allocation19_spill] sm:$0xff] %v5167_v59  ;;  %v5183_v52 = vadd.f32 %v2170_v44, %v1978_v33  ;;  %v1984_v8 = vadd.f32 %v1983_v22, %v4975_v36 }
 0x18c   :  { %v1985_v31 = vpop.f32.mrf.mxu0 }
 0x18d   :  { %v2178_v23 = vpop.f32.mrf.mxu1  ;;  %2329 = vst.msk [vmem:[%s6469_s4 + $0x18] sm:$0xff] %vm2326_vm0, %v2173_v14  ;;  %v1986_v49 = vadd.f32 %v1985_v31, %v4989_v43  ;;  %6524 = vst [vmem:[#allocation20_spill] sm:$0xff] %v5183_v52 }
 0x18e   :  { %v1987_v42 = vpop.f32.mrf.mxu0 }
 0x18f   :  { %v2180_v35 = vpop.f32.mrf.mxu1  ;;  %v2179_v7 = vadd.f32 %v2178_v23, %v1986_v49 }
 0x190   :  { %v1989_v0 = vpop.f32.mrf.mxu0  ;;  %v5173_v16 = vld [vmem:[%s6469_s4 + $0x8] sm:$0xff] }
 0x191   :  { %v2182_v57 = vpop.f32.mrf.mxu1  ;;  %2331 = vst.msk [vmem:[%s6469_s4 + $0x28] sm:$0xff] %vm2326_vm0, %v2179_v7  ;;  %v1990_v43 = vadd.f32 %v1989_v0, %v4993_v53  ;;  %v2454_v30 = vsel %vm2326_vm0, %v5173_v16, 0.0  ;;  %v5199_v0 = vadd.f32 %v2176_v2, %v1984_v8 }
 0x192   :  { %v1993_v17 = vpop.f32.mrf.mxu0  ;;  %v2455_v28 = vadd.f32 %v2454_v30, %v5167_v59 }
 0x193   :  { %v2186_v31 = vpop.f32.mrf.mxu1  ;;  %v2183_v25 = vadd.f32 %v2182_v57, %v1990_v43  ;;  %v1988_v57 = vadd.f32 %v1987_v42, %v4991_v48 }
 0x194   :  { %v1995_v14 = vpop.f32.mrf.mxu0  ;;  %2456 = vadd.xlane.f32.xlu0 %v2455_v28  ;;  %v5189_v7 = vld [vmem:[%s6469_s4 + $0x18] sm:$0xff] }
 0x195   :  { %v2188_v23 = vpop.f32.mrf.mxu1  ;;  %2333 = vst.msk [vmem:[%s6469_s4 + $0x38] sm:$0xff] %vm2326_vm0, %v2183_v25  ;;  %v1996_v53 = vadd.f32 %v1995_v14, %v5009_v63  ;;  %v2458_v44 = vsel %vm2326_vm0, %v5189_v7, 0.0  ;;  %v5215_v14 = vadd.f32 %v2180_v35, %v1988_v57 }
 0x196   :  { %v1997_v49 = vpop.f32.mrf.mxu0  ;;  %v2459_v22 = vadd.f32 %v2458_v44, %v5183_v52 }
 0x197   :  { %v2190_v36 = vpop.f32.mrf.mxu1  ;;  %v2189_v33 = vadd.f32 %v2188_v23, %v1996_v53  ;;  %v1994_v23 = vadd.f32 %v1993_v17, %v4995_v56 }
 0x198   :  { %v1999_v43 = vpop.f32.mrf.mxu0  ;;  %2460 = vadd.xlane.f32.xlu0 %v2459_v22  ;;  %v5205_v28 = vld [vmem:[%s6469_s4 + $0x28] sm:$0xff] }
 0x199   :  { %v2192_v30 = vpop.f32.mrf.mxu1  ;;  %2335 = vst.msk [vmem:[%s6469_s4 + $0x48] sm:$0xff] %vm2326_vm0, %v2189_v33  ;;  %v2000_v63 = vadd.f32 %v1999_v43, %v5013_v9  ;;  %v2462_v2 = vsel %vm2326_vm0, %v5205_v28, 0.0  ;;  %v5231_v43 = vadd.f32 %v2186_v31, %v1994_v23 }
 0x19a   :  { %v2003_v25 = vpop.f32.mrf.mxu0  ;;  %v2463_v42 = vadd.f32 %v2462_v2, %v5199_v0 }
 0x19b   :  { %v2196_v48 = vpop.f32.mrf.mxu1  ;;  %v2193_v8 = vadd.f32 %v2192_v30, %v2000_v63  ;;  %v1998_v30 = vadd.f32 %v1997_v49, %v5011_v4 }
 0x19c   :  { %v2005_v53 = vpop.f32.mrf.mxu0  ;;  %2464 = vadd.xlane.f32.xlu1 %v2463_v42  ;;  %v5221_v22 = vld [vmem:[%s6469_s4 + $0x38] sm:$0xff] }
 0x19d   :  { %v2198_v44 = vpop.f32.mrf.mxu1  ;;  %2337 = vst.msk [vmem:[%s6469_s4 + $0x58] sm:$0xff] %vm2326_vm0, %v2193_v8  ;;  %v2006_v9 = vadd.f32 %v2005_v53, %v5029_v20  ;;  %v2466_v35 = vsel %vm2326_vm0, %v5221_v22, 0.0  ;;  %v5247_v53 = vadd.f32 %v2190_v36, %v1998_v30 }
 0x19e   :  { %v2007_v33 = vpop.f32.mrf.mxu0  ;;  %v2467_v17 = vadd.f32 %v2466_v35, %v5215_v14 }
 0x19f   :  { %v2200_v56 = vpop.f32.mrf.mxu1  ;;  %v2199_v57 = vadd.f32 %v2198_v44, %v2006_v9  ;;  %v2004_v44 = vadd.f32 %v2003_v25, %v5015_v12 }
 0x1a0   :  { %v2009_v63 = vpop.f32.mrf.mxu0  ;;  %2468 = vadd.xlane.f32.xlu1 %v2467_v17  ;;  %v5237_v42 = vld [vmem:[%s6469_s4 + $0x48] sm:$0xff] }
 0x1a1   :  { %v2202_v2 = vpop.f32.mrf.mxu1  ;;  %2339 = vst.msk [vmem:[%s6469_s4 + $0x68] sm:$0xff] %vm2326_vm0, %v2199_v57  ;;  %v2010_v20 = vadd.f32 %v2009_v63, %v5033_v32  ;;  %v2470_v31 = vsel %vm2326_vm0, %v5237_v42, 0.0  ;;  %v5263_v63 = vadd.f32 %v2196_v48, %v2004_v44 }
 0x1a2   :  { %v2013_v8 = vpop.f32.mrf.mxu0  ;;  %v2471_v49 = vadd.f32 %v2470_v31, %v5231_v43 }
 0x1a3   :  { %v2206_v4 = vpop.f32.mrf.mxu1  ;;  %v2203_v23 = vadd.f32 %v2202_v2, %v2010_v20  ;;  %v2008_v2 = vadd.f32 %v2007_v33, %v5031_v26 }
 0x1a4   :  { %v2015_v9 = vpop.f32.mrf.mxu0  ;;  %2472 = vadd.xlane.f32.xlu0 %v2471_v49  ;;  %v5253_v17 = vld [vmem:[%s6469_s4 + $0x58] sm:$0xff] }
 0x1a5   :  { %v2208_v35 = vpop.f32.mrf.mxu1  ;;  %2341 = vst.msk [vmem:[%s6469_s4 + $0x78] sm:$0xff] %vm2326_vm0, %v2203_v23  ;;  %v2016_v32 = vadd.f32 %v2015_v9, %v5049_v45  ;;  %v2474_v36 = vsel %vm2326_vm0, %v5253_v17, 0.0  ;;  %v5279_v9 = vadd.f32 %v2200_v56, %v2008_v2 }
 0x1a6   :  { %v2017_v57 = vpop.f32.mrf.mxu0  ;;  %v2475_v25 = vadd.f32 %v2474_v36, %v5247_v53 }
 0x1a7   :  { %v2210_v12 = vpop.f32.mrf.mxu1  ;;  %v2209_v30 = vadd.f32 %v2208_v35, %v2016_v32  ;;  %v2014_v35 = vadd.f32 %v2013_v8, %v5035_v37 }
 0x1a8   :  { %v2019_v20 = vpop.f32.mrf.mxu0  ;;  %2476 = vadd.xlane.f32.xlu1 %v2475_v25  ;;  %v5269_v49 = vld [vmem:[%s6469_s4 + $0x68] sm:$0xff] }
 0x1a9   :  { %v2212_v31 = vpop.f32.mrf.mxu1  ;;  %2343 = vst.msk [vmem:[%s6469_s4 + $0x88] sm:$0xff] %vm2326_vm0, %v2209_v30  ;;  %v2020_v45 = vadd.f32 %v2019_v20, %v5053_v58  ;;  %v2478_v48 = vsel %vm2326_vm0, %v5269_v49, 0.0  ;;  %v5295_v20 = vadd.f32 %v2206_v4, %v2014_v35 }
 0x1aa   :  { %v2023_v23 = vpop.f32.mrf.mxu0  ;;  %v2479_v33 = vadd.f32 %v2478_v48, %v5263_v63 }
 0x1ab   :  { %v2216_v26 = vpop.f32.mrf.mxu1  ;;  %v2213_v44 = vadd.f32 %v2212_v31, %v2020_v45  ;;  %v2018_v31 = vadd.f32 %v2017_v57, %v5051_v51 }
 0x1ac   :  { %v2025_v32 = vpop.f32.mrf.mxu0  ;;  %2480 = vadd.xlane.f32.xlu0 %v2479_v33  ;;  %v5285_v25 = vld [vmem:[%s6469_s4 + $0x78] sm:$0xff] }
 0x1ad   :  { %v2218_v36 = vpop.f32.mrf.mxu1  ;;  %2345 = vst.msk [vmem:[%s6469_s4 + $0x98] sm:$0xff] %vm2326_vm0, %v2213_v44  ;;  %v2026_v58 = vadd.f32 %v2025_v32, %v5069_v6  ;;  %v2482_v56 = vsel %vm2326_vm0, %v5285_v25, 0.0  ;;  %v5311_v32 = vadd.f32 %v2210_v12, %v2018_v31 }
 0x1ae   :  { %v2027_v30 = vpop.f32.mrf.mxu0  ;;  %v2483_v8 = vadd.f32 %v2482_v56, %v5279_v9 }
 0x1af   :  { %v2220_v37 = vpop.f32.mrf.mxu1  ;;  %v2219_v2 = vadd.f32 %v2218_v36, %v2026_v58  ;;  %v2024_v36 = vadd.f32 %v2023_v23, %v5055_v61 }
 0x1b0   :  { %v2029_v45 = vpop.f32.mrf.mxu0  ;;  %2484 = vadd.xlane.f32.xlu1 %v2483_v8  ;;  %v5301_v33 = vld [vmem:[%s6469_s4 + $0x88] sm:$0xff] }
 0x1b1   :  { %v2222_v48 = vpop.f32.mrf.mxu1  ;;  %2347 = vst.msk [vmem:[%s6469_s4 + $0xa8] sm:$0xff] %vm2326_vm0, %v2219_v2  ;;  %v2030_v6 = vadd.f32 %v2029_v45, %v5073_v19  ;;  %v2486_v4 = vsel %vm2326_vm0, %v5301_v33, 0.0  ;;  %v5327_v45 = vadd.f32 %v2216_v26, %v2024_v36 }
 0x1b2   :  { %v2033_v44 = vpop.f32.mrf.mxu0  ;;  %v2487_v57 = vadd.f32 %v2486_v4, %v5295_v20 }
 0x1b3   :  { %v2226_v51 = vpop.f32.mrf.mxu1  ;;  %v2223_v35 = vadd.f32 %v2222_v48, %v2030_v6  ;;  %v2028_v48 = vadd.f32 %v2027_v30, %v5071_v13 }
 0x1b4   :  { %v2035_v58 = vpop.f32.mrf.mxu0  ;;  %2488 = vadd.xlane.f32.xlu0 %v2487_v57  ;;  %v5317_v8 = vld [vmem:[%s6469_s4 + $0x98] sm:$0xff] }
 0x1b5   :  { %v2228_v56 = vpop.f32.mrf.mxu1  ;;  %2349 = vst.msk [vmem:[%s6469_s4 + $0xb8] sm:$0xff] %vm2326_vm0, %v2223_v35  ;;  %v2036_v19 = vadd.f32 %v2035_v58, %v5077_v29  ;;  %v2490_v12 = vsel %vm2326_vm0, %v5317_v8, 0.0  ;;  %v5343_v58 = vadd.f32 %v2220_v37, %v2028_v48 }
 0x1b6   :  { %v2037_v2 = vpop.f32.mrf.mxu0  ;;  %v2491_v23 = vadd.f32 %v2490_v12, %v5311_v32 }
 0x1b7   :  { %v2230_v61 = vpop.f32.mrf.mxu1  ;;  %v2229_v31 = vadd.f32 %v2228_v56, %v2036_v19  ;;  %v2034_v56 = vadd.f32 %v2033_v44, %v5075_v24 }
 0x1b8   :  { %v2039_v6 = vpop.f32.mrf.mxu0  ;;  %2492 = vadd.xlane.f32.xlu1 %v2491_v23  ;;  %v5333_v57 = vld [vmem:[%s6469_s4 + $0xa8] sm:$0xff] }
 0x1b9   :  { %v2232_v4 = vpop.f32.mrf.mxu1  ;;  %2351 = vst.msk [vmem:[%s6469_s4 + $0xc8] sm:$0xff] %vm2326_vm0, %v2229_v31  ;;  %v2040_v29 = vadd.f32 %v2039_v6, %v5081_v41  ;;  %v2494_v26 = vsel %vm2326_vm0, %v5333_v57, 0.0  ;;  %v5359_v6 = vadd.f32 %v2226_v51, %v2034_v56 }
 0x1ba   :  { %v2043_v35 = vpop.f32.mrf.mxu0  ;;  %v2495_v30 = vadd.f32 %v2494_v26, %v5327_v45 }
 0x1bb   :  { %v2236_v13 = vpop.f32.mrf.mxu1  ;;  %v2233_v36 = vadd.f32 %v2232_v4, %v2040_v29  ;;  %6525 = vst [vmem:[#allocation21_spill] sm:$0xff] %v5359_v6  ;;  %v2038_v4 = vadd.f32 %v2037_v2, %v5079_v38 }
 0x1bc   :  { %v2045_v19 = vpop.f32.mrf.mxu0  ;;  %2496 = vadd.xlane.f32.xlu0 %v2495_v30  ;;  %v5349_v23 = vld [vmem:[%s6469_s4 + $0xb8] sm:$0xff] }
 0x1bd   :  { %v2238_v12 = vpop.f32.mrf.mxu1  ;;  %2353 = vst.msk [vmem:[%s6469_s4 + $0xd8] sm:$0xff] %vm2326_vm0, %v2233_v36  ;;  %v2046_v41 = vadd.f32 %v2045_v19, %v5085_v50  ;;  %v2498_v37 = vsel %vm2326_vm0, %v5349_v23, 0.0  ;;  %v5375_v19 = vadd.f32 %v2230_v61, %v2038_v4 }
 0x1be   :  { %v2047_v31 = vpop.f32.mrf.mxu0  ;;  %v2499_v44 = vadd.f32 %v2498_v37, %v5343_v58 }
 0x1bf   :  { %v2240_v24 = vpop.f32.mrf.mxu1  ;;  %v2239_v48 = vadd.f32 %v2238_v12, %v2046_v41  ;;  %v2044_v12 = vadd.f32 %v2043_v35, %v5083_v46 }
 0x1c0   :  { %v2049_v29 = vpop.f32.mrf.mxu0  ;;  %2500 = vadd.xlane.f32.xlu1 %v2499_v44  ;;  %v5365_v30 = vld [vmem:[%s6469_s4 + $0xc8] sm:$0xff] }
 0x1c1   :  { %v2242_v26 = vpop.f32.mrf.mxu1  ;;  %2355 = vst.msk [vmem:[%s6469_s4 + $0xe8] sm:$0xff] %vm2326_vm0, %v2239_v48  ;;  %v2050_v50 = vadd.f32 %v2049_v29, %v5089_v60  ;;  %v2502_v51 = vsel %vm2326_vm0, %v5365_v30, 0.0  ;;  %v5391_v29 = vadd.f32 %v2236_v13, %v2044_v12 }
 0x1c2   :  { %v2053_v36 = vpop.f32.mrf.mxu0  ;;  %v2503_v2 = vadd.f32 %v2502_v51, %v5359_v6 }
 0x1c3   :  { %v2246_v38 = vpop.f32.mrf.mxu1  ;;  %v2243_v56 = vadd.f32 %v2242_v26, %v2050_v50  ;;  %6526 = vst [vmem:[#allocation22_spill] sm:$0xff] %v5391_v29  ;;  %v2048_v26 = vadd.f32 %v2047_v31, %v5087_v55 }
 0x1c4   :  { %v2055_v41 = vpop.f32.mrf.mxu0  ;;  %2504 = vadd.xlane.f32.xlu0 %v2503_v2  ;;  %v5381_v44 = vld [vmem:[%s6469_s4 + $0xd8] sm:$0xff] }
 0x1c5   :  { %v2248_v37 = vpop.f32.mrf.mxu1  ;;  %2357 = vst.msk [vmem:[%s6469_s4 + $0xf8] sm:$0xff] %vm2326_vm0, %v2243_v56  ;;  %v2056_v60 = vadd.f32 %v2055_v41, %v5093_v5  ;;  %v2506_v61 = vsel %vm2326_vm0, %v5381_v44, 0.0  ;;  %v5407_v41 = vadd.f32 %v2240_v24, %v2048_v26 }
 0x1c6   :  { %v2057_v48 = vpop.f32.mrf.mxu0  ;;  %v2507_v35 = vadd.f32 %v2506_v61, %v5375_v19 }
 0x1c7   :  { %v2250_v46 = vpop.f32.mrf.mxu1  ;;  %v2249_v4 = vadd.f32 %v2248_v37, %v2056_v60  ;;  %6527 = vst [vmem:[#allocation23_spill] sm:$0xff] %v5407_v41  ;;  %v2054_v37 = vadd.f32 %v2053_v36, %v5091_v1 }
 0x1c8   :  { %v2059_v50 = vpop.f32.mrf.mxu0  ;;  %2508 = vadd.xlane.f32.xlu1 %v2507_v35  ;;  %v5397_v2 = vld [vmem:[%s6469_s4 + $0xe8] sm:$0xff] }
 0x1c9   :  { %v2252_v51 = vpop.f32.mrf.mxu1  ;;  %2359 = vst.msk [vmem:[%s6469_s4 + $0x108] sm:$0xff] %vm2326_vm0, %v2249_v4  ;;  %v2060_v5 = vadd.f32 %v2059_v50, %v5097_v15  ;;  %v2510_v13 = vsel %vm2326_vm0, %v5397_v2, 0.0  ;;  %v5423_v50 = vadd.f32 %v2246_v38, %v2054_v37 }
 0x1ca   :  { %v2063_v56 = vpop.f32.mrf.mxu0  ;;  %v2511_v31 = vadd.f32 %v2510_v13, %v5391_v29 }
 0x1cb   :  { %v2256_v55 = vpop.f32.mrf.mxu1  ;;  %v2253_v12 = vadd.f32 %v2252_v51, %v2060_v5  ;;  %6528 = vst [vmem:[#allocation24_spill] sm:$0xff] %v5423_v50  ;;  %v2058_v51 = vadd.f32 %v2057_v48, %v5095_v10 }
 0x1cc   :  { %v2065_v60 = vpop.f32.mrf.mxu0  ;;  %2512 = vadd.xlane.f32.xlu0 %v2511_v31  ;;  %v5413_v35 = vld [vmem:[%s6469_s4 + $0xf8] sm:$0xff] }
 0x1cd   :  { %v2258_v61 = vpop.f32.mrf.mxu1  ;;  %2361 = vst.msk [vmem:[%s6469_s4 + $0x118] sm:$0xff] %vm2326_vm0, %v2253_v12  ;;  %v2066_v15 = vadd.f32 %v2065_v60, %v5101_v27  ;;  %v2514_v24 = vsel %vm2326_vm0, %v5413_v35, 0.0  ;;  %v5439_v60 = vadd.f32 %v2250_v46, %v2058_v51 }
 0x1ce   :  { %v2067_v4 = vpop.f32.mrf.mxu0  ;;  %v2515_v36 = vadd.f32 %v2514_v24, %v5407_v41 }
 0x1cf   :  { %v2260_v1 = vpop.f32.mrf.mxu1  ;;  %v2259_v26 = vadd.f32 %v2258_v61, %v2066_v15  ;;  %6529 = vst [vmem:[#allocation25_spill] sm:$0xff] %v5439_v60  ;;  %v2064_v61 = vadd.f32 %v2063_v56, %v5099_v21 }
 0x1d0   :  { %v2069_v5 = vpop.f32.mrf.mxu0  ;;  %2516 = vadd.xlane.f32.xlu1 %v2515_v36  ;;  %v5429_v31 = vld [vmem:[%s6469_s4 + $0x108] sm:$0xff] }
 0x1d1   :  { %v2262_v13 = vpop.f32.mrf.mxu1  ;;  %2363 = vst.msk [vmem:[%s6469_s4 + $0x128] sm:$0xff] %vm2326_vm0, %v2259_v26  ;;  %v2070_v27 = vadd.f32 %v2069_v5, %v5105_v40  ;;  %v2518_v38 = vsel %vm2326_vm0, %v5429_v31, 0.0  ;;  %v5455_v5 = vadd.f32 %v2256_v55, %v2064_v61 }
 0x1d2   :  { %v2073_v12 = vpop.f32.mrf.mxu0  ;;  %v2519_v48 = vadd.f32 %v2518_v38, %v5423_v50 }
 0x1d3   :  { %v2266_v10 = vpop.f32.mrf.mxu1  ;;  %v2263_v37 = vadd.f32 %v2262_v13, %v2070_v27  ;;  %6530 = vst [vmem:[#allocation26_spill] sm:$0xff] %v5455_v5  ;;  %v2068_v13 = vadd.f32 %v2067_v4, %v5103_v34 }
 0x1d4   :  { %v2075_v15 = vpop.f32.mrf.mxu0  ;;  %2520 = vadd.xlane.f32.xlu0 %v2519_v48  ;;  %v5445_v36 = vld [vmem:[%s6469_s4 + $0x118] sm:$0xff] }
 0x1d5   :  { %v2268_v24 = vpop.f32.mrf.mxu1  ;;  %2365 = vst.msk [vmem:[%s6469_s4 + $0x138] sm:$0xff] %vm2326_vm0, %v2263_v37  ;;  %v2076_v40 = vadd.f32 %v2075_v15, %v5109_v54  ;;  %v2522_v46 = vsel %vm2326_vm0, %v5445_v36, 0.0  ;;  %v5471_v15 = vadd.f32 %v2260_v1, %v2068_v13 }
 0x1d6   :  { %v2077_v26 = vpop.f32.mrf.mxu0  ;;  %v2523_v56 = vadd.f32 %v2522_v46, %v5439_v60 }
 0x1d7   :  { %v2270_v21 = vpop.f32.mrf.mxu1  ;;  %v2269_v51 = vadd.f32 %v2268_v24, %v2076_v40  ;;  %6531 = vst [vmem:[#allocation27_spill] sm:$0xff] %v5471_v15  ;;  %v2074_v24 = vadd.f32 %v2073_v12, %v5107_v47 }
 0x1d8   :  { %v2079_v27 = vpop.f32.mrf.mxu0  ;;  %2524 = vadd.xlane.f32.xlu1 %v2523_v56  ;;  %v5461_v48 = vld [vmem:[%s6469_s4 + $0x128] sm:$0xff] }
 0x1d9   :  { %v2272_v38 = vpop.f32.mrf.mxu1  ;;  %2367 = vst.msk [vmem:[%s6469_s4 + $0x148] sm:$0xff] %vm2326_vm0, %v2269_v51  ;;  %v2080_v54 = vadd.f32 %v2079_v27, %v5113_v3  ;;  %v2526_v55 = vsel %vm2326_vm0, %v5461_v48, 0.0  ;;  %v5487_v27 = vadd.f32 %v2266_v10, %v2074_v24 }
 0x1da   :  { %v2083_v37 = vpop.f32.mrf.mxu0  ;;  %v2527_v4 = vadd.f32 %v2526_v55, %v5455_v5 }
 0x1db   :  { %v2276_v34 = vpop.f32.mrf.mxu1  ;;  %v2273_v61 = vadd.f32 %v2272_v38, %v2080_v54  ;;  %6532 = vst [vmem:[#allocation28_spill] sm:$0xff] %v5487_v27  ;;  %v2078_v38 = vadd.f32 %v2077_v26, %v5111_v62 }
 0x1dc   :  { %v2085_v40 = vpop.f32.mrf.mxu0  ;;  %2528 = vadd.xlane.f32.xlu0 %v2527_v4  ;;  %v5477_v56 = vld [vmem:[%s6469_s4 + $0x138] sm:$0xff] }
 0x1dd   :  { %v2278_v46 = vpop.f32.mrf.mxu1  ;;  %2369 = vst.msk [vmem:[%s6469_s4 + $0x158] sm:$0xff] %vm2326_vm0, %v2273_v61  ;;  %v2086_v3 = vadd.f32 %v2085_v40, %v5117_v18  ;;  %v2530_v1 = vsel %vm2326_vm0, %v5477_v56, 0.0  ;;  %v5503_v40 = vadd.f32 %v2270_v21, %v2078_v38 }
 0x1de   :  { %v2087_v51 = vpop.f32.mrf.mxu0  ;;  %v2531_v12 = vadd.f32 %v2530_v1, %v5471_v15 }
 0x1df   :  { %v2280_v47 = vpop.f32.mrf.mxu1  ;;  %v2279_v13 = vadd.f32 %v2278_v46, %v2086_v3  ;;  %6534 = vst [vmem:[#allocation30_spill] sm:$0xff] %v5503_v40  ;;  %v2084_v46 = vadd.f32 %v2083_v37, %v5115_v11 }
 0x1e0   :  { %v2089_v54 = vpop.f32.mrf.mxu0  ;;  %2532 = vadd.xlane.f32.xlu1 %v2531_v12  ;;  %v5493_v4 = vld [vmem:[%s6469_s4 + $0x148] sm:$0xff] }
 0x1e1   :  { %v2282_v55 = vpop.f32.mrf.mxu1  ;;  %6533 = vst [vmem:[#allocation29_spill] sm:$0xff] %v5493_v4  ;;  %2371 = vst.msk [vmem:[%s6469_s4 + $0x168] sm:$0xff] %vm2326_vm0, %v2279_v13  ;;  %v2090_v18 = vadd.f32 %v2089_v54, %v5121_v39  ;;  %v2534_v10 = vsel %vm2326_vm0, %v5493_v4, 0.0  ;;  %v6536_v39 = vld [vmem:[#allocation4_spill] sm:$0xff] }
 0x1e2   :  { %v2093_v61 = vpop.f32.mrf.mxu0  ;;  %v2535_v26 = vadd.f32 %v2534_v10, %v5487_v27 }
 0x1e3   :  { %v2286_v62 = vpop.f32.mrf.mxu1  ;;  %v2283_v24 = vadd.f32 %v2282_v55, %v2090_v18  ;;  %v5519_v55 = vadd.f32 %v2276_v34, %v2084_v46  ;;  %v6538_v18 = vld [vmem:[#allocation2_spill] sm:$0xff] }
 0x1e4   :  { %v2095_v3 = vpop.f32.mrf.mxu0  ;;  %2536 = vadd.xlane.f32.xlu0 %v2535_v26  ;;  %v5509_v12 = vld [vmem:[%s6469_s4 + $0x158] sm:$0xff]  ;;  %v2088_v10 = vadd.f32 %v2087_v51, %v6538_v18 }
 0x1e5   :  { %v2288_v1 = vpop.f32.mrf.mxu1  ;;  %6535 = vst [vmem:[#allocation31_spill] sm:$0xff] %v5509_v12  ;;  %2373 = vst.msk [vmem:[%s6469_s4 + $0x178] sm:$0xff] %vm2326_vm0, %v2283_v24  ;;  %v2096_v13 = vadd.f32 %v2095_v3, %v6536_v39  ;;  %v2538_v21 = vsel %vm2326_vm0, %v5509_v12, 0.0  ;;  %v6540_v3 = vld [vmem:[#allocation6_spill] sm:$0xff] }
 0x1e6   :  { %v2097_v38 = vpop.f32.mrf.mxu0  ;;  %v2539_v37 = vadd.f32 %v2538_v21, %v5503_v40  ;;  %6537 = vst [vmem:[#allocation4_spill] sm:$0xff] %v5519_v55  ;;  %v5535_v21 = vadd.f32 %v2280_v47, %v2088_v10 }
 0x1e7   :  { %v2290_v11 = vpop.f32.mrf.mxu1  ;;  %v2289_v54 = vadd.f32 %v2288_v1, %v2096_v13 }
 0x1e8   :  { %v2099_v26 = vpop.f32.mrf.mxu0  ;;  %2540 = vadd.xlane.f32.xlu1 %v2539_v37  ;;  %v5525_v24 = vld [vmem:[%s6469_s4 + $0x168] sm:$0xff]  ;;  %6541 = vst [vmem:[#allocation6_spill] sm:$0xff] %v5535_v21 }
 0x1e9   :  { %v2292_v4 = vpop.f32.mrf.mxu1  ;;  %6539 = vst [vmem:[#allocation2_spill] sm:$0xff] %v5525_v24  ;;  %2375 = vst.msk [vmem:[%s6469_s4 + $0x188] sm:$0xff] %vm2326_vm0, %v2289_v54  ;;  %v2100_v39 = vadd.f32 %v2099_v26, %v6540_v3  ;;  %v2542_v34 = vsel %vm2326_vm0, %v5525_v24, 0.0  ;;  %v6542_v37 = vld [vmem:[#allocation3_spill] sm:$0xff]  ;;  %v6544_v26 = vld [vmem:[#allocation8_spill] sm:$0xff] }
 0x1ea   :  { %v2103_v46 = vpop.f32.mrf.mxu0  ;;  %v2543_v1 = vadd.f32 %v2542_v34, %v5519_v55  ;;  %v2094_v18 = vadd.f32 %v2093_v61, %v6542_v37 }
 0x1eb   :  { %v2296_v51 = vpop.f32.mrf.mxu1  ;;  %v2293_v13 = vadd.f32 %v2292_v4, %v2100_v39 }
 0x1ec   :  { %v2105_v12 = vpop.f32.mrf.mxu0  ;;  %2544 = vadd.xlane.f32.xlu0 %v2543_v1  ;;  %v5541_v54 = vld [vmem:[%s6469_s4 + $0x178] sm:$0xff]  ;;  %v5551_v34 = vadd.f32 %v2286_v62, %v2094_v18 }
 0x1ed   :  { %v2298_v40 = vpop.f32.mrf.mxu1  ;;  %6543 = vst [vmem:[#allocation3_spill] sm:$0xff] %v5541_v54  ;;  %2377 = vst.msk [vmem:[%s6469_s4 + $0x198] sm:$0xff] %vm2326_vm0, %v2293_v13  ;;  %v2106_v3 = vadd.f32 %v2105_v12, %v6544_v26  ;;  %v2546_v47 = vsel %vm2326_vm0, %v5541_v54, 0.0  ;;  %v6546_v1 = vld [vmem:[#allocation5_spill] sm:$0xff]  ;;  %v6548_v12 = vld [vmem:[#allocation10_spill] sm:$0xff] }
 0x1ee   :  { %v2107_v4 = vpop.f32.mrf.mxu0  ;;  %v2547_v10 = vadd.f32 %v2546_v47, %v5535_v21  ;;  %6545 = vst [vmem:[#allocation8_spill] sm:$0xff] %v5551_v34  ;;  %v2098_v37 = vadd.f32 %v2097_v38, %v6546_v1 }
 0x1ef   :  { %v2300_v61 = vpop.f32.mrf.mxu1  ;;  %v2299_v39 = vadd.f32 %v2298_v40, %v2106_v3 }
 0x1f0   :  { %v2109_v24 = vpop.f32.mrf.mxu0  ;;  %2548 = vadd.xlane.f32.xlu1 %v2547_v10  ;;  %v5557_v13 = vld [vmem:[%s6469_s4 + $0x188] sm:$0xff]  ;;  %v5567_v47 = vadd.f32 %v2290_v11, %v2098_v37 }
 0x1f1   :  { %v2302_v55 = vpop.f32.mrf.mxu1  ;;  %6547 = vst [vmem:[#allocation5_spill] sm:$0xff] %v5557_v13  ;;  %2379 = vst.msk [vmem:[%s6469_s4 + $0x1a8] sm:$0xff] %vm2326_vm0, %v2299_v39  ;;  %v2110_v26 = vadd.f32 %v2109_v24, %v6548_v12  ;;  %v2550_v62 = vsel %vm2326_vm0, %v5557_v13, 0.0  ;;  %v6550_v10 = vld [vmem:[#allocation7_spill] sm:$0xff]  ;;  %v6552_v24 = vld [vmem:[#allocation12_spill] sm:$0xff] }
 0x1f2   :  { %v2113_v40 = vpop.f32.mrf.mxu0  ;;  %v2551_v18 = vadd.f32 %v2550_v62, %v5551_v34  ;;  %6549 = vst [vmem:[#allocation10_spill] sm:$0xff] %v5567_v47  ;;  %v2104_v1 = vadd.f32 %v2103_v46, %v6550_v10 }
 0x1f3   :  { %v2306_v38 = vpop.f32.mrf.mxu1  ;;  %v2303_v3 = vadd.f32 %v2302_v55, %v2110_v26 }
 0x1f4   :  { %v2115_v54 = vpop.f32.mrf.mxu0  ;;  %2552 = vadd.xlane.f32.xlu0 %v2551_v18  ;;  %v5573_v39 = vld [vmem:[%s6469_s4 + $0x198] sm:$0xff]  ;;  %v5583_v62 = vadd.f32 %v2296_v51, %v2104_v1 }
 0x1f5   :  { %v2308_v21 = vpop.f32.mrf.mxu1  ;;  %6551 = vst [vmem:[#allocation7_spill] sm:$0xff] %v5573_v39  ;;  %2381 = vst.msk [vmem:[%s6469_s4 + $0x1b8] sm:$0xff] %vm2326_vm0, %v2303_v3  ;;  %v2116_v12 = vadd.f32 %v2115_v54, %v6552_v24  ;;  %v2554_v11 = vsel %vm2326_vm0, %v5573_v39, 0.0  ;;  %v6554_v18 = vld [vmem:[#allocation9_spill] sm:$0xff]  ;;  %v6556_v54 = vld [vmem:[#allocation14_spill] sm:$0xff] }
 0x1f6   :  { %v2117_v55 = vpop.f32.mrf.mxu0  ;;  %v2555_v37 = vadd.f32 %v2554_v11, %v5567_v47  ;;  %6553 = vst [vmem:[#allocation12_spill] sm:$0xff] %v5583_v62  ;;  %v2108_v10 = vadd.f32 %v2107_v4, %v6554_v18 }
 0x1f7   :  { %v2310_v46 = vpop.f32.mrf.mxu1  ;;  %v2309_v26 = vadd.f32 %v2308_v21, %v2116_v12 }
 0x1f8   :  { %v2119_v13 = vpop.f32.mrf.mxu0  ;;  %2556 = vadd.xlane.f32.xlu1 %v2555_v37  ;;  %v5589_v3 = vld [vmem:[%s6469_s4 + $0x1a8] sm:$0xff]  ;;  %v5599_v11 = vadd.f32 %v2300_v61, %v2108_v10 }
 0x1f9   :  { %v2312_v34 = vpop.f32.mrf.mxu1  ;;  %6555 = vst [vmem:[#allocation9_spill] sm:$0xff] %v5589_v3  ;;  %2383 = vst.msk [vmem:[%s6469_s4 + $0x1c8] sm:$0xff] %vm2326_vm0, %v2309_v26  ;;  %v2120_v24 = vadd.f32 %v2119_v13, %v6556_v54  ;;  %v2558_v51 = vsel %vm2326_vm0, %v5589_v3, 0.0  ;;  %v6557_v37 = vld [vmem:[#allocation11_spill] sm:$0xff]  ;;  %v6558_v13 = vld [vmem:[#allocation16_spill] sm:$0xff] }
 0x1fa   :  { %v2123_v21 = vpop.f32.mrf.mxu0  ;;  %v2559_v1 = vadd.f32 %v2558_v51, %v5583_v62  ;;  %v2114_v18 = vadd.f32 %v2113_v40, %v6557_v37 }
 0x1fb   :  { %v2316_v4 = vpop.f32.mrf.mxu1  ;;  %v2313_v12 = vadd.f32 %v2312_v34, %v2120_v24 }
 0x1fc   :  { %v2125_v39 = vpop.f32.mrf.mxu0  ;;  %2560 = vadd.xlane.f32.xlu0 %v2559_v1  ;;  %v5605_v26 = vld [vmem:[%s6469_s4 + $0x1b8] sm:$0xff]  ;;  %v5615_v51 = vadd.f32 %v2306_v38, %v2114_v18 }
 0x1fd   :  { %v2318_v47 = vpop.f32.mrf.mxu1  ;;  %2385 = vst.msk [vmem:[%s6469_s4 + $0x1d8] sm:$0xff] %vm2326_vm0, %v2313_v12  ;;  %v2126_v54 = vadd.f32 %v2125_v39, %v6558_v13  ;;  %v2562_v61 = vsel %vm2326_vm0, %v5605_v26, 0.0  ;;  %v6560_v1 = vld [vmem:[#allocation13_spill] sm:$0xff]  ;;  %v6561_v39 = vld [vmem:[#allocation18_spill] sm:$0xff] }
 0x1fe   :  { %v2127_v34 = vpop.f32.mrf.mxu0  ;;  %v2563_v10 = vadd.f32 %v2562_v61, %v5599_v11  ;;  %6559 = vst [vmem:[#allocation14_spill] sm:$0xff] %v5615_v51  ;;  %v2118_v37 = vadd.f32 %v2117_v55, %v6560_v1 }
 0x1ff   :  { %v2320_v40 = vpop.f32.mrf.mxu1  ;;  %v2319_v24 = vadd.f32 %v2318_v47, %v2126_v54  ;;  %v6562_v54 = vld [vmem:[#allocation15_spill] sm:$0xff] }
 0x200   :  { %v2129_v3 = vpop.f32.mrf.mxu0  ;;  %2564 = vadd.xlane.f32.xlu1 %v2563_v10  ;;  %v5621_v12 = vld [vmem:[%s6469_s4 + $0x1c8] sm:$0xff]  ;;  %v5631_v18 = vadd.f32 %v2310_v46, %v2118_v37  ;;  %v2124_v61 = vadd.f32 %v2123_v21, %v6562_v54 }
 0x201   :  { %v2322_v62 = vpop.f32.mrf.mxu1  ;;  %2387 = vst.msk [vmem:[%s6469_s4 + $0x1e8] sm:$0xff] %vm2326_vm0, %v2319_v24  ;;  %v2130_v13 = vadd.f32 %v2129_v3, %v6561_v39  ;;  %v2566_v38 = vsel %vm2326_vm0, %v5621_v12, 0.0  ;;  %v6564_v24 = vld [vmem:[#allocation17_spill] sm:$0xff] }
 0x202   :  { %v2567_v47 = vadd.f32 %v2566_v38, %v5615_v51  ;;  %v5646_v46 = vadd.f32 %v2316_v4, %v2124_v61  ;;  %v2128_v21 = vadd.f32 %v2127_v34, %v6564_v24 }
 0x203   :  { %v2323_v55 = vadd.f32 %v2322_v62, %v2130_v13 }
 0x204   :  { %2568 = vadd.xlane.f32.xlu0 %v2567_v47  ;;  %v5637_v10 = vld [vmem:[%s6469_s4 + $0x1d8] sm:$0xff]  ;;  %6563 = vst [vmem:[#allocation11_spill] sm:$0xff] %v5646_v46  ;;  %v5657_v13 = vadd.f32 %v2320_v40, %v2128_v21 }
 0x205   :  { %2389 = vst.msk [vmem:[%s6469_s4 + $0x1f8] sm:$0xff] %vm2326_vm0, %v2323_v55  ;;  %v2570_v3 = vsel %vm2326_vm0, %v5637_v10, 0.0 }
 0x206   :  { %v2571_v62 = vadd.f32 %v2570_v3, %v5631_v18  ;;  %6565 = vst [vmem:[#allocation16_spill] sm:$0xff] %v5657_v13 }
 0x208   :  { %2572 = vadd.xlane.f32.xlu1 %v2571_v62  ;;  %v5652_v1 = vld [vmem:[%s6469_s4 + $0x1e8] sm:$0xff] }
 0x209   :  { %v2574_v37 = vsel %vm2326_vm0, %v5652_v1, 0.0 }
 0x20a   :  { %v2575_v39 = vadd.f32 %v2574_v37, %v5646_v46 }
 0x20c   :  { %2576 = vadd.xlane.f32.xlu0 %v2575_v39  ;;  %v5662_v4 = vld [vmem:[%s6469_s4 + $0x1f8] sm:$0xff] }
 0x20d   :  { %6566 = vst [vmem:[#allocation13_spill] sm:$0xff] %v5662_v4  ;;  %v2578_v34 = vsel %vm2326_vm0, %v5662_v4, 0.0 }
 0x20e   :  { %v2579_v38 = vadd.f32 %v2578_v34, %v5657_v13 }
 0x210   :  { %2580 = vadd.xlane.f32.xlu1 %v2579_v38 }
 0x21d   :  { %v2457_v47 = vpop.xlane.xlu0 %2456 }
 0x21e   :  { %v5667_v55 = vmul.f32 0.0051020407, %v2457_v47 }
 0x220   :  { %v2614_v54 = vsub.f32 %v5167_v59, %v5667_v55  ;;  %v2615_v40 = vsub.f32 %v5173_v16, %v5667_v55 }
 0x221   :  { %v2461_v61 = vpop.xlane.xlu0 %2460 }
 0x222   :  { %v5673_v3 = vmul.f32 0.0051020407, %v2461_v61  ;;  %v2678_v62 = vmul.f32 %v2614_v54, %v2614_v54  ;;  %v2679_v24 = vmul.f32 %v2615_v40, %v2615_v40 }
 0x224   :  { %6567 = vst [vmem:[#allocation18_spill] sm:$0xff] %v5673_v3  ;;  %v2742_v21 = vsel %vm2326_vm0, %v2679_v24, 0.0  ;;  %v2616_v37 = vsub.f32 %v5183_v52, %v5673_v3  ;;  %v2617_v39 = vsub.f32 %v5189_v7, %v5673_v3 }
 0x225   :  { %v2465_v34 = vpop.xlane.xlu1 %2464  ;;  %v2743_v38 = vadd.f32 %v2742_v21, %v2678_v62 }
 0x226   :  { %v5680_v47 = vmul.f32 0.0051020407, %v2465_v34  ;;  %v2680_v59 = vmul.f32 %v2616_v37, %v2616_v37  ;;  %v2681_v4 = vmul.f32 %v2617_v39, %v2617_v39 }
 0x227   :  { %2744 = vadd.xlane.f32.xlu0 %v2743_v38 }
 0x228   :  { %v2746_v16 = vsel %vm2326_vm0, %v2681_v4, 0.0  ;;  %v2618_v54 = vsub.f32 %v5199_v0, %v5680_v47  ;;  %v2619_v40 = vsub.f32 %v5205_v28, %v5680_v47 }
 0x229   :  { %v2469_v61 = vpop.xlane.xlu1 %2468  ;;  %v2747_v24 = vadd.f32 %v2746_v16, %v2680_v59 }
 0x22a   :  { %v5687_v52 = vmul.f32 0.0051020407, %v2469_v61  ;;  %v2682_v7 = vmul.f32 %v2618_v54, %v2618_v54  ;;  %v2683_v3 = vmul.f32 %v2619_v40, %v2619_v40 }
 0x22b   :  { %2748 = vadd.xlane.f32.xlu1 %v2747_v24 }
 0x22c   :  { %v2750_v62 = vsel %vm2326_vm0, %v2683_v3, 0.0  ;;  %v2620_v21 = vsub.f32 %v5215_v14, %v5687_v52  ;;  %v2621_v4 = vsub.f32 %v5221_v22, %v5687_v52 }
 0x22d   :  { %v2473_v37 = vpop.xlane.xlu0 %2472  ;;  %v2751_v39 = vadd.f32 %v2750_v62, %v2682_v7 }
 0x22e   :  { %v5694_v34 = vmul.f32 0.0051020407, %v2473_v37  ;;  %v2684_v28 = vmul.f32 %v2620_v21, %v2620_v21  ;;  %v2685_v38 = vmul.f32 %v2621_v4, %v2621_v4 }
 0x22f   :  { %2752 = vadd.xlane.f32.xlu0 %v2751_v39 }
 0x230   :  { %v2754_v59 = vsel %vm2326_vm0, %v2685_v38, 0.0  ;;  %v2622_v16 = vsub.f32 %v5231_v43, %v5694_v34  ;;  %v2623_v3 = vsub.f32 %v5237_v42, %v5694_v34 }
 0x231   :  { %v2477_v54 = vpop.xlane.xlu1 %2476  ;;  %v2755_v40 = vadd.f32 %v2754_v59, %v2684_v28 }
 0x232   :  { %v5701_v61 = vmul.f32 0.0051020407, %v2477_v54  ;;  %v2686_v22 = vmul.f32 %v2622_v16, %v2622_v16  ;;  %v2687_v24 = vmul.f32 %v2623_v3, %v2623_v3 }
 0x233   :  { %2756 = vadd.xlane.f32.xlu1 %v2755_v40 }
 0x234   :  { %v2758_v7 = vsel %vm2326_vm0, %v2687_v24, 0.0  ;;  %v2624_v62 = vsub.f32 %v5247_v53, %v5701_v61  ;;  %v2625_v21 = vsub.f32 %v5253_v17, %v5701_v61 }
 0x235   :  { %v2481_v4 = vpop.xlane.xlu0 %2480  ;;  %v2759_v37 = vadd.f32 %v2758_v7, %v2686_v22 }
 0x236   :  { %v5708_v39 = vmul.f32 0.0051020407, %v2481_v4  ;;  %v2688_v42 = vmul.f32 %v2624_v62, %v2624_v62  ;;  %v2689_v38 = vmul.f32 %v2625_v21, %v2625_v21 }
 0x237   :  { %2760 = vadd.xlane.f32.xlu0 %v2759_v37 }
 0x238   :  { %v2762_v28 = vsel %vm2326_vm0, %v2689_v38, 0.0  ;;  %v2626_v59 = vsub.f32 %v5263_v63, %v5708_v39  ;;  %v2627_v16 = vsub.f32 %v5269_v49, %v5708_v39 }
 0x239   :  { %v2485_v3 = vpop.xlane.xlu1 %2484  ;;  %v2763_v54 = vadd.f32 %v2762_v28, %v2688_v42 }
 0x23a   :  { %v5715_v40 = vmul.f32 0.0051020407, %v2485_v3  ;;  %v2690_v17 = vmul.f32 %v2626_v59, %v2626_v59  ;;  %v2691_v24 = vmul.f32 %v2627_v16, %v2627_v16 }
 0x23b   :  { %2764 = vadd.xlane.f32.xlu1 %v2763_v54 }
 0x23c   :  { %v2766_v22 = vsel %vm2326_vm0, %v2691_v24, 0.0  ;;  %v2628_v7 = vsub.f32 %v5279_v9, %v5715_v40  ;;  %v2629_v62 = vsub.f32 %v5285_v25, %v5715_v40 }
 0x23d   :  { %v2489_v21 = vpop.xlane.xlu0 %2488  ;;  %v2767_v4 = vadd.f32 %v2766_v22, %v2690_v17 }
 0x23e   :  { %v5722_v37 = vmul.f32 0.0051020407, %v2489_v21  ;;  %v2692_v49 = vmul.f32 %v2628_v7, %v2628_v7  ;;  %v2693_v38 = vmul.f32 %v2629_v62, %v2629_v62 }
 0x23f   :  { %2768 = vadd.xlane.f32.xlu0 %v2767_v4 }
 0x240   :  { %v2770_v42 = vsel %vm2326_vm0, %v2693_v38, 0.0  ;;  %v2630_v28 = vsub.f32 %v5295_v20, %v5722_v37  ;;  %v2631_v59 = vsub.f32 %v5301_v33, %v5722_v37 }
 0x241   :  { %v2493_v16 = vpop.xlane.xlu1 %2492  ;;  %v2771_v3 = vadd.f32 %v2770_v42, %v2692_v49  ;;  %v4221_v49 = vmov 0  }
 0x242   :  { %v5729_v54 = vmul.f32 0.0051020407, %v2493_v16  ;;  %v2694_v25 = vmul.f32 %v2630_v28, %v2630_v28  ;;  %v2695_v24 = vmul.f32 %v2631_v59, %v2631_v59  ;;  %3931 = vset.pattern.permute.xlu0 %v4221_v49  ;;  %3932 = vset.pattern.permute.xlu1 %v4221_v49 }
 0x243   :  { %2772 = vadd.xlane.f32.xlu1 %v2771_v3 }
 0x244   :  { %v2774_v17 = vsel %vm2326_vm0, %v2695_v24, 0.0  ;;  %v2632_v22 = vsub.f32 %v5311_v32, %v5729_v54  ;;  %v2633_v7 = vsub.f32 %v5317_v8, %v5729_v54 }
 0x245   :  { %v2497_v62 = vpop.xlane.xlu0 %2496  ;;  %v2775_v21 = vadd.f32 %v2774_v17, %v2694_v25 }
 0x246   :  { %v5736_v4 = vmul.f32 0.0051020407, %v2497_v62  ;;  %v2696_v33 = vmul.f32 %v2632_v22, %v2632_v22  ;;  %v2697_v38 = vmul.f32 %v2633_v7, %v2633_v7 }
 0x247   :  { %2776 = vadd.xlane.f32.xlu0 %v2775_v21 }
 0x248   :  { %v2778_v42 = vsel %vm2326_vm0, %v2697_v38, 0.0  ;;  %v2634_v28 = vsub.f32 %v5327_v45, %v5736_v4  ;;  %v2635_v59 = vsub.f32 %v5333_v57, %v5736_v4 }
 0x249   :  { %v2501_v16 = vpop.xlane.xlu1 %2500  ;;  %v2779_v8 = vadd.f32 %v2778_v42, %v2696_v33 }
 0x24a   :  { %v5743_v3 = vmul.f32 0.0051020407, %v2501_v16  ;;  %v2698_v25 = vmul.f32 %v2634_v28, %v2634_v28  ;;  %v2699_v24 = vmul.f32 %v2635_v59, %v2635_v59 }
 0x24b   :  { %2780 = vadd.xlane.f32.xlu1 %v2779_v8 }
 0x24c   :  { %v2782_v17 = vsel %vm2326_vm0, %v2699_v24, 0.0  ;;  %v2636_v22 = vsub.f32 %v5343_v58, %v5743_v3  ;;  %v2637_v7 = vsub.f32 %v5349_v23, %v5743_v3 }
 0x24d   :  { %v2505_v62 = vpop.xlane.xlu0 %2504  ;;  %v2783_v21 = vadd.f32 %v2782_v17, %v2698_v25 }
 0x24e   :  { %v5750_v38 = vmul.f32 0.0051020407, %v2505_v62  ;;  %v2700_v57 = vmul.f32 %v2636_v22, %v2636_v22  ;;  %v2701_v49 = vmul.f32 %v2637_v7, %v2637_v7 }
 0x24f   :  { %2784 = vadd.xlane.f32.xlu0 %v2783_v21 }
 0x250   :  { %v2786_v33 = vsel %vm2326_vm0, %v2701_v49, 0.0  ;;  %v2638_v42 = vsub.f32 %v5359_v6, %v5750_v38  ;;  %v2639_v28 = vsub.f32 %v5365_v30, %v5750_v38 }
 0x251   :  { %v2509_v59 = vpop.xlane.xlu1 %2508  ;;  %v2787_v16 = vadd.f32 %v2786_v33, %v2700_v57 }
 0x252   :  { %v5757_v8 = vmul.f32 0.0051020407, %v2509_v59  ;;  %v2702_v23 = vmul.f32 %v2638_v42, %v2638_v42  ;;  %v2703_v24 = vmul.f32 %v2639_v28, %v2639_v28 }
 0x253   :  { %2788 = vadd.xlane.f32.xlu1 %v2787_v16 }
 0x254   :  { %v2790_v25 = vsel %vm2326_vm0, %v2703_v24, 0.0  ;;  %v2640_v17 = vsub.f32 %v5375_v19, %v5757_v8  ;;  %v2641_v22 = vsub.f32 %v5381_v44, %v5757_v8 }
 0x255   :  { %v2513_v7 = vpop.xlane.xlu0 %2512  ;;  %v2791_v62 = vadd.f32 %v2790_v25, %v2702_v23 }
 0x256   :  { %v5764_v21 = vmul.f32 0.0051020407, %v2513_v7  ;;  %v2704_v30 = vmul.f32 %v2640_v17, %v2640_v17  ;;  %v2705_v49 = vmul.f32 %v2641_v22, %v2641_v22 }
 0x257   :  { %2792 = vadd.xlane.f32.xlu0 %v2791_v62 }
 0x258   :  { %v2794_v57 = vsel %vm2326_vm0, %v2705_v49, 0.0  ;;  %v2642_v33 = vsub.f32 %v5391_v29, %v5764_v21  ;;  %v2643_v42 = vsub.f32 %v5397_v2, %v5764_v21 }
 0x259   :  { %v2517_v28 = vpop.xlane.xlu1 %2516  ;;  %v2795_v59 = vadd.f32 %v2794_v57, %v2704_v30 }
 0x25a   :  { %v5771_v16 = vmul.f32 0.0051020407, %v2517_v28  ;;  %v2706_v44 = vmul.f32 %v2642_v33, %v2642_v33  ;;  %v2707_v24 = vmul.f32 %v2643_v42, %v2643_v42 }
 0x25b   :  { %2796 = vadd.xlane.f32.xlu1 %v2795_v59 }
 0x25c   :  { %v2798_v23 = vsel %vm2326_vm0, %v2707_v24, 0.0  ;;  %v2644_v25 = vsub.f32 %v5407_v41, %v5771_v16  ;;  %v2645_v17 = vsub.f32 %v5413_v35, %v5771_v16 }
 0x25d   :  { %v2521_v22 = vpop.xlane.xlu0 %2520  ;;  %v2799_v7 = vadd.f32 %v2798_v23, %v2706_v44 }
 0x25e   :  { %v5778_v62 = vmul.f32 0.0051020407, %v2521_v22  ;;  %v2708_v2 = vmul.f32 %v2644_v25, %v2644_v25  ;;  %v2709_v49 = vmul.f32 %v2645_v17, %v2645_v17 }
 0x25f   :  { %2800 = vadd.xlane.f32.xlu0 %v2799_v7 }
 0x260   :  { %v2802_v30 = vsel %vm2326_vm0, %v2709_v49, 0.0  ;;  %v2646_v57 = vsub.f32 %v5423_v50, %v5778_v62  ;;  %v2647_v33 = vsub.f32 %v5429_v31, %v5778_v62 }
 0x261   :  { %v2525_v42 = vpop.xlane.xlu1 %2524  ;;  %v2803_v28 = vadd.f32 %v2802_v30, %v2708_v2 }
 0x262   :  { %v5785_v59 = vmul.f32 0.0051020407, %v2525_v42  ;;  %v2710_v35 = vmul.f32 %v2646_v57, %v2646_v57  ;;  %v2711_v24 = vmul.f32 %v2647_v33, %v2647_v33 }
 0x263   :  { %2804 = vadd.xlane.f32.xlu1 %v2803_v28 }
 0x264   :  { %v2806_v44 = vsel %vm2326_vm0, %v2711_v24, 0.0  ;;  %v2648_v23 = vsub.f32 %v5439_v60, %v5785_v59  ;;  %v2649_v25 = vsub.f32 %v5445_v36, %v5785_v59 }
 0x265   :  { %v2529_v17 = vpop.xlane.xlu0 %2528  ;;  %v2807_v22 = vadd.f32 %v2806_v44, %v2710_v35 }
 0x266   :  { %v5792_v7 = vmul.f32 0.0051020407, %v2529_v17  ;;  %v2712_v31 = vmul.f32 %v2648_v23, %v2648_v23  ;;  %v2713_v49 = vmul.f32 %v2649_v25, %v2649_v25 }
 0x267   :  { %2808 = vadd.xlane.f32.xlu0 %v2807_v22 }
 0x268   :  { %v2810_v2 = vsel %vm2326_vm0, %v2713_v49, 0.0  ;;  %v2650_v30 = vsub.f32 %v5455_v5, %v5792_v7  ;;  %v2651_v57 = vsub.f32 %v5461_v48, %v5792_v7 }
 0x269   :  { %v2533_v33 = vpop.xlane.xlu1 %2532  ;;  %v2811_v42 = vadd.f32 %v2810_v2, %v2712_v31 }
 0x26a   :  { %v5799_v28 = vmul.f32 0.0051020407, %v2533_v33  ;;  %v2714_v36 = vmul.f32 %v2650_v30, %v2650_v30  ;;  %v2715_v24 = vmul.f32 %v2651_v57, %v2651_v57  ;;  %v6568_v30 = vld [vmem:[#allocation29_spill] sm:$0xff] }
 0x26b   :  { %2812 = vadd.xlane.f32.xlu1 %v2811_v42 }
 0x26c   :  { %v2814_v35 = vsel %vm2326_vm0, %v2715_v24, 0.0  ;;  %v2652_v44 = vsub.f32 %v5471_v15, %v5799_v28  ;;  %v2653_v23 = vsub.f32 %v5477_v56, %v5799_v28 }
 0x26d   :  { %v2537_v25 = vpop.xlane.xlu0 %2536  ;;  %v2815_v17 = vadd.f32 %v2814_v35, %v2714_v36  ;;  %v6569_v35 = vld [vmem:[#allocation30_spill] sm:$0xff] }
 0x26e   :  { %v5806_v22 = vmul.f32 0.0051020407, %v2537_v25  ;;  %v2716_v48 = vmul.f32 %v2652_v44, %v2652_v44  ;;  %v2717_v49 = vmul.f32 %v2653_v23, %v2653_v23  ;;  %v6570_v23 = vld [vmem:[#allocation31_spill] sm:$0xff] }
 0x26f   :  { %2816 = vadd.xlane.f32.xlu0 %v2815_v17 }
 0x270   :  { %v2818_v31 = vsel %vm2326_vm0, %v2717_v49, 0.0  ;;  %v2654_v2 = vsub.f32 %v5487_v27, %v5806_v22  ;;  %v2655_v57 = vsub.f32 %v6568_v30, %v5806_v22 }
 0x271   :  { %v2541_v33 = vpop.xlane.xlu1 %2540  ;;  %v2819_v42 = vadd.f32 %v2818_v31, %v2716_v48  ;;  %v6571_v31 = vld [vmem:[#allocation4_spill] sm:$0xff] }
 0x272   :  { %v5813_v24 = vmul.f32 0.0051020407, %v2541_v33  ;;  %v2718_v56 = vmul.f32 %v2654_v2, %v2654_v2  ;;  %v2719_v5 = vmul.f32 %v2655_v57, %v2655_v57 }
 0x273   :  { %2820 = vadd.xlane.f32.xlu1 %v2819_v42 }
 0x274   :  { %v2822_v36 = vsel %vm2326_vm0, %v2719_v5, 0.0  ;;  %v2656_v44 = vsub.f32 %v6569_v35, %v5813_v24  ;;  %v2657_v25 = vsub.f32 %v6570_v23, %v5813_v24  ;;  %v6572_v5 = vld [vmem:[#allocation2_spill] sm:$0xff] }
 0x275   :  { %v2545_v17 = vpop.xlane.xlu0 %2544  ;;  %v2823_v49 = vadd.f32 %v2822_v36, %v2718_v56  ;;  %v6573_v36 = vld [vmem:[#allocation6_spill] sm:$0xff] }
 0x276   :  { %v5820_v27 = vmul.f32 0.0051020407, %v2545_v17  ;;  %v2720_v30 = vmul.f32 %v2656_v44, %v2656_v44  ;;  %v2721_v50 = vmul.f32 %v2657_v25, %v2657_v25 }
 0x277   :  { %2824 = vadd.xlane.f32.xlu0 %v2823_v49 }
 0x278   :  { %v2826_v48 = vsel %vm2326_vm0, %v2721_v50, 0.0  ;;  %v2658_v2 = vsub.f32 %v6571_v31, %v5820_v27  ;;  %v2659_v57 = vsub.f32 %v6572_v5, %v5820_v27  ;;  %v6574_v50 = vld [vmem:[#allocation3_spill] sm:$0xff] }
 0x279   :  { %v2549_v33 = vpop.xlane.xlu1 %2548  ;;  %v2827_v42 = vadd.f32 %v2826_v48, %v2720_v30  ;;  %v6575_v48 = vld [vmem:[#allocation8_spill] sm:$0xff] }
 0x27a   :  { %v5827_v35 = vmul.f32 0.0051020407, %v2549_v33  ;;  %v2722_v23 = vmul.f32 %v2658_v2, %v2658_v2  ;;  %v2723_v15 = vmul.f32 %v2659_v57, %v2659_v57 }
 0x27b   :  { %2828 = vadd.xlane.f32.xlu1 %v2827_v42 }
 0x27c   :  { %v2830_v56 = vsel %vm2326_vm0, %v2723_v15, 0.0  ;;  %v2660_v44 = vsub.f32 %v6573_v36, %v5827_v35  ;;  %v2661_v25 = vsub.f32 %v6574_v50, %v5827_v35  ;;  %v6576_v15 = vld [vmem:[#allocation5_spill] sm:$0xff] }
 0x27d   :  { %v2553_v17 = vpop.xlane.xlu0 %2552  ;;  %v2831_v49 = vadd.f32 %v2830_v56, %v2722_v23  ;;  %v6577_v56 = vld [vmem:[#allocation10_spill] sm:$0xff] }
 0x27e   :  { %v5834_v31 = vmul.f32 0.0051020407, %v2553_v17  ;;  %v2724_v5 = vmul.f32 %v2660_v44, %v2660_v44  ;;  %v2725_v29 = vmul.f32 %v2661_v25, %v2661_v25 }
 0x27f   :  { %2832 = vadd.xlane.f32.xlu0 %v2831_v49 }
 0x280   :  { %v2834_v30 = vsel %vm2326_vm0, %v2725_v29, 0.0  ;;  %v2662_v2 = vsub.f32 %v6575_v48, %v5834_v31  ;;  %v2663_v57 = vsub.f32 %v6576_v15, %v5834_v31  ;;  %v6578_v29 = vld [vmem:[#allocation7_spill] sm:$0xff] }
 0x281   :  { %v2557_v33 = vpop.xlane.xlu1 %2556  ;;  %v2835_v42 = vadd.f32 %v2834_v30, %v2724_v5  ;;  %v6579_v30 = vld [vmem:[#allocation12_spill] sm:$0xff] }
 0x282   :  { %v5841_v36 = vmul.f32 0.0051020407, %v2557_v33  ;;  %v2726_v50 = vmul.f32 %v2662_v2, %v2662_v2  ;;  %v2727_v60 = vmul.f32 %v2663_v57, %v2663_v57 }
 0x283   :  { %2836 = vadd.xlane.f32.xlu1 %v2835_v42 }
 0x284   :  { %v2838_v23 = vsel %vm2326_vm0, %v2727_v60, 0.0  ;;  %v2664_v44 = vsub.f32 %v6577_v56, %v5841_v36  ;;  %v2665_v25 = vsub.f32 %v6578_v29, %v5841_v36  ;;  %v6580_v60 = vld [vmem:[#allocation9_spill] sm:$0xff] }
 0x285   :  { %v2561_v17 = vpop.xlane.xlu0 %2560  ;;  %v2839_v49 = vadd.f32 %v2838_v23, %v2726_v50 }
 0x286   :  { %v5848_v48 = vmul.f32 0.0051020407, %v2561_v17  ;;  %v2728_v15 = vmul.f32 %v2664_v44, %v2664_v44  ;;  %v2729_v6 = vmul.f32 %v2665_v25, %v2665_v25 }
 0x287   :  { %2840 = vadd.xlane.f32.xlu0 %v2839_v49 }
 0x288   :  { %v2842_v5 = vsel %vm2326_vm0, %v2729_v6, 0.0  ;;  %v2666_v2 = vsub.f32 %v6579_v30, %v5848_v48  ;;  %v2667_v57 = vsub.f32 %v6580_v60, %v5848_v48 }
 0x289   :  { %v2565_v33 = vpop.xlane.xlu1 %2564  ;;  %v2843_v42 = vadd.f32 %v2842_v5, %v2728_v15 }
 0x28a   :  { %v5855_v56 = vmul.f32 0.0051020407, %v2565_v33  ;;  %v2730_v29 = vmul.f32 %v2666_v2, %v2666_v2  ;;  %v2731_v41 = vmul.f32 %v2667_v57, %v2667_v57 }
 0x28b   :  { %2844 = vadd.xlane.f32.xlu1 %v2843_v42 }
 0x28c   :  { %v2846_v50 = vsel %vm2326_vm0, %v2731_v41, 0.0  ;;  %v2668_v23 = vsub.f32 %v5599_v11, %v5855_v56  ;;  %v2669_v6 = vsub.f32 %v5605_v26, %v5855_v56 }
 0x28d   :  { %v2569_v44 = vpop.xlane.xlu0 %2568  ;;  %v2847_v25 = vadd.f32 %v2846_v50, %v2730_v29 }
 0x28e   :  { %v5862_v17 = vmul.f32 0.0051020407, %v2569_v44  ;;  %v2732_v49 = vmul.f32 %v2668_v23, %v2668_v23  ;;  %v2733_v60 = vmul.f32 %v2669_v6, %v2669_v6 }
 0x28f   :  { %2848 = vadd.xlane.f32.xlu0 %v2847_v25 }
 0x290   :  { %v2850_v15 = vsel %vm2326_vm0, %v2733_v60, 0.0  ;;  %v2670_v5 = vsub.f32 %v5615_v51, %v5862_v17  ;;  %v2671_v41 = vsub.f32 %v5621_v12, %v5862_v17 }
 0x291   :  { %v2573_v2 = vpop.xlane.xlu1 %2572  ;;  %v2851_v57 = vadd.f32 %v2850_v15, %v2732_v49 }
 0x292   :  { %v5869_v33 = vmul.f32 0.0051020407, %v2573_v2  ;;  %v2734_v26 = vmul.f32 %v2670_v5, %v2670_v5  ;;  %v2735_v42 = vmul.f32 %v2671_v41, %v2671_v41 }
 0x293   :  { %2852 = vadd.xlane.f32.xlu1 %v2851_v57 }
 0x294   :  { %v2854_v29 = vsel %vm2326_vm0, %v2735_v42, 0.0  ;;  %v2672_v50 = vsub.f32 %v5631_v18, %v5869_v33  ;;  %v2673_v23 = vsub.f32 %v5637_v10, %v5869_v33 }
 0x295   :  { %v2577_v6 = vpop.xlane.xlu0 %2576  ;;  %v2855_v44 = vadd.f32 %v2854_v29, %v2734_v26 }
 0x296   :  { %v5876_v25 = vmul.f32 0.0051020407, %v2577_v6  ;;  %v2736_v12 = vmul.f32 %v2672_v50, %v2672_v50  ;;  %v2737_v60 = vmul.f32 %v2673_v23, %v2673_v23  ;;  %v6581_v50 = vld [vmem:[#allocation13_spill] sm:$0xff] }
 0x297   :  { %2856 = vadd.xlane.f32.xlu0 %v2855_v44 }
 0x298   :  { %v2858_v49 = vsel %vm2326_vm0, %v2737_v60, 0.0  ;;  %v2674_v15 = vsub.f32 %v5646_v46, %v5876_v25  ;;  %v2675_v5 = vsub.f32 %v5652_v1, %v5876_v25 }
 0x299   :  { %v2581_v41 = vpop.xlane.xlu1 %2580  ;;  %v2859_v2 = vadd.f32 %v2858_v49, %v2736_v12 }
 0x29a   :  { %v5883_v57 = vmul.f32 0.0051020407, %v2581_v41  ;;  %v2738_v10 = vmul.f32 %v2674_v15, %v2674_v15  ;;  %v2739_v42 = vmul.f32 %v2675_v5, %v2675_v5 }
 0x29b   :  { %2860 = vadd.xlane.f32.xlu1 %v2859_v2 }
 0x29c   :  { %v2862_v26 = vsel %vm2326_vm0, %v2739_v42, 0.0  ;;  %v2676_v29 = vsub.f32 %v5657_v13, %v5883_v57  ;;  %v2677_v23 = vsub.f32 %v6581_v50, %v5883_v57 }
 0x29d   :  { %v2863_v6 = vadd.f32 %v2862_v26, %v2738_v10 }
 0x29e   :  { %v2740_v44 = vmul.f32 %v2676_v29, %v2676_v29  ;;  %v2741_v60 = vmul.f32 %v2677_v23, %v2677_v23 }
 0x29f   :  { %2864 = vadd.xlane.f32.xlu0 %v2863_v6 }
 0x2a0   :  { %v2866_v1 = vsel %vm2326_vm0, %v2741_v60, 0.0 }
 0x2a1   :  { %v2867_v12 = vadd.f32 %v2866_v1, %v2740_v44  ;;  %v2934_v1 = vld [vmem:[%s6470_s2] sm:$0xff] }
 0x2a3   :  { %2868 = vadd.xlane.f32.xlu1 %v2867_v12 }
 0x2b0   :  { %v2745_v49 = vpop.xlane.xlu0 %2744 }
 0x2b1   :  { %v2870_v15 = vmul.f32 0.0051020407, %v2745_v49 }
 0x2b3   :  { %v2902_v5 = vmax.f32 %v2870_v15, 0.0 }
 0x2b4   :  { %v2749_v41 = vpop.xlane.xlu1 %2748 }
 0x2b5   :  { %v2966_v2 = vadd.f32 1e-05, %v2902_v5  ;;  %v2871_v42 = vmul.f32 0.0051020407, %v2749_v41 }
 0x2b7   :  { %4125 = vrsqrt.f32 %v2966_v2  ;;  %v2903_v46 = vmax.f32 %v2871_v42, 0.0 }
 0x2b8   :  { %v2753_v51 = vpop.xlane.xlu0 %2752 }
 0x2b9   :  { %v2967_v13 = vadd.f32 1e-05, %v2903_v46  ;;  %v2872_v30 = vmul.f32 0.0051020407, %v2753_v51 }
 0x2bb   :  { %4127 = vrsqrt.f32 %v2967_v13  ;;  %v2904_v10 = vmax.f32 %v2872_v30, 0.0  ;;  %v2935_v13 = vld [vmem:[%s6470_s2 + $0x8] sm:$0xff] }
 0x2bc   :  { %v2757_v26 = vpop.xlane.xlu1 %2756 }
 0x2bd   :  { %v2968_v29 = vadd.f32 1e-05, %v2904_v10  ;;  %v2873_v50 = vmul.f32 0.0051020407, %v2757_v26 }
 0x2bf   :  { %v2905_v23 = vmax.f32 %v2873_v50, 0.0  ;;  %4129 = vrsqrt.f32 %v2968_v29  ;;  %v3062_v29 = vld [vmem:[%s6471_s3] sm:$0xff]  ;;  %v3063_v50 = vld [vmem:[%s6471_s3 + $0x8] sm:$0xff] }
 0x2c0   :  { %v2761_v6 = vpop.xlane.xlu0 %2760 }
 0x2c1   :  { %v2969_v44 = vadd.f32 1e-05, %v2905_v23  ;;  %v2874_v60 = vmul.f32 0.0051020407, %v2761_v6  ;;  %v6582_v23 = vld [vmem:[#allocation18_spill] sm:$0xff] }
 0x2c3   :  { %4131 = vrsqrt.f32 %v2969_v44  ;;  %v2906_v49 = vmax.f32 %v2874_v60, 0.0 }
 0x2c4   :  { %v4126_v12 = vpop.eup %4125  ;;  %v2765_v15 = vpop.xlane.xlu1 %2764 }
 0x2c5   :  { %v2875_v46 = vmul.f32 0.0051020407, %v2765_v15  ;;  %v3030_v51 = vmul.f32 %v4126_v12, %v2934_v1  ;;  %v2970_v41 = vadd.f32 1e-05, %v2906_v49 }
 0x2c7   :  { %v2907_v30 = vmax.f32 %v2875_v46, 0.0  ;;  %3160 = vperm.xlu0 %3931, %v3030_v51   ;;  %v3094_v26 = vmul.f32 %v3030_v51, %v5667_v55  ;;  %v2936_v55 = vld [vmem:[%s6470_s2 + $0x10] sm:$0xff]  ;;  %v2937_v46 = vld [vmem:[%s6470_s2 + $0x18] sm:$0xff] }
 0x2c8   :  { %v4128_v5 = vpop.eup %4127  ;;  %v2769_v42 = vpop.xlane.xlu0 %2768 }
 0x2c9   :  { %v2971_v2 = vadd.f32 1e-05, %v2907_v30  ;;  %v3031_v10 = vmul.f32 %v4128_v5, %v2935_v13  ;;  %v2876_v44 = vmul.f32 0.0051020407, %v2769_v42  ;;  %v3126_v12 = vsub.f32 %v3062_v29, %v3094_v26 }
 0x2cb   :  { %4133 = vrsqrt.f32 %v2971_v2  ;;  %3165 = vperm.xlu1 %3932, %v3031_v10   ;;  %v3095_v6 = vmul.f32 %v3031_v10, %v6582_v23  ;;  %v2908_v30 = vmax.f32 %v2876_v44, 0.0  ;;  %v3065_v10 = vld [vmem:[%s6471_s3 + $0x18] sm:$0xff]  ;;  %v3064_v44 = vld [vmem:[%s6471_s3 + $0x10] sm:$0xff] }
 0x2cc   :  { %4135 = vrsqrt.f32 %v2970_v41  ;;  %v2773_v60 = vpop.xlane.xlu1 %2772  ;;  %v4130_v15 = vpop.eup %4129 }
 0x2cd   :  { %v2877_v1 = vmul.f32 0.0051020407, %v2773_v60  ;;  %v3127_v49 = vsub.f32 %v3063_v50, %v3095_v6  ;;  %v3032_v2 = vmul.f32 %v4130_v15, %v2936_v55  ;;  %v2972_v29 = vadd.f32 1e-05, %v2908_v30 }
 0x2cf   :  { %v2909_v51 = vmax.f32 %v2877_v1, 0.0  ;;  %3384 = vperm.xlu1 %3932, %v3126_v12   ;;  %3389 = vperm.xlu0 %3931, %v3127_v49   ;;  %v3096_v1 = vmul.f32 %v3032_v2, %v5680_v47  ;;  %v2939_v12 = vld [vmem:[%s6470_s2 + $0x28] sm:$0xff]  ;;  %v2938_v47 = vld [vmem:[%s6470_s2 + $0x20] sm:$0xff] }
 0x2d0   :  { %v4132_v13 = vpop.eup %4131  ;;  %v2777_v41 = vpop.xlane.xlu0 %2776 }
 0x2d1   :  { %v2973_v5 = vadd.f32 1e-05, %v2909_v51  ;;  %v3033_v42 = vmul.f32 %v4132_v13, %v2937_v46  ;;  %v2878_v50 = vmul.f32 0.0051020407, %v2777_v41  ;;  %v3128_v51 = vsub.f32 %v3064_v44, %v3096_v1 }
 0x2d3   :  { %4137 = vrsqrt.f32 %v2973_v5  ;;  %3170 = vperm.xlu1 %3932, %v3032_v2   ;;  %v3097_v26 = vmul.f32 %v3033_v42, %v5687_v52  ;;  %v2910_v52 = vmax.f32 %v2878_v50, 0.0  ;;  %v3067_v5 = vld [vmem:[%s6471_s3 + $0x28] sm:$0xff] }
 0x2d4   :  { %v2781_v23 = vpop.xlane.xlu1 %2780  ;;  %4139 = vrsqrt.f32 %v2972_v29 }
 0x2d5   :  { %v2879_v6 = vmul.f32 0.0051020407, %v2781_v23  ;;  %v3129_v60 = vsub.f32 %v3065_v10, %v3097_v26  ;;  %v2974_v2 = vadd.f32 1e-05, %v2910_v52  ;;  %v2941_v23 = vld [vmem:[%s6470_s2 + $0x38] sm:$0xff] }
 0x2d6   :  { %v3069_v52 = vld [vmem:[%s6471_s3 + $0x38] sm:$0xff] }
 0x2d7   :  { %v2911_v49 = vmax.f32 %v2879_v6, 0.0  ;;  %3175 = vperm.xlu1 %3932, %v3033_v42   ;;  %3399 = vperm.xlu0 %3931, %v3129_v60  }
 0x2d8   :  { %v4134_v15 = vpop.eup %4133  ;;  %v2785_v30 = vpop.xlane.xlu0 %2784 }
 0x2d9   :  { %v4136_v55 = vpop.eup %4135  ;;  %v2975_v46 = vadd.f32 1e-05, %v2911_v49  ;;  %v3035_v13 = vmul.f32 %v4134_v15, %v2939_v12  ;;  %v2880_v26 = vmul.f32 0.0051020407, %v2785_v30 }
 0x2da   :  { %v3034_v10 = vmul.f32 %v4136_v55, %v2938_v47 }
 0x2db   :  { %4141 = vrsqrt.f32 %v2975_v46  ;;  %3394 = vperm.xlu1 %3932, %v3128_v51   ;;  %v3099_v41 = vmul.f32 %v3035_v13, %v5701_v61  ;;  %v2912_v44 = vmax.f32 %v2880_v26, 0.0  ;;  %v3066_v61 = vld [vmem:[%s6471_s3 + $0x20] sm:$0xff] }
 0x2dc   :  { %v2789_v42 = vpop.xlane.xlu1 %2788  ;;  %4143 = vrsqrt.f32 %v2974_v2  ;;  %v3098_v1 = vmul.f32 %v3034_v10, %v5694_v34  ;;  %v2940_v34 = vld [vmem:[%s6470_s2 + $0x30] sm:$0xff] }
 0x2dd   :  { %v2881_v29 = vmul.f32 0.0051020407, %v2789_v42  ;;  %v3131_v50 = vsub.f32 %v3067_v5, %v3099_v41  ;;  %v2976_v30 = vadd.f32 1e-05, %v2912_v44  ;;  %v2943_v42 = vld [vmem:[%s6470_s2 + $0x48] sm:$0xff]  ;;  %v3068_v44 = vld [vmem:[%s6471_s3 + $0x30] sm:$0xff] }
 0x2de   :  { %v3130_v51 = vsub.f32 %v3066_v61, %v3098_v1  ;;  %v2942_v61 = vld [vmem:[%s6470_s2 + $0x40] sm:$0xff] }
 0x2df   :  { %v2913_v6 = vmax.f32 %v2881_v29, 0.0  ;;  %3180 = vperm.xlu1 %3932, %v3034_v10   ;;  %3409 = vperm.xlu0 %3931, %v3131_v50  }
 0x2e0   :  { %v4138_v60 = vpop.eup %4137  ;;  %v2793_v15 = vpop.xlane.xlu0 %2792 }
 0x2e1   :  { %v2977_v12 = vadd.f32 1e-05, %v2913_v6  ;;  %v3037_v49 = vmul.f32 %v4138_v60, %v2941_v23  ;;  %v4140_v47 = vpop.eup %4139  ;;  %v2882_v5 = vmul.f32 0.0051020407, %v2793_v15  ;;  %v3071_v6 = vld [vmem:[%s6471_s3 + $0x48] sm:$0xff] }
 0x2e3   :  { %4145 = vrsqrt.f32 %v2977_v12  ;;  %3185 = vperm.xlu1 %3932, %v3035_v13   ;;  %v3101_v55 = vmul.f32 %v3037_v49, %v5715_v40  ;;  %v3036_v40 = vmul.f32 %v4140_v47, %v2940_v34  ;;  %v2914_v26 = vmax.f32 %v2882_v5, 0.0 }
 0x2e4   :  { %v2797_v46 = vpop.xlane.xlu1 %2796  ;;  %4147 = vrsqrt.f32 %v2976_v30 }
 0x2e5   :  { %v2883_v41 = vmul.f32 0.0051020407, %v2797_v46  ;;  %v3133_v2 = vsub.f32 %v3069_v52, %v3101_v55  ;;  %v3100_v12 = vmul.f32 %v3036_v40, %v5708_v39  ;;  %v2978_v52 = vadd.f32 1e-05, %v2914_v26 }
 0x2e7   :  { %v2915_v10 = vmax.f32 %v2883_v41, 0.0  ;;  %3404 = vperm.xlu1 %3932, %v3130_v51   ;;  %3419 = vperm.xlu0 %3931, %v3133_v2   ;;  %v3132_v30 = vsub.f32 %v3068_v44, %v3100_v12 }
 0x2e8   :  { %v4142_v13 = vpop.eup %4141  ;;  %v2801_v23 = vpop.xlane.xlu0 %2800 }
 0x2e9   :  { %v2979_v29 = vadd.f32 1e-05, %v2915_v10  ;;  %v3039_v50 = vmul.f32 %v4142_v13, %v2943_v42  ;;  %v4144_v15 = vpop.eup %4143  ;;  %v2884_v55 = vmul.f32 0.0051020407, %v2801_v23  ;;  %v3073_v10 = vld [vmem:[%s6471_s3 + $0x58] sm:$0xff] }
 0x2ea   :  { %v3038_v5 = vmul.f32 %v4144_v15, %v2942_v61 }
 0x2eb   :  { %4149 = vrsqrt.f32 %v2979_v29  ;;  %3190 = vperm.xlu1 %3932, %v3036_v40   ;;  %3205 = vperm.xlu0 %3931, %v3039_v50   ;;  %v3103_v60 = vmul.f32 %v3039_v50, %v5729_v54  ;;  %v2945_v54 = vld [vmem:[%s6470_s2 + $0x58] sm:$0xff]  ;;  %v2916_v39 = vmax.f32 %v2884_v55, 0.0 }
 0x2ec   :  { %v2805_v1 = vpop.xlane.xlu1 %2804  ;;  %4151 = vrsqrt.f32 %v2978_v52  ;;  %v3102_v26 = vmul.f32 %v3038_v5, %v5722_v37 }
 0x2ed   :  { %v2885_v46 = vmul.f32 0.0051020407, %v2805_v1  ;;  %v3135_v51 = vsub.f32 %v3071_v6, %v3103_v60  ;;  %v2980_v29 = vadd.f32 1e-05, %v2916_v39  ;;  %v3070_v6 = vld [vmem:[%s6471_s3 + $0x40] sm:$0xff]  ;;  %v2947_v1 = vld [vmem:[%s6470_s2 + $0x68] sm:$0xff] }
 0x2ee   :  { %v3134_v61 = vsub.f32 %v3070_v6, %v3102_v26  ;;  %v3077_v6 = vld [vmem:[%s6471_s3 + $0x78] sm:$0xff] }
 0x2ef   :  { %v2917_v34 = vmax.f32 %v2885_v46, 0.0  ;;  %3195 = vperm.xlu1 %3932, %v3037_v49   ;;  %3429 = vperm.xlu0 %3931, %v3135_v51   ;;  %v3075_v51 = vld [vmem:[%s6471_s3 + $0x68] sm:$0xff] }
 0x2f0   :  { %v4146_v47 = vpop.eup %4145  ;;  %v2809_v2 = vpop.xlane.xlu0 %2808 }
 0x2f1   :  { %v2981_v41 = vadd.f32 1e-05, %v2917_v34  ;;  %v3041_v42 = vmul.f32 %v4146_v47, %v2945_v54  ;;  %v2886_v40 = vmul.f32 0.0051020407, %v2809_v2  ;;  %v4148_v60 = vpop.eup %4147 }
 0x2f3   :  { %4153 = vrsqrt.f32 %v2981_v41  ;;  %3414 = vperm.xlu1 %3932, %v3132_v30   ;;  %3215 = vperm.xlu0 %3931, %v3041_v42   ;;  %v3105_v13 = vmul.f32 %v3041_v42, %v5743_v3  ;;  %v2944_v3 = vld [vmem:[%s6470_s2 + $0x50] sm:$0xff]  ;;  %v2918_v12 = vmax.f32 %v2886_v40, 0.0 }
 0x2f4   :  { %v2813_v49 = vpop.xlane.xlu1 %2812  ;;  %4155 = vrsqrt.f32 %v2980_v29  ;;  %v3040_v46 = vmul.f32 %v4148_v60, %v2944_v3  ;;  %v3072_v42 = vld [vmem:[%s6471_s3 + $0x50] sm:$0xff] }
 0x2f5   :  { %v2887_v50 = vmul.f32 0.0051020407, %v2813_v49  ;;  %v3137_v23 = vsub.f32 %v3073_v10, %v3105_v13  ;;  %v2982_v34 = vadd.f32 1e-05, %v2918_v12  ;;  %v2949_v10 = vld [vmem:[%s6470_s2 + $0x78] sm:$0xff] }
 0x2f6   :  { %v3104_v41 = vmul.f32 %v3040_v46, %v5736_v4 }
 0x2f7   :  { %v2919_v44 = vmax.f32 %v2887_v50, 0.0  ;;  %3200 = vperm.xlu1 %3932, %v3038_v5   ;;  %3439 = vperm.xlu0 %3931, %v3137_v23  }
 0x2f8   :  { %v4150_v37 = vpop.eup %4149  ;;  %v2817_v52 = vpop.xlane.xlu0 %2816  ;;  %v3136_v29 = vsub.f32 %v3072_v42, %v3104_v41 }
 0x2f9   :  { %v2983_v15 = vadd.f32 1e-05, %v2919_v44  ;;  %v3043_v55 = vmul.f32 %v4150_v37, %v2947_v1  ;;  %v2888_v47 = vmul.f32 0.0051020407, %v2817_v52  ;;  %v4152_v2 = vpop.eup %4151  ;;  %v3074_v52 = vld [vmem:[%s6471_s3 + $0x60] sm:$0xff] }
 0x2fb   :  { %4157 = vrsqrt.f32 %v2983_v15  ;;  %3424 = vperm.xlu1 %3932, %v3134_v61   ;;  %3225 = vperm.xlu0 %3931, %v3043_v55   ;;  %v3107_v54 = vmul.f32 %v3043_v55, %v5757_v8  ;;  %v2946_v8 = vld [vmem:[%s6470_s2 + $0x60] sm:$0xff]  ;;  %v2920_v49 = vmax.f32 %v2888_v47, 0.0  ;;  %v2951_v55 = vld [vmem:[%s6470_s2 + $0x88] sm:$0xff] }
 0x2fc   :  { %v2821_v30 = vpop.xlane.xlu1 %2820  ;;  %4159 = vrsqrt.f32 %v2982_v34  ;;  %v3042_v23 = vmul.f32 %v4152_v2, %v2946_v8 }
 0x2fd   :  { %v2889_v5 = vmul.f32 0.0051020407, %v2821_v30  ;;  %v3139_v39 = vsub.f32 %v3075_v51, %v3107_v54  ;;  %v2984_v1 = vadd.f32 1e-05, %v2920_v49 }
 0x2fe   :  { %v3106_v61 = vmul.f32 %v3042_v23, %v5750_v38 }
 0x2ff   :  { %v2921_v13 = vmax.f32 %v2889_v5, 0.0  ;;  %3210 = vperm.xlu1 %3932, %v3040_v46   ;;  %3449 = vperm.xlu0 %3931, %v3139_v39   ;;  %v3079_v39 = vld [vmem:[%s6471_s3 + $0x88] sm:$0xff] }
 0x300   :  { %v4154_v40 = vpop.eup %4153  ;;  %v2825_v26 = vpop.xlane.xlu0 %2824  ;;  %v3138_v34 = vsub.f32 %v3074_v52, %v3106_v61  ;;  %v3078_v61 = vld [vmem:[%s6471_s3 + $0x80] sm:$0xff]  ;;  %v2952_v52 = vld [vmem:[%s6470_s2 + $0x90] sm:$0xff] }
 0x301   :  { %v2985_v4 = vadd.f32 1e-05, %v2921_v13  ;;  %v3045_v50 = vmul.f32 %v4154_v40, %v2949_v10  ;;  %v2890_v3 = vmul.f32 0.0051020407, %v2825_v26  ;;  %v4156_v15 = vpop.eup %4155  ;;  %v3076_v26 = vld [vmem:[%s6471_s3 + $0x70] sm:$0xff] }
 0x303   :  { %4161 = vrsqrt.f32 %v2985_v4  ;;  %3434 = vperm.xlu1 %3932, %v3136_v29   ;;  %3235 = vperm.xlu0 %3931, %v3045_v50   ;;  %v3109_v60 = vmul.f32 %v3045_v50, %v5771_v16  ;;  %v2948_v16 = vld [vmem:[%s6470_s2 + $0x70] sm:$0xff]  ;;  %v2922_v54 = vmax.f32 %v2890_v3, 0.0  ;;  %v2950_v4 = vld [vmem:[%s6470_s2 + $0x80] sm:$0xff] }
 0x304   :  { %v2829_v44 = vpop.xlane.xlu1 %2828  ;;  %4163 = vrsqrt.f32 %v2984_v1  ;;  %v3044_v30 = vmul.f32 %v4156_v15, %v2948_v16 }
 0x305   :  { %v2891_v37 = vmul.f32 0.0051020407, %v2829_v44  ;;  %v3141_v12 = vsub.f32 %v3077_v6, %v3109_v60  ;;  %v2986_v2 = vadd.f32 1e-05, %v2922_v54  ;;  %v3081_v44 = vld [vmem:[%s6471_s3 + $0x98] sm:$0xff] }
 0x306   :  { %v3108_v49 = vmul.f32 %v3044_v30, %v5764_v21 }
 0x307   :  { %v2923_v46 = vmax.f32 %v2891_v37, 0.0  ;;  %3220 = vperm.xlu1 %3932, %v3042_v23   ;;  %3459 = vperm.xlu0 %3931, %v3141_v12  }
 0x308   :  { %v4158_v51 = vpop.eup %4157  ;;  %v2833_v5 = vpop.xlane.xlu0 %2832  ;;  %v3140_v60 = vsub.f32 %v3076_v26, %v3108_v49 }
 0x309   :  { %v2987_v38 = vadd.f32 1e-05, %v2923_v46  ;;  %v3047_v47 = vmul.f32 %v4158_v51, %v2951_v55  ;;  %v4160_v10 = vpop.eup %4159  ;;  %v2892_v8 = vmul.f32 0.0051020407, %v2833_v5 }
 0x30a   :  { %v3046_v23 = vmul.f32 %v4160_v10, %v2950_v4 }
 0x30b   :  { %4165 = vrsqrt.f32 %v2987_v38  ;;  %3444 = vperm.xlu1 %3932, %v3138_v34   ;;  %3245 = vperm.xlu0 %3931, %v3047_v47   ;;  %v3111_v41 = vmul.f32 %v3047_v47, %v5785_v59  ;;  %v2953_v59 = vld [vmem:[%s6470_s2 + $0x98] sm:$0xff]  ;;  %v2924_v6 = vmax.f32 %v2892_v8, 0.0  ;;  %v3080_v8 = vld [vmem:[%s6471_s3 + $0x90] sm:$0xff] }
 0x30c   :  { %v2837_v42 = vpop.xlane.xlu1 %2836  ;;  %4167 = vrsqrt.f32 %v2986_v2  ;;  %v3110_v15 = vmul.f32 %v3046_v23, %v5778_v62  ;;  %v3083_v2 = vld [vmem:[%s6471_s3 + $0xa8] sm:$0xff] }
 0x30d   :  { %v2893_v13 = vmul.f32 0.0051020407, %v2837_v42  ;;  %v3143_v40 = vsub.f32 %v3079_v39, %v3111_v41  ;;  %v2988_v16 = vadd.f32 1e-05, %v2924_v6 }
 0x30e   :  { %v3142_v47 = vsub.f32 %v3078_v61, %v3110_v15 }
 0x30f   :  { %v2925_v29 = vmax.f32 %v2893_v13, 0.0  ;;  %3230 = vperm.xlu1 %3932, %v3044_v30   ;;  %3469 = vperm.xlu0 %3931, %v3143_v40   ;;  %v2954_v40 = vld [vmem:[%s6470_s2 + $0xa0] sm:$0xff] }
 0x310   :  { %v4162_v50 = vpop.eup %4161  ;;  %v2841_v3 = vpop.xlane.xlu0 %2840 }
 0x311   :  { %v2989_v21 = vadd.f32 1e-05, %v2925_v29  ;;  %v3049_v1 = vmul.f32 %v4162_v50, %v2953_v59  ;;  %v4164_v55 = vpop.eup %4163  ;;  %v2894_v46 = vmul.f32 0.0051020407, %v2841_v3 }
 0x312   :  { %v3048_v30 = vmul.f32 %v4164_v55, %v2952_v52 }
 0x313   :  { %4169 = vrsqrt.f32 %v2989_v21  ;;  %3454 = vperm.xlu1 %3932, %v3140_v60   ;;  %3255 = vperm.xlu0 %3931, %v3049_v1   ;;  %v3113_v37 = vmul.f32 %v3049_v1, %v5799_v28  ;;  %v2955_v28 = vld [vmem:[%s6470_s2 + $0xa8] sm:$0xff]  ;;  %v2926_v62 = vmax.f32 %v2894_v46, 0.0  ;;  %v3082_v46 = vld [vmem:[%s6471_s3 + $0xa0] sm:$0xff] }
 0x314   :  { %v2845_v12 = vpop.xlane.xlu1 %2844  ;;  %4171 = vrsqrt.f32 %v2988_v16  ;;  %v3112_v13 = vmul.f32 %v3048_v30, %v5792_v7 }
 0x315   :  { %v2895_v51 = vmul.f32 0.0051020407, %v2845_v12  ;;  %v3145_v54 = vsub.f32 %v3081_v44, %v3113_v37  ;;  %v2990_v4 = vadd.f32 1e-05, %v2926_v62  ;;  %v3085_v44 = vld [vmem:[%s6471_s3 + $0xb8] sm:$0xff] }
 0x316   :  { %v3144_v6 = vsub.f32 %v3080_v8, %v3112_v13 }
 0x317   :  { %v2927_v38 = vmax.f32 %v2895_v51, 0.0  ;;  %3240 = vperm.xlu1 %3932, %v3046_v23   ;;  %3479 = vperm.xlu0 %3931, %v3145_v54   ;;  %v2959_v54 = vld [vmem:[%s6470_s2 + $0xc8] sm:$0xff] }
 0x318   :  { %v4166_v34 = vpop.eup %4165  ;;  %v2849_v41 = vpop.xlane.xlu0 %2848 }
 0x319   :  { %v2991_v5 = vadd.f32 1e-05, %v2927_v38  ;;  %v3051_v39 = vmul.f32 %v4166_v34, %v2955_v28  ;;  %v4168_v49 = vpop.eup %4167  ;;  %v2896_v26 = vmul.f32 0.0051020407, %v2849_v41 }
 0x31a   :  { %v3050_v21 = vmul.f32 %v4168_v49, %v2954_v40 }
 0x31b   :  { %4173 = vrsqrt.f32 %v2991_v5  ;;  %3464 = vperm.xlu1 %3932, %v3142_v47   ;;  %3265 = vperm.xlu0 %3931, %v3051_v39   ;;  %v3115_v42 = vmul.f32 %v3051_v39, %v5813_v24  ;;  %v2957_v24 = vld [vmem:[%s6470_s2 + $0xb8] sm:$0xff]  ;;  %v2928_v7 = vmax.f32 %v2896_v26, 0.0  ;;  %v3087_v39 = vld [vmem:[%s6471_s3 + $0xc8] sm:$0xff] }
 0x31c   :  { %v2853_v10 = vpop.xlane.xlu1 %2852  ;;  %4175 = vrsqrt.f32 %v2990_v4  ;;  %v3114_v15 = vmul.f32 %v3050_v21, %v5806_v22  ;;  %v3084_v4 = vld [vmem:[%s6471_s3 + $0xb0] sm:$0xff]  ;;  %v2961_v26 = vld [vmem:[%s6470_s2 + $0xd8] sm:$0xff] }
 0x31d   :  { %v2897_v59 = vmul.f32 0.0051020407, %v2853_v10  ;;  %v3147_v29 = vsub.f32 %v3083_v2, %v3115_v42  ;;  %v2992_v52 = vadd.f32 1e-05, %v2928_v7 }
 0x31e   :  { %v3146_v34 = vsub.f32 %v3082_v46, %v3114_v15 }
 0x31f   :  { %v2929_v50 = vmax.f32 %v2897_v59, 0.0  ;;  %3250 = vperm.xlu1 %3932, %v3048_v30   ;;  %3489 = vperm.xlu0 %3931, %v3147_v29  }
 0x320   :  { %v4170_v23 = vpop.eup %4169  ;;  %v2857_v1 = vpop.xlane.xlu0 %2856 }
 0x321   :  { %v2993_v60 = vadd.f32 1e-05, %v2929_v50  ;;  %v3053_v3 = vmul.f32 %v4170_v23, %v2957_v24  ;;  %v2898_v12 = vmul.f32 0.0051020407, %v2857_v1  ;;  %v4172_v51 = vpop.eup %4171 }
 0x323   :  { %4177 = vrsqrt.f32 %v2993_v60  ;;  %3474 = vperm.xlu1 %3932, %v3144_v6   ;;  %3275 = vperm.xlu0 %3931, %v3053_v3   ;;  %v3117_v37 = vmul.f32 %v3053_v3, %v5827_v35  ;;  %v2956_v35 = vld [vmem:[%s6470_s2 + $0xb0] sm:$0xff]  ;;  %v2930_v38 = vmax.f32 %v2898_v12, 0.0  ;;  %v2963_v12 = vld [vmem:[%s6470_s2 + $0xe8] sm:$0xff] }
 0x324   :  { %v2861_v61 = vpop.xlane.xlu1 %2860  ;;  %4179 = vrsqrt.f32 %v2992_v52  ;;  %v3052_v5 = vmul.f32 %v4172_v51, %v2956_v35  ;;  %v2962_v35 = vld [vmem:[%s6470_s2 + $0xe0] sm:$0xff] }
 0x325   :  { %v2899_v55 = vmul.f32 0.0051020407, %v2861_v61  ;;  %v3149_v16 = vsub.f32 %v3085_v44, %v3117_v37  ;;  %v2994_v2 = vadd.f32 1e-05, %v2930_v38  ;;  %v3086_v37 = vld [vmem:[%s6471_s3 + $0xc0] sm:$0xff]  ;;  %v2960_v61 = vld [vmem:[%s6470_s2 + $0xd0] sm:$0xff] }
 0x326   :  { %v3116_v40 = vmul.f32 %v3052_v5, %v5820_v27 }
 0x327   :  { %v2931_v28 = vmax.f32 %v2899_v55, 0.0  ;;  %3260 = vperm.xlu1 %3932, %v3050_v21   ;;  %3499 = vperm.xlu0 %3931, %v3149_v16   ;;  %v3089_v21 = vld [vmem:[%s6471_s3 + $0xd8] sm:$0xff]  ;;  %v3091_v55 = vld [vmem:[%s6471_s3 + $0xe8] sm:$0xff] }
 0x328   :  { %v4174_v22 = vpop.eup %4173  ;;  %v2865_v30 = vpop.xlane.xlu0 %2864  ;;  %v3148_v50 = vsub.f32 %v3084_v4, %v3116_v40  ;;  %v6583_v40 = vld [vmem:[#allocation19_spill] sm:$0xff]  ;;  %v6584_v4 = vld [vmem:[#allocation20_spill] sm:$0xff] }
 0x329   :  { %v2995_v47 = vadd.f32 1e-05, %v2931_v28  ;;  %v3055_v62 = vmul.f32 %v4174_v22, %v2959_v54  ;;  %v2900_v42 = vmul.f32 0.0051020407, %v2865_v30  ;;  %v4176_v49 = vpop.eup %4175  ;;  %v3088_v28 = vld [vmem:[%s6471_s3 + $0xd0] sm:$0xff]  ;;  %v2965_v22 = vld [vmem:[%s6470_s2 + $0xf8] sm:$0xff] }
 0x32b   :  { %4181 = vrsqrt.f32 %v2995_v47  ;;  %3484 = vperm.xlu1 %3932, %v3146_v34   ;;  %3285 = vperm.xlu0 %3931, %v3055_v62   ;;  %v3119_v41 = vmul.f32 %v3055_v62, %v5841_v36  ;;  %v2958_v36 = vld [vmem:[%s6470_s2 + $0xc0] sm:$0xff]  ;;  %v2932_v24 = vmax.f32 %v2900_v42, 0.0 }
 0x32c   :  { %v2869_v10 = vpop.xlane.xlu1 %2868  ;;  %4183 = vrsqrt.f32 %v2994_v2  ;;  %v3054_v6 = vmul.f32 %v4176_v49, %v2958_v36  ;;  %v2964_v2 = vld [vmem:[%s6470_s2 + $0xf0] sm:$0xff]  ;;  %v4190_v36 = vld [vmem:[%s6469_s4 + $0x18] sm:$0xff] }
 0x32d   :  { %v2901_v8 = vmul.f32 0.0051020407, %v2869_v10  ;;  %v3151_v13 = vsub.f32 %v3087_v39, %v3119_v41  ;;  %v2996_v60 = vadd.f32 1e-05, %v2932_v24  ;;  %v3090_v41 = vld [vmem:[%s6471_s3 + $0xe0] sm:$0xff] }
 0x32e   :  { %v3118_v3 = vmul.f32 %v3054_v6, %v5834_v31 }
 0x32f   :  { %v2933_v59 = vmax.f32 %v2901_v8, 0.0  ;;  %3270 = vperm.xlu1 %3932, %v3052_v5   ;;  %3509 = vperm.xlu0 %3931, %v3151_v13  }
 0x330   :  { %v4178_v29 = vpop.eup %4177  ;;  %v3150_v15 = vsub.f32 %v3086_v37, %v3118_v3  ;;  %v4191_v37 = vld [vmem:[%s6469_s4 + $0x38] sm:$0xff] }
 0x331   :  { %v2997_v27 = vadd.f32 1e-05, %v2933_v59  ;;  %v3057_v23 = vmul.f32 %v4178_v29, %v2961_v26  ;;  %v4180_v44 = vpop.eup %4179 }
 0x332   :  { %v3056_v31 = vmul.f32 %v4180_v44, %v2960_v61 }
 0x333   :  { %4185 = vrsqrt.f32 %v2997_v27  ;;  %3494 = vperm.xlu1 %3932, %v3148_v50   ;;  %3295 = vperm.xlu0 %3931, %v3057_v23   ;;  %v3121_v7 = vmul.f32 %v3057_v23, %v5855_v56 }
 0x334   :  { %4187 = vrsqrt.f32 %v2996_v60  ;;  %v3120_v54 = vmul.f32 %v3056_v31, %v5848_v48  ;;  %v3093_v48 = vld [vmem:[%s6471_s3 + $0xf8] sm:$0xff]  ;;  %v3092_v60 = vld [vmem:[%s6471_s3 + $0xf0] sm:$0xff] }
 0x335   :  { %v3153_v1 = vsub.f32 %v3089_v21, %v3121_v7 }
 0x336   :  { %v3152_v34 = vsub.f32 %v3088_v28, %v3120_v54 }
 0x337   :  { %3280 = vperm.xlu1 %3932, %v3054_v6   ;;  %3519 = vperm.xlu0 %3931, %v3153_v1  }
 0x338   :  { %v4182_v56 = vpop.eup %4181 }
 0x339   :  { %v3059_v52 = vmul.f32 %v4182_v56, %v2963_v12  ;;  %v4184_v46 = vpop.eup %4183 }
 0x33b   :  { %3504 = vperm.xlu1 %3932, %v3150_v15   ;;  %3305 = vperm.xlu0 %3931, %v3059_v52   ;;  %v3123_v16 = vmul.f32 %v3059_v52, %v5869_v33  ;;  %v3058_v33 = vmul.f32 %v4184_v46, %v2962_v35  ;;  %v4193_v35 = vld [vmem:[%s6469_s4 + $0x58] sm:$0xff] }
 0x33d   :  { %v3155_v51 = vsub.f32 %v3091_v55, %v3123_v16  ;;  %v3122_v62 = vmul.f32 %v3058_v33, %v5862_v17  ;;  %v4189_v17 = vld [vmem:[%s6469_s4 + $0x8] sm:$0xff] }
 0x33f   :  { %3290 = vperm.xlu1 %3932, %v3056_v31   ;;  %3529 = vperm.xlu0 %3931, %v3155_v51   ;;  %v3154_v8 = vsub.f32 %v3090_v41, %v3122_v62  ;;  %v4195_v41 = vld [vmem:[%s6469_s4 + $0x98] sm:$0xff] }
 0x340   :  { %v4186_v38 = vpop.eup %4185 }
 0x341   :  { %v3061_v47 = vmul.f32 %v4186_v38, %v2965_v22  ;;  %v4188_v5 = vpop.eup %4187  ;;  %v4194_v38 = vld [vmem:[%s6469_s4 + $0x48] sm:$0xff] }
 0x342   :  { %v3161_v42 = vpop.permute.xlu0 %3160  ;;  %v3060_v13 = vmul.f32 %v4188_v5, %v2964_v2 }
 0x343   :  { %3514 = vperm.xlu1 %3932, %v3152_v34   ;;  %3315 = vperm.xlu0 %3931, %v3061_v47   ;;  %v3125_v30 = vmul.f32 %v3061_v47, %v5883_v57  ;;  %v3318_v57 = vmul.f32 %v3161_v42, %v6583_v40  ;;  %v3319_v49 = vmul.f32 %v4189_v17, %v3161_v42 }
 0x344   :  { %v3124_v21 = vmul.f32 %v3060_v13, %v5876_v25  ;;  %v4192_v25 = vld [vmem:[%s6469_s4 + $0x28] sm:$0xff] }
 0x345   :  { %v3157_v39 = vsub.f32 %v3093_v48, %v3125_v30 }
 0x346   :  { %v3166_v10 = vpop.permute.xlu1 %3165  ;;  %v3156_v1 = vsub.f32 %v3092_v60, %v3124_v21  ;;  %v4199_v60 = vld [vmem:[%s6469_s4 + $0x88] sm:$0xff] }
 0x347   :  { %3300 = vperm.xlu1 %3932, %v3058_v33   ;;  %3539 = vperm.xlu0 %3931, %v3157_v39   ;;  %v3320_v26 = vmul.f32 %v3166_v10, %v6584_v4  ;;  %v3321_v59 = vmul.f32 %v4190_v36, %v3166_v10 }
 0x34a   :  { %v3390_v29 = vpop.permute.xlu0 %3389  ;;  %v3385_v24 = vpop.permute.xlu1 %3384 }
 0x34b   :  { %v3544_v27 = vadd.f32 %v3390_v29, %v3320_v26  ;;  %v3545_v50 = vadd.f32 %v3390_v29, %v3321_v59  ;;  %v3542_v23 = vadd.f32 %v3385_v24, %v3318_v57  ;;  %v3543_v6 = vadd.f32 %v3385_v24, %v3319_v49  ;;  %3524 = vperm.xlu1 %3932, %v3154_v8   ;;  %v4196_v57 = vld [vmem:[%s6469_s4 + $0x78] sm:$0xff] }
 0x34d   :  { %3608 = vst [vmem:[%s6469_s4 + $0x10] sm:$0xff] %v3544_v27  ;;  %3609 = vst.msk [vmem:[%s6469_s4 + $0x18] sm:$0xff] %vm2326_vm0, %v3545_v50  ;;  %v4198_v27 = vld [vmem:[%s6469_s4 + $0xb8] sm:$0xff] }
 0x34e   :  { %3606 = vst [vmem:[%s6469_s4] sm:$0xff] %v3542_v23  ;;  %3607 = vst.msk [vmem:[%s6469_s4 + $0x8] sm:$0xff] %vm2326_vm0, %v3543_v6  ;;  %v3171_v7 = vpop.permute.xlu1 %3170 }
 0x34f   :  { %3310 = vperm.xlu1 %3932, %v3060_v13   ;;  %v3322_v56 = vmul.f32 %v3171_v7, %v5199_v0  ;;  %v3323_v15 = vmul.f32 %v4192_v25, %v3171_v7 }
 0x352   :  { %v3176_v3 = vpop.permute.xlu1 %3175  ;;  %v3400_v61 = vpop.permute.xlu0 %3399 }
 0x353   :  { %v3324_v44 = vmul.f32 %v3176_v3, %v5215_v14  ;;  %v3325_v12 = vmul.f32 %v4191_v37, %v3176_v3  ;;  %3534 = vperm.xlu1 %3932, %v3156_v1  }
 0x355   :  { %v3548_v52 = vadd.f32 %v3400_v61, %v3324_v44  ;;  %v3549_v31 = vadd.f32 %v3400_v61, %v3325_v12 }
 0x356   :  { %v3395_v55 = vpop.permute.xlu1 %3394 }
 0x357   :  { %3612 = vst [vmem:[%s6469_s4 + $0x30] sm:$0xff] %v3548_v52  ;;  %3613 = vst.msk [vmem:[%s6469_s4 + $0x38] sm:$0xff] %vm2326_vm0, %v3549_v31  ;;  %v3546_v14 = vadd.f32 %v3395_v55, %v3322_v56  ;;  %v3547_v16 = vadd.f32 %v3395_v55, %v3323_v15  ;;  %v4200_v56 = vld [vmem:[%s6469_s4 + $0xd8] sm:$0xff]  ;;  %v4201_v55 = vld [vmem:[%s6469_s4 + $0xa8] sm:$0xff] }
 0x359   :  { %3610 = vst [vmem:[%s6469_s4 + $0x20] sm:$0xff] %v3546_v14  ;;  %3611 = vst.msk [vmem:[%s6469_s4 + $0x28] sm:$0xff] %vm2326_vm0, %v3547_v16 }
 0x35a   :  { %v3181_v0 = vpop.permute.xlu1 %3180  ;;  %v3410_v46 = vpop.permute.xlu0 %3409 }
 0x35b   :  { %v3326_v22 = vmul.f32 %v3181_v0, %v5231_v43  ;;  %v3327_v33 = vmul.f32 %v4194_v38, %v3181_v0 }
 0x35e   :  { %v3186_v51 = vpop.permute.xlu1 %3185 }
 0x35f   :  { %v3328_v54 = vmul.f32 %v3186_v51, %v5247_v53  ;;  %v3329_v28 = vmul.f32 %v4193_v35, %v3186_v51 }
 0x361   :  { %v3552_v34 = vadd.f32 %v3410_v46, %v3328_v54  ;;  %v3553_v47 = vadd.f32 %v3410_v46, %v3329_v28  ;;  %v6585_v54 = vld [vmem:[#allocation23_spill] sm:$0xff]  ;;  %v4202_v28 = vld [vmem:[%s6469_s4 + $0xf8] sm:$0xff] }
 0x362   :  { %v3420_v48 = vpop.permute.xlu0 %3419  ;;  %v3405_v30 = vpop.permute.xlu1 %3404 }
 0x363   :  { %3616 = vst [vmem:[%s6469_s4 + $0x50] sm:$0xff] %v3552_v34  ;;  %3617 = vst.msk [vmem:[%s6469_s4 + $0x58] sm:$0xff] %vm2326_vm0, %v3553_v47  ;;  %v3550_v53 = vadd.f32 %v3405_v30, %v3326_v22  ;;  %v3551_v43 = vadd.f32 %v3405_v30, %v3327_v33  ;;  %v6586_v47 = vld [vmem:[#allocation21_spill] sm:$0xff]  ;;  %v4203_v30 = vld [vmem:[%s6469_s4 + $0xc8] sm:$0xff] }
 0x365   :  { %3614 = vst [vmem:[%s6469_s4 + $0x40] sm:$0xff] %v3550_v53  ;;  %3615 = vst.msk [vmem:[%s6469_s4 + $0x48] sm:$0xff] %vm2326_vm0, %v3551_v43 }
 0x366   :  { %v3206_v62 = vpop.permute.xlu0 %3205  ;;  %v3191_v5 = vpop.permute.xlu1 %3190 }
 0x367   :  { %v3336_v39 = vmul.f32 %v3206_v62, %v5311_v32  ;;  %v3337_v2 = vmul.f32 %v4195_v41, %v3206_v62  ;;  %v3330_v49 = vmul.f32 %v3191_v5, %v5263_v63  ;;  %v4197_v32 = vld [vmem:[%s6469_s4 + $0x68] sm:$0xff]  ;;  %v6587_v41 = vld [vmem:[#allocation25_spill] sm:$0xff] }
 0x368   :  { %v3331_v4 = vmul.f32 %v4197_v32, %v3191_v5  ;;  %v4205_v32 = vld [vmem:[%s6469_s4 + $0xe8] sm:$0xff] }
 0x36a   :  { %v3430_v42 = vpop.permute.xlu0 %3429  ;;  %v3196_v10 = vpop.permute.xlu1 %3195 }
 0x36b   :  { %v3560_v8 = vadd.f32 %v3430_v42, %v3336_v39  ;;  %v3561_v13 = vadd.f32 %v3430_v42, %v3337_v2  ;;  %v3332_v40 = vmul.f32 %v3196_v10, %v5279_v9  ;;  %v3333_v17 = vmul.f32 %v4196_v57, %v3196_v10  ;;  %v4204_v42 = vld [vmem:[%s6469_s4 + $0x118] sm:$0xff] }
 0x36d   :  { %3624 = vst [vmem:[%s6469_s4 + $0x90] sm:$0xff] %v3560_v8  ;;  %3625 = vst.msk [vmem:[%s6469_s4 + $0x98] sm:$0xff] %vm2326_vm0, %v3561_v13  ;;  %v3556_v9 = vadd.f32 %v3420_v48, %v3332_v40  ;;  %v3557_v26 = vadd.f32 %v3420_v48, %v3333_v17  ;;  %v6588_v17 = vld [vmem:[#allocation22_spill] sm:$0xff] }
 0x36e   :  { %v3216_v36 = vpop.permute.xlu0 %3215  ;;  %v3415_v59 = vpop.permute.xlu1 %3414 }
 0x36f   :  { %3620 = vst [vmem:[%s6469_s4 + $0x70] sm:$0xff] %v3556_v9  ;;  %3621 = vst.msk [vmem:[%s6469_s4 + $0x78] sm:$0xff] %vm2326_vm0, %v3557_v26  ;;  %v3554_v63 = vadd.f32 %v3415_v59, %v3330_v49  ;;  %v3555_v29 = vadd.f32 %v3415_v59, %v3331_v4  ;;  %v3340_v24 = vmul.f32 %v3216_v36, %v5343_v58 }
 0x370   :  { %v3341_v50 = vmul.f32 %v4198_v27, %v3216_v36 }
 0x371   :  { %3618 = vst [vmem:[%s6469_s4 + $0x60] sm:$0xff] %v3554_v63  ;;  %3619 = vst.msk [vmem:[%s6469_s4 + $0x68] sm:$0xff] %vm2326_vm0, %v3555_v29  ;;  %v6589_v63 = vld [vmem:[#allocation27_spill] sm:$0xff] }
 0x372   :  { %v3440_v23 = vpop.permute.xlu0 %3439  ;;  %v3201_v6 = vpop.permute.xlu1 %3200 }
 0x373   :  { %v3564_v21 = vadd.f32 %v3440_v23, %v3340_v24  ;;  %v3565_v7 = vadd.f32 %v3440_v23, %v3341_v50  ;;  %v3334_v58 = vmul.f32 %v3201_v6, %v5295_v20  ;;  %v3335_v1 = vmul.f32 %v4199_v60, %v3201_v6  ;;  %v4206_v24 = vld [vmem:[%s6469_s4 + $0x138] sm:$0xff]  ;;  %v4207_v60 = vld [vmem:[%s6469_s4 + $0x108] sm:$0xff] }
 0x375   :  { %3628 = vst [vmem:[%s6469_s4 + $0xb0] sm:$0xff] %v3564_v21  ;;  %3629 = vst.msk [vmem:[%s6469_s4 + $0xb8] sm:$0xff] %vm2326_vm0, %v3565_v7  ;;  %v6590_v7 = vld [vmem:[#allocation24_spill] sm:$0xff] }
 0x376   :  { %v3226_v3 = vpop.permute.xlu0 %3225  ;;  %v3425_v44 = vpop.permute.xlu1 %3424 }
 0x377   :  { %v3558_v37 = vadd.f32 %v3425_v44, %v3334_v58  ;;  %v3559_v12 = vadd.f32 %v3425_v44, %v3335_v1  ;;  %v3344_v61 = vmul.f32 %v3226_v3, %v5375_v19  ;;  %v3345_v25 = vmul.f32 %v4200_v56, %v3226_v3 }
 0x379   :  { %3622 = vst [vmem:[%s6469_s4 + $0x80] sm:$0xff] %v3558_v37  ;;  %3623 = vst.msk [vmem:[%s6469_s4 + $0x88] sm:$0xff] %vm2326_vm0, %v3559_v12 }
 0x37a   :  { %v3450_v20 = vpop.permute.xlu0 %3449  ;;  %v3211_v15 = vpop.permute.xlu1 %3210 }
 0x37b   :  { %v3568_v52 = vadd.f32 %v3450_v20, %v3344_v61  ;;  %v3569_v31 = vadd.f32 %v3450_v20, %v3345_v25  ;;  %v3338_v19 = vmul.f32 %v3211_v15, %v5327_v45  ;;  %v3339_v14 = vmul.f32 %v4201_v55, %v3211_v15  ;;  %v6591_v61 = vld [vmem:[#allocation30_spill] sm:$0xff]  ;;  %v4208_v25 = vld [vmem:[%s6469_s4 + $0x158] sm:$0xff] }
 0x37c   :  { %v6592_v55 = vld [vmem:[#allocation26_spill] sm:$0xff] }
 0x37d   :  { %3632 = vst [vmem:[%s6469_s4 + $0xd0] sm:$0xff] %v3568_v52  ;;  %3633 = vst.msk [vmem:[%s6469_s4 + $0xd8] sm:$0xff] %vm2326_vm0, %v3569_v31 }
 0x37e   :  { %v3236_v16 = vpop.permute.xlu0 %3235  ;;  %v3435_v0 = vpop.permute.xlu1 %3434 }
 0x37f   :  { %v3562_v46 = vadd.f32 %v3435_v0, %v3338_v19  ;;  %v3563_v51 = vadd.f32 %v3435_v0, %v3339_v14  ;;  %v3348_v35 = vmul.f32 %v3236_v16, %v6585_v54  ;;  %v3349_v22 = vmul.f32 %v4202_v28, %v3236_v16  ;;  %v4209_v16 = vld [vmem:[%s6469_s4 + $0x128] sm:$0xff]  ;;  %v6593_v28 = vld [vmem:[#allocation6_spill] sm:$0xff] }
 0x381   :  { %3626 = vst [vmem:[%s6469_s4 + $0xa0] sm:$0xff] %v3562_v46  ;;  %3627 = vst.msk [vmem:[%s6469_s4 + $0xa8] sm:$0xff] %vm2326_vm0, %v3563_v51 }
 0x382   :  { %v3460_v45 = vpop.permute.xlu0 %3459  ;;  %v3221_v38 = vpop.permute.xlu1 %3220 }
 0x383   :  { %v3572_v33 = vadd.f32 %v3460_v45, %v3348_v35  ;;  %v3573_v34 = vadd.f32 %v3460_v45, %v3349_v22  ;;  %v3342_v48 = vmul.f32 %v3221_v38, %v6586_v47  ;;  %v3343_v53 = vmul.f32 %v4203_v30, %v3221_v38  ;;  %v4210_v45 = vld [vmem:[%s6469_s4 + $0x178] sm:$0xff]  ;;  %v6594_v30 = vld [vmem:[#allocation28_spill] sm:$0xff] }
 0x385   :  { %3636 = vst [vmem:[%s6469_s4 + $0xf0] sm:$0xff] %v3572_v33  ;;  %3637 = vst.msk [vmem:[%s6469_s4 + $0xf8] sm:$0xff] %vm2326_vm0, %v3573_v34 }
 0x386   :  { %v3246_v43 = vpop.permute.xlu0 %3245  ;;  %v3445_v62 = vpop.permute.xlu1 %3444 }
 0x387   :  { %v3566_v5 = vadd.f32 %v3445_v62, %v3342_v48  ;;  %v3567_v39 = vadd.f32 %v3445_v62, %v3343_v53  ;;  %v3352_v2 = vmul.f32 %v3246_v43, %v6587_v41  ;;  %v3353_v10 = vmul.f32 %v4204_v42, %v3246_v43  ;;  %v4211_v43 = vld [vmem:[%s6469_s4 + $0x148] sm:$0xff]  ;;  %v6595_v42 = vld [vmem:[#allocation10_spill] sm:$0xff] }
 0x389   :  { %3630 = vst [vmem:[%s6469_s4 + $0xc0] sm:$0xff] %v3566_v5  ;;  %3631 = vst.msk [vmem:[%s6469_s4 + $0xc8] sm:$0xff] %vm2326_vm0, %v3567_v39 }
 0x38a   :  { %v3470_v8 = vpop.permute.xlu0 %3469  ;;  %v3231_v13 = vpop.permute.xlu1 %3230 }
 0x38b   :  { %v3576_v40 = vadd.f32 %v3470_v8, %v3352_v2  ;;  %v3577_v57 = vadd.f32 %v3470_v8, %v3353_v10  ;;  %v3346_v49 = vmul.f32 %v3231_v13, %v6588_v17  ;;  %v3347_v4 = vmul.f32 %v4205_v32, %v3231_v13  ;;  %v4212_v8 = vld [vmem:[%s6469_s4 + $0x198] sm:$0xff]  ;;  %v6596_v32 = vld [vmem:[#allocation4_spill] sm:$0xff] }
 0x38d   :  { %3640 = vst [vmem:[%s6469_s4 + $0x110] sm:$0xff] %v3576_v40  ;;  %3641 = vst.msk [vmem:[%s6469_s4 + $0x118] sm:$0xff] %vm2326_vm0, %v3577_v57 }
 0x38e   :  { %v3256_v9 = vpop.permute.xlu0 %3255  ;;  %v3455_v26 = vpop.permute.xlu1 %3454 }
 0x38f   :  { %v3570_v36 = vadd.f32 %v3455_v26, %v3346_v49  ;;  %v3571_v59 = vadd.f32 %v3455_v26, %v3347_v4  ;;  %v3356_v29 = vmul.f32 %v3256_v9, %v6589_v63  ;;  %v3357_v27 = vmul.f32 %v4206_v24, %v3256_v9  ;;  %v4213_v9 = vld [vmem:[%s6469_s4 + $0x168] sm:$0xff] }
 0x391   :  { %3634 = vst [vmem:[%s6469_s4 + $0xe0] sm:$0xff] %v3570_v36  ;;  %3635 = vst.msk [vmem:[%s6469_s4 + $0xe8] sm:$0xff] %vm2326_vm0, %v3571_v59 }
 0x392   :  { %v3480_v50 = vpop.permute.xlu0 %3479  ;;  %v3241_v23 = vpop.permute.xlu1 %3240 }
 0x393   :  { %v3580_v6 = vadd.f32 %v3480_v50, %v3356_v29  ;;  %v3581_v21 = vadd.f32 %v3480_v50, %v3357_v27  ;;  %v3350_v58 = vmul.f32 %v3241_v23, %v6590_v7  ;;  %v3351_v1 = vmul.f32 %v4207_v60, %v3241_v23  ;;  %v4214_v27 = vld [vmem:[%s6469_s4 + $0x1b8] sm:$0xff]  ;;  %v4215_v60 = vld [vmem:[%s6469_s4 + $0x188] sm:$0xff] }
 0x395   :  { %3644 = vst [vmem:[%s6469_s4 + $0x130] sm:$0xff] %v3580_v6  ;;  %3645 = vst.msk [vmem:[%s6469_s4 + $0x138] sm:$0xff] %vm2326_vm0, %v3581_v21 }
 0x396   :  { %v3266_v3 = vpop.permute.xlu0 %3265  ;;  %v3465_v44 = vpop.permute.xlu1 %3464 }
 0x397   :  { %v3574_v37 = vadd.f32 %v3465_v44, %v3350_v58  ;;  %v3575_v12 = vadd.f32 %v3465_v44, %v3351_v1  ;;  %v3360_v56 = vmul.f32 %v3266_v3, %v6591_v61  ;;  %v3361_v20 = vmul.f32 %v4208_v25, %v3266_v3 }
 0x399   :  { %3638 = vst [vmem:[%s6469_s4 + $0x100] sm:$0xff] %v3574_v37  ;;  %3639 = vst.msk [vmem:[%s6469_s4 + $0x108] sm:$0xff] %vm2326_vm0, %v3575_v12 }
 0x39a   :  { %v3490_v15 = vpop.permute.xlu0 %3489  ;;  %v3251_v52 = vpop.permute.xlu1 %3250 }
 0x39b   :  { %v3584_v31 = vadd.f32 %v3490_v15, %v3360_v56  ;;  %v3585_v19 = vadd.f32 %v3490_v15, %v3361_v20  ;;  %v3354_v14 = vmul.f32 %v3251_v52, %v6592_v55  ;;  %v3355_v0 = vmul.f32 %v4209_v16, %v3251_v52  ;;  %v4216_v56 = vld [vmem:[%s6469_s4 + $0x1d8] sm:$0xff]  ;;  %v4217_v55 = vld [vmem:[%s6469_s4 + $0x1a8] sm:$0xff] }
 0x39d   :  { %3648 = vst [vmem:[%s6469_s4 + $0x150] sm:$0xff] %v3584_v31  ;;  %3649 = vst.msk [vmem:[%s6469_s4 + $0x158] sm:$0xff] %vm2326_vm0, %v3585_v19 }
 0x39e   :  { %v3276_v46 = vpop.permute.xlu0 %3275  ;;  %v3475_v51 = vpop.permute.xlu1 %3474 }
 0x39f   :  { %v3578_v54 = vadd.f32 %v3475_v51, %v3354_v14  ;;  %v3579_v35 = vadd.f32 %v3475_v51, %v3355_v0  ;;  %v3364_v22 = vmul.f32 %v3276_v46, %v6593_v28  ;;  %v3365_v38 = vmul.f32 %v4210_v45, %v3276_v46  ;;  %v4218_v28 = vld [vmem:[%s6469_s4 + $0x1f8] sm:$0xff] }
 0x3a1   :  { %3642 = vst [vmem:[%s6469_s4 + $0x120] sm:$0xff] %v3578_v54  ;;  %3643 = vst.msk [vmem:[%s6469_s4 + $0x128] sm:$0xff] %vm2326_vm0, %v3579_v35  ;;  %v6599_v54 = vld [vmem:[#allocation16_spill] sm:$0xff] }
 0x3a2   :  { %v3500_v33 = vpop.permute.xlu0 %3499  ;;  %v3261_v34 = vpop.permute.xlu1 %3260 }
 0x3a3   :  { %v3588_v47 = vadd.f32 %v3500_v33, %v3364_v22  ;;  %v3589_v48 = vadd.f32 %v3500_v33, %v3365_v38  ;;  %v3358_v53 = vmul.f32 %v3261_v34, %v6594_v30  ;;  %v3359_v62 = vmul.f32 %v4211_v43, %v3261_v34  ;;  %v4219_v30 = vld [vmem:[%s6469_s4 + $0x1c8] sm:$0xff] }
 0x3a5   :  { %3652 = vst [vmem:[%s6469_s4 + $0x170] sm:$0xff] %v3588_v47  ;;  %3653 = vst.msk [vmem:[%s6469_s4 + $0x178] sm:$0xff] %vm2326_vm0, %v3589_v48  ;;  %v6600_v47 = vld [vmem:[#allocation14_spill] sm:$0xff] }
 0x3a6   :  { %v3286_v5 = vpop.permute.xlu0 %3285  ;;  %v3485_v39 = vpop.permute.xlu1 %3484 }
 0x3a7   :  { %v3582_v41 = vadd.f32 %v3485_v39, %v3358_v53  ;;  %v3583_v2 = vadd.f32 %v3485_v39, %v3359_v62  ;;  %v3368_v10 = vmul.f32 %v3286_v5, %v6595_v42  ;;  %v3369_v13 = vmul.f32 %v4212_v8, %v3286_v5  ;;  %v4220_v42 = vld [vmem:[%s6469_s4 + $0x1e8] sm:$0xff] }
 0x3a9   :  { %3646 = vst [vmem:[%s6469_s4 + $0x140] sm:$0xff] %v3582_v41  ;;  %3647 = vst.msk [vmem:[%s6469_s4 + $0x148] sm:$0xff] %vm2326_vm0, %v3583_v2  ;;  %v6601_v41 = vld [vmem:[#allocation11_spill] sm:$0xff] }
 0x3aa   :  { %v3510_v40 = vpop.permute.xlu0 %3509  ;;  %v3271_v57 = vpop.permute.xlu1 %3270 }
 0x3ab   :  { %v3592_v17 = vadd.f32 %v3510_v40, %v3368_v10  ;;  %v3593_v49 = vadd.f32 %v3510_v40, %v3369_v13  ;;  %v3362_v4 = vmul.f32 %v3271_v57, %v6596_v32  ;;  %v3363_v26 = vmul.f32 %v4213_v9, %v3271_v57 }
 0x3ad   :  { %3656 = vst [vmem:[%s6469_s4 + $0x190] sm:$0xff] %v3592_v17  ;;  %3657 = vst.msk [vmem:[%s6469_s4 + $0x198] sm:$0xff] %vm2326_vm0, %v3593_v49 }
 0x3ae   :  { %v3296_v36 = vpop.permute.xlu0 %3295  ;;  %v3495_v59 = vpop.permute.xlu1 %3494 }
 0x3af   :  { %v3586_v63 = vadd.f32 %v3495_v59, %v3362_v4  ;;  %v3587_v29 = vadd.f32 %v3495_v59, %v3363_v26  ;;  %v3372_v24 = vmul.f32 %v3296_v36, %v5599_v11  ;;  %v3373_v50 = vmul.f32 %v4214_v27, %v3296_v36  ;;  %v6597_v11 = vld [vmem:[#allocation8_spill] sm:$0xff] }
 0x3b1   :  { %3650 = vst [vmem:[%s6469_s4 + $0x160] sm:$0xff] %v3586_v63  ;;  %3651 = vst.msk [vmem:[%s6469_s4 + $0x168] sm:$0xff] %vm2326_vm0, %v3587_v29 }
 0x3b2   :  { %v3520_v23 = vpop.permute.xlu0 %3519  ;;  %v3281_v6 = vpop.permute.xlu1 %3280 }
 0x3b3   :  { %v3596_v21 = vadd.f32 %v3520_v23, %v3372_v24  ;;  %v3597_v7 = vadd.f32 %v3520_v23, %v3373_v50  ;;  %v3366_v58 = vmul.f32 %v3281_v6, %v6597_v11  ;;  %v3367_v1 = vmul.f32 %v4215_v60, %v3281_v6 }
 0x3b5   :  { %3660 = vst [vmem:[%s6469_s4 + $0x1b0] sm:$0xff] %v3596_v21  ;;  %3661 = vst.msk [vmem:[%s6469_s4 + $0x1b8] sm:$0xff] %vm2326_vm0, %v3597_v7 }
 0x3b6   :  { %v3306_v3 = vpop.permute.xlu0 %3305  ;;  %v3505_v44 = vpop.permute.xlu1 %3504 }
 0x3b7   :  { %v3590_v37 = vadd.f32 %v3505_v44, %v3366_v58  ;;  %v3591_v12 = vadd.f32 %v3505_v44, %v3367_v1  ;;  %v3376_v61 = vmul.f32 %v3306_v3, %v5631_v18  ;;  %v3377_v25 = vmul.f32 %v4216_v56, %v3306_v3  ;;  %v6598_v18 = vld [vmem:[#allocation12_spill] sm:$0xff] }
 0x3b9   :  { %3654 = vst [vmem:[%s6469_s4 + $0x180] sm:$0xff] %v3590_v37  ;;  %3655 = vst.msk [vmem:[%s6469_s4 + $0x188] sm:$0xff] %vm2326_vm0, %v3591_v12 }
 0x3ba   :  { %v3530_v20 = vpop.permute.xlu0 %3529  ;;  %v3291_v15 = vpop.permute.xlu1 %3290 }
 0x3bb   :  { %v3600_v52 = vadd.f32 %v3530_v20, %v3376_v61  ;;  %v3601_v31 = vadd.f32 %v3530_v20, %v3377_v25  ;;  %v3370_v19 = vmul.f32 %v3291_v15, %v6598_v18  ;;  %v3371_v14 = vmul.f32 %v4217_v55, %v3291_v15 }
 0x3bd   :  { %3664 = vst [vmem:[%s6469_s4 + $0x1d0] sm:$0xff] %v3600_v52  ;;  %3665 = vst.msk [vmem:[%s6469_s4 + $0x1d8] sm:$0xff] %vm2326_vm0, %v3601_v31 }
 0x3be   :  { %v3316_v16 = vpop.permute.xlu0 %3315  ;;  %v3515_v0 = vpop.permute.xlu1 %3514 }
 0x3bf   :  { %v3594_v46 = vadd.f32 %v3515_v0, %v3370_v19  ;;  %v3595_v51 = vadd.f32 %v3515_v0, %v3371_v14  ;;  %v3380_v35 = vmul.f32 %v3316_v16, %v6599_v54  ;;  %v3381_v22 = vmul.f32 %v4218_v28, %v3316_v16 }
 0x3c1   :  { %3658 = vst [vmem:[%s6469_s4 + $0x1a0] sm:$0xff] %v3594_v46  ;;  %3659 = vst.msk [vmem:[%s6469_s4 + $0x1a8] sm:$0xff] %vm2326_vm0, %v3595_v51 }
 0x3c2   :  { %v3540_v45 = vpop.permute.xlu0 %3539  ;;  %v3301_v38 = vpop.permute.xlu1 %3300 }
 0x3c3   :  { %v3604_v33 = vadd.f32 %v3540_v45, %v3380_v35  ;;  %v3605_v34 = vadd.f32 %v3540_v45, %v3381_v22  ;;  %v3374_v48 = vmul.f32 %v3301_v38, %v6600_v47  ;;  %v3375_v53 = vmul.f32 %v4219_v30, %v3301_v38 }
 0x3c5   :  { %3668 = vst [vmem:[%s6469_s4 + $0x1f0] sm:$0xff] %v3604_v33  ;;  %3669 = vst.msk [vmem:[%s6469_s4 + $0x1f8] sm:$0xff] %vm2326_vm0, %v3605_v34 }
 0x3c6   :  { %v3525_v43 = vpop.permute.xlu1 %3524 }
 0x3c7   :  { %v3598_v62 = vadd.f32 %v3525_v43, %v3374_v48  ;;  %v3599_v5 = vadd.f32 %v3525_v43, %v3375_v53 }
 0x3c9   :  { %3662 = vst [vmem:[%s6469_s4 + $0x1c0] sm:$0xff] %v3598_v62  ;;  %3663 = vst.msk [vmem:[%s6469_s4 + $0x1c8] sm:$0xff] %vm2326_vm0, %v3599_v5 }
 0x3ca   :  { %v3311_v39 = vpop.permute.xlu1 %3310 }
 0x3cb   :  { %v3378_v2 = vmul.f32 %v3311_v39, %v6601_v41  ;;  %v3379_v10 = vmul.f32 %v4220_v42, %v3311_v39 }
 0x3ce   :  { %v3535_v8 = vpop.permute.xlu1 %3534 }
 0x3cf   :  { %v3602_v13 = vadd.f32 %v3535_v8, %v3378_v2  ;;  %v3603_v40 = vadd.f32 %v3535_v8, %v3379_v10 }
 0x3d1   :  { %3666 = vst [vmem:[%s6469_s4 + $0x1e0] sm:$0xff] %v3602_v13  ;;  %3667 = vst.msk [vmem:[%s6469_s4 + $0x1e8] sm:$0xff] %vm2326_vm0, %v3603_v40 }

</bundles_post_ra>
